<compile_context>
chip_gen: v6e
topology: v6e:2x2x1
jax: 0.10.0
libtpu: 0.0.40
codegen_flags: <defaults>
</compile_context>

<pallas_src>
import numpy as np
import jax
import jax.numpy as jnp
from jax import lax
from jax.experimental import pallas as pl
from jax.experimental.pallas import tpu as pltpu


# -------------------------- Pallas kernel --------------------------

def bigru_kernel(x_ref, mask_ref,
                 wih_ref, bih_ref,
                 whh_f_ref, bhhn_f_ref, whh_b_ref, bhhn_b_ref,
                 out_ref, hfin_ref,
                 gx_ref):
    """Fused bidirectional GRU.

    x_ref     : [T*Bp, D]       time-major, batch padded to Bp (mult. of 8)
    mask_ref  : [T, Bp, 1]      f32 validity mask (1.0 where t < length)
    wih_ref   : [D, 6*Hp]       fwd gates (r,z,n) then bwd gates, each Hp-wide
    bih_ref   : [1, 6*Hp]       input biases with hidden r/z biases folded in
    whh_*     : [Hp, 3*Hp]      recurrent weights per direction
    bhhn_*    : [1, Hp]         hidden bias for the n-gate only (stays inside r*(.))
    out_ref   : [T, Bp, 2*Hp]   fwd -> [:, :, :Hp], bwd -> [:, :, Hp:]
    hfin_ref  : [Bp, 2*Hp]      final hidden, same lane split
    gx_ref    : [T*Bp, 6*Hp]    VMEM scratch for the hoisted input projection
    """
    T, Bp, _ = out_ref.shape
    Hp3 = whh_f_ref.shape[1]
    Hp = Hp3 // 3

    # ---- hoisted input projection for BOTH directions: one big MXU matmul ----
    gx_ref[...] = jnp.dot(x_ref[...], wih_ref[...],
                          preferred_element_type=jnp.float32) + bih_ref[...]

    # ---- recurrent weights / n-gate biases read once, live across the loop ----
    whh_f = whh_f_ref[...]
    whh_b = whh_b_ref[...]
    bhhn_f = bhhn_f_ref[...]
    bhhn_b = bhhn_b_ref[...]

    def gru_step(gx_t, h, whh, bhh_n):
        # Gate order (r, z, n) matches PyTorch's packed weights; each gate is a
        # 128-lane-aligned slab of width Hp, so slices are free vreg views.
        gh = jnp.dot(h, whh, preferred_element_type=jnp.float32)
        r = jax.nn.sigmoid(gx_t[:, 0:Hp] + gh[:, 0:Hp])
        z = jax.nn.sigmoid(gx_t[:, Hp:2 * Hp] + gh[:, Hp:2 * Hp])
        n = jnp.tanh(gx_t[:, 2 * Hp:3 * Hp] + r * (gh[:, 2 * Hp:3 * Hp] + bhh_n))
        return n + z * (h - n)

    # ---- fused forward / backward recurrence (two independent chains) ----
    def step(i, carry):
        h_f, h_b = carry
        tf = i
        tb = T - 1 - i

        row_f = pl.multiple_of(tf * Bp, Bp)
        row_b = pl.multiple_of(tb * Bp, Bp)
        gx_f = gx_ref[pl.ds(row_f, Bp), 0:Hp3]          # [Bp, 3Hp]
        gx_b = gx_ref[pl.ds(row_b, Bp), Hp3:2 * Hp3]    # [Bp, 3Hp]

        hf_new = gru_step(gx_f, h_f, whh_f, bhhn_f)
        hb_new = gru_step(gx_b, h_b, whh_b, bhhn_b)

        m_f = mask_ref[tf]                              # [Bp, 1] f32
        m_b = mask_ref[tb]

        # Lane-dense stores: each is a full aligned 128-lane slab.
        out_ref[tf, :, 0:Hp] = hf_new * m_f
        out_ref[tb, :, Hp:2 * Hp] = hb_new * m_b

        # Freeze hidden outside the valid range (fwd: t >= len; bwd: waits for
        # t < len, i.e. starts at t = len-1).
        h_f = h_f + m_f * (hf_new - h_f)
        h_b = h_b + m_b * (hb_new - h_b)
        return (h_f, h_b)

    h0 = jnp.zeros((Bp, Hp), jnp.float32)
    h_f, h_b = lax.fori_loop(0, T, step, (h0, h0), unroll=True)

    hfin_ref[:, 0:Hp] = h_f
    hfin_ref[:, Hp:2 * Hp] = h_b


# -------------------------- wrapper / glue --------------------------

def _round_up(x, m):
    return ((x + m - 1) // m) * m


def _pack_gate_cols(wt, H, Hp):
    """wt: [In, 3H] -> [In, 3Hp]; gate g goes to lane slab [g*Hp, g*Hp+H)."""
    In = wt.shape[0]
    out = jnp.zeros((In, 3 * Hp), jnp.float32)
    for g in range(3):
        out = out.at[:, g * Hp:g * Hp + H].set(wt[:, g * H:(g + 1) * H])
    return out


def _pack_bias(b, H, Hp):
    """b: [3H] -> [1, 3Hp] with the same lane-aligned gate slabs."""
    out = jnp.zeros((1, 3 * Hp), jnp.float32)
    for g in range(3):
        out = out.at[:, g * Hp:g * Hp + H].set(b[g * H:(g + 1) * H][None, :])
    return out


def _pack_rec(w_hh, H, Hp):
    """w_hh: [3H, H] (PyTorch layout) -> [Hp, 3Hp] padded + transposed."""
    wt = w_hh.T.astype(jnp.float32)                  # [H, 3H]
    packed = _pack_gate_cols(wt, H, Hp)              # [H, 3Hp]
    return jnp.zeros((Hp, 3 * Hp), jnp.float32).at[:H].set(packed)


def init_params(key, input_size, hidden_size):
    """Deterministic init mirroring nn.GRU parameter shapes (uniform(-1/sqrt(H), 1/sqrt(H)))."""
    bound = 1.0 / np.sqrt(hidden_size)
    keys = jax.random.split(key, 8)

    def u(k, shape):
        return jax.random.uniform(k, shape, jnp.float32, -bound, bound)

    return {
        "w_ih_fwd": u(keys[0], (3 * hidden_size, input_size)),
        "w_hh_fwd": u(keys[1], (3 * hidden_size, hidden_size)),
        "b_ih_fwd": u(keys[2], (3 * hidden_size,)),
        "b_hh_fwd": u(keys[3], (3 * hidden_size,)),
        "w_ih_bwd": u(keys[4], (3 * hidden_size, input_size)),
        "w_hh_bwd": u(keys[5], (3 * hidden_size, hidden_size)),
        "b_ih_bwd": u(keys[6], (3 * hidden_size,)),
        "b_hh_bwd": u(keys[7], (3 * hidden_size,)),
    }


def encoder_forward(params, x, mask, lengths):
    """
    x: [batch, time, dim] float32 (sorted by length, like the PyTorch module expects)
    mask: [batch, time] (unused by the forward pass, kept for signature parity)
    lengths: host int array [batch]
    Returns (output [B, max_len, 2H], hidden [1, B, 2H]).
    """
    del mask  # unused, same as the PyTorch forward
    B, T, D = x.shape
    H = params["w_hh_fwd"].shape[1]

    # Pad batch to a multiple of 8 sublanes and hidden to a multiple of 128 lanes
    # so every gate slab / store is (8,128)-aligned. Padded hidden dims stay
    # exactly 0 through the recurrence (zero weights/biases -> h' = 0.5*h = 0).
    Bp = _round_up(B, 8)
    Hp = _round_up(H, 128)

    lengths = np.asarray(lengths, np.int32)

    x_p = jnp.zeros((Bp, T, D), jnp.float32).at[:B].set(x.astype(jnp.float32))
    x_tbd = jnp.transpose(x_p, (1, 0, 2)).reshape(T * Bp, D)          # row t*Bp + b

    len_p = jnp.zeros((Bp,), jnp.int32).at[:B].set(jnp.asarray(lengths, jnp.int32))
    mask_tb1 = (jnp.arange(T, dtype=jnp.int32)[:, None]
                < len_p[None, :]).astype(jnp.float32)[:, :, None]     # [T, Bp, 1]

    # Input-projection weights / biases for both directions, lane-aligned per gate.
    wih_cat = jnp.concatenate(
        [_pack_gate_cols(params["w_ih_fwd"].T.astype(jnp.float32), H, Hp),
         _pack_gate_cols(params["w_ih_bwd"].T.astype(jnp.float32), H, Hp)], axis=1)

    bih_f = _pack_bias(params["b_ih_fwd"], H, Hp)                     # [1, 3Hp]
    bih_b = _pack_bias(params["b_ih_bwd"], H, Hp)
    bhh_f = _pack_bias(params["b_hh_fwd"], H, Hp)
    bhh_b = _pack_bias(params["b_hh_bwd"], H, Hp)

    # Fold hidden r/z biases into the (hoisted) input bias; only the n-gate hidden
    # bias must stay inside the recurrence (it sits inside r * (...)).
    bih_f = bih_f.at[:, 0:2 * Hp].add(bhh_f[:, 0:2 * Hp])
    bih_b = bih_b.at[:, 0:2 * Hp].add(bhh_b[:, 0:2 * Hp])
    bih_cat = jnp.concatenate([bih_f, bih_b], axis=1)                 # [1, 6Hp]
    bhhn_f = bhh_f[:, 2 * Hp:3 * Hp]                                  # [1, Hp]
    bhhn_b = bhh_b[:, 2 * Hp:3 * Hp]

    whh_fp = _pack_rec(params["w_hh_fwd"], H, Hp)
    whh_bp = _pack_rec(params["w_hh_bwd"], H, Hp)

    vmem = pl.BlockSpec(memory_space=pltpu.MemorySpace.VMEM)
    out_shape = (
        jax.ShapeDtypeStruct((T, Bp, 2 * Hp), jnp.float32),   # fwd | bwd outputs
        jax.ShapeDtypeStruct((Bp, 2 * Hp), jnp.float32),      # final hidden
    )

    # NOTE: for production shapes (large T*B*D), stream x / gx / out over a
    # T-chunk grid ("arbitrary" axis carrying h in VMEM scratch) and split the
    # batch across TensorCores on v7x; at these toy shapes everything fits VMEM.
    out, hfin = pl.pallas_call(
        bigru_kernel,
        out_shape=out_shape,
        in_specs=[vmem] * 8,
        out_specs=(vmem, vmem),
        scratch_shapes=[
            pltpu.VMEM((T * Bp, 6 * Hp), jnp.float32),
        ],
    )(x_tbd, mask_tb1, wih_cat, bih_cat, whh_fp, bhhn_f, whh_bp, bhhn_b)

    out_f = out[:, :B, :H]                                            # [T, B, H]
    out_b = out[:, :B, Hp:Hp + H]                                     # [T, B, H]
    output = jnp.transpose(jnp.concatenate([out_f, out_b], axis=-1), (1, 0, 2))
    # pad_packed_sequence trims to the longest length in the batch (host-side).
    max_len = int(np.max(lengths))
    output = output[:, :max_len]

    hidden = jnp.concatenate([hfin[:B, :H], hfin[:B, Hp:Hp + H]], axis=-1)[None]
    return output, hidden


# -------------------------- pure-numpy reference --------------------------

def _sigmoid(v):
    return 1.0 / (1.0 + np.exp(-v))


def _ref_dir(x, lengths, w_ih, w_hh, b_ih, b_hh, reverse):
    B, T, _ = x.shape
    H = w_hh.shape[1]
    out = np.zeros((B, T, H), np.float32)
    hfin = np.zeros((B, H), np.float32)
    for b in range(B):
        L = int(lengths[b])
        h = np.zeros(H, np.float32)
        ts = range(L - 1, -1, -1) if reverse else range(L)
        for t in ts:
            gx = w_ih @ x[b, t] + b_ih
            gh = w_hh @ h + b_hh
            r = _sigmoid(gx[:H] + gh[:H])
            z = _sigmoid(gx[H:2 * H] + gh[H:2 * H])
            n = np.tanh(gx[2 * H:] + r * gh[2 * H:])
            h = (1.0 - z) * n + z * h
            out[b, t] = h
        hfin[b] = h
    return out, hfin


def reference_encoder(params, x, lengths):
    p = {k: np.asarray(v, np.float32) for k, v in params.items()}
    of, hf = _ref_dir(x, lengths, p["w_ih_fwd"], p["w_hh_fwd"],
                      p["b_ih_fwd"], p["b_hh_fwd"], reverse=False)
    ob, hb = _ref_dir(x, lengths, p["w_ih_bwd"], p["w_hh_bwd"],
                      p["b_ih_bwd"], p["b_hh_bwd"], reverse=True)
    max_len = int(np.max(lengths))
    output = np.concatenate([of, ob], axis=-1)[:, :max_len]
    hidden = np.concatenate([hf, hb], axis=-1)[None]
    return output, hidden


# -------------------------- main --------------------------

if __name__ == "__main__":
    B, T, D, H = 4, 8, 16, 32
    key = jax.random.PRNGKey(0)
    kx, kp = jax.random.split(key)

    x = jax.random.normal(kx, (B, T, D), jnp.float32)
    lengths = np.array([8, 7, 5, 3], dtype=np.int32)          # sorted descending
    mask = jnp.asarray(np.arange(T)[None, :] < lengths[:, None])

    params = init_params(kp, D, H)

    output, hidden = encoder_forward(params, x, mask, lengths)
    jax.block_until_ready((output, hidden))

    ref_output, ref_hidden = reference_encoder(params, np.asarray(x), lengths)
    assert output.shape == ref_output.shape and hidden.shape == ref_hidden.shape
    assert np.allclose(np.asarray(output), ref_output, atol=1e-4, rtol=1e-4)
    assert np.allclose(np.asarray(hidden), ref_hidden, atol=1e-4, rtol=1e-4)

    print("KERNEL_OK")
</pallas_src>

<mosaic_0001>
module attributes {stable_mosaic.version = 11 : i64} {
  func.func @bigru_kernel(%arg0: memref<64x16xf32, #tpu.memory_space<vmem>>, %arg1: memref<8x8x1xf32, #tpu.memory_space<vmem>>, %arg2: memref<16x768xf32, #tpu.memory_space<vmem>>, %arg3: memref<1x768xf32, #tpu.memory_space<vmem>>, %arg4: memref<128x384xf32, #tpu.memory_space<vmem>>, %arg5: memref<1x128xf32, #tpu.memory_space<vmem>>, %arg6: memref<128x384xf32, #tpu.memory_space<vmem>>, %arg7: memref<1x128xf32, #tpu.memory_space<vmem>>, %arg8: memref<8x8x256xf32, #tpu.memory_space<vmem>>, %arg9: memref<8x256xf32, #tpu.memory_space<vmem>>, %arg10: memref<64x768xf32, #tpu.memory_space<vmem>>) attributes {dimension_semantics = [], scalar_prefetch = 0 : i64, scratch_operands = 1 : i64, tpu.core_type = #tpu.core_type<tc>} {
    %c0 = arith.constant 0 : index
    %c0_0 = arith.constant 0 : index
    %0 = vector.load %arg0[%c0, %c0_0] : memref<64x16xf32, #tpu.memory_space<vmem>>, vector<64x16xf32>
    %c0_1 = arith.constant 0 : index
    %c0_2 = arith.constant 0 : index
    %1 = vector.load %arg2[%c0_1, %c0_2] : memref<16x768xf32, #tpu.memory_space<vmem>>, vector<16x768xf32>
    %cst = arith.constant dense<0.000000e+00> : vector<64x768xf32>
    %2 = tpu.matmul %0, %1, %cst {dimension_numbers = #tpu.dot_dimension_numbers<[1], [0], [0], [1], [0, 0, 1, 1], [], []>} : vector<64x16xf32>, vector<16x768xf32>, vector<64x768xf32> -> vector<64x768xf32>
    %c0_3 = arith.constant 0 : index
    %c0_4 = arith.constant 0 : index
    %3 = vector.load %arg3[%c0_3, %c0_4] : memref<1x768xf32, #tpu.memory_space<vmem>>, vector<1x768xf32>
    %4 = vector.broadcast %3 : vector<1x768xf32> to vector<64x768xf32>
    %5 = arith.addf %2, %4 : vector<64x768xf32>
    %c0_5 = arith.constant 0 : index
    %c0_6 = arith.constant 0 : index
    %6 = vector.load %arg10[%c0_5, %c0_6] : memref<64x768xf32, #tpu.memory_space<vmem>>, vector<64x768xf32>
    tpu.vector_store %arg10[%c0_5, %c0_6], %5 {strides = array<i32>} : memref<64x768xf32, #tpu.memory_space<vmem>>, vector<64x768xf32>,
    %c0_7 = arith.constant 0 : index
    %c0_8 = arith.constant 0 : index
    %7 = vector.load %arg4[%c0_7, %c0_8] : memref<128x384xf32, #tpu.memory_space<vmem>>, vector<128x384xf32>
    %c0_9 = arith.constant 0 : index
    %c0_10 = arith.constant 0 : index
    %8 = vector.load %arg6[%c0_9, %c0_10] : memref<128x384xf32, #tpu.memory_space<vmem>>, vector<128x384xf32>
    %c0_11 = arith.constant 0 : index
    %c0_12 = arith.constant 0 : index
    %9 = vector.load %arg5[%c0_11, %c0_12] : memref<1x128xf32, #tpu.memory_space<vmem>>, vector<1x128xf32>
    %c0_13 = arith.constant 0 : index
    %c0_14 = arith.constant 0 : index
    %10 = vector.load %arg7[%c0_13, %c0_14] : memref<1x128xf32, #tpu.memory_space<vmem>>, vector<1x128xf32>
    %cst_15 = arith.constant 0.000000e+00 : f32
    %11 = vector.broadcast %cst_15 : f32 to vector<8x128xf32>
    %c0_i32 = arith.constant 0 : i32
    %c7_i32 = arith.constant 7 : i32
    %12 = arith.subi %c7_i32, %c0_i32 : i32
    %c8_i32 = arith.constant 8 : i32
    %13 = arith.muli %c0_i32, %c8_i32 : i32
    %14 = tpu.assume_multiple %13, 8 : i32
    %c8_i32_16 = arith.constant 8 : i32
    %15 = arith.muli %12, %c8_i32_16 : i32
    %16 = tpu.assume_multiple %15, 8 : i32
    %17 = arith.index_cast %14 : i32 to index
    %c0_17 = arith.constant 0 : index
    %18 = vector.load %arg10[%17, %c0_17] : memref<64x768xf32, #tpu.memory_space<vmem>>, vector<8x384xf32>
    %19 = arith.index_cast %16 : i32 to index
    %c384 = arith.constant 384 : index
    %20 = vector.load %arg10[%19, %c384] : memref<64x768xf32, #tpu.memory_space<vmem>>, vector<8x384xf32>
    %cst_18 = arith.constant dense<0.000000e+00> : vector<8x384xf32>
    %21 = tpu.matmul %11, %7, %cst_18 {dimension_numbers = #tpu.dot_dimension_numbers<[1], [0], [0], [1], [0, 0, 1, 1], [], []>} : vector<8x128xf32>, vector<128x384xf32>, vector<8x384xf32> -> vector<8x384xf32>
    %22 = vector.extract_strided_slice %18 {offsets = [0, 0], sizes = [8, 128], strides = [1, 1]} : vector<8x384xf32> to vector<8x128xf32>
    %23 = vector.extract_strided_slice %21 {offsets = [0, 0], sizes = [8, 128], strides = [1, 1]} : vector<8x384xf32> to vector<8x128xf32>
    %24 = arith.addf %22, %23 : vector<8x128xf32>
    %25 = arith.negf %24 : vector<8x128xf32>
    %26 = math.exp %25 : vector<8x128xf32>
    %cst_19 = arith.constant 1.000000e+00 : f32
    %27 = vector.broadcast %cst_19 : f32 to vector<8x128xf32>
    %28 = arith.addf %27, %26 : vector<8x128xf32>
    %29 = arith.divf %27, %28 : vector<8x128xf32>
    %30 = vector.extract_strided_slice %18 {offsets = [0, 128], sizes = [8, 128], strides = [1, 1]} : vector<8x384xf32> to vector<8x128xf32>
    %31 = vector.extract_strided_slice %21 {offsets = [0, 128], sizes = [8, 128], strides = [1, 1]} : vector<8x384xf32> to vector<8x128xf32>
    %32 = arith.addf %30, %31 : vector<8x128xf32>
    %33 = arith.negf %32 : vector<8x128xf32>
    %34 = math.exp %33 : vector<8x128xf32>
    %cst_20 = arith.constant 1.000000e+00 : f32
    %35 = vector.broadcast %cst_20 : f32 to vector<8x128xf32>
    %36 = arith.addf %35, %34 : vector<8x128xf32>
    %37 = arith.divf %35, %36 : vector<8x128xf32>
    %38 = vector.extract_strided_slice %18 {offsets = [0, 256], sizes = [8, 128], strides = [1, 1]} : vector<8x384xf32> to vector<8x128xf32>
    %39 = vector.extract_strided_slice %21 {offsets = [0, 256], sizes = [8, 128], strides = [1, 1]} : vector<8x384xf32> to vector<8x128xf32>
    %40 = vector.broadcast %9 : vector<1x128xf32> to vector<8x128xf32>
    %41 = arith.addf %39, %40 : vector<8x128xf32>
    %42 = arith.mulf %29, %41 : vector<8x128xf32>
    %43 = arith.addf %38, %42 : vector<8x128xf32>
    %44 = math.tanh %43 : vector<8x128xf32>
    %45 = arith.subf %11, %44 : vector<8x128xf32>
    %46 = arith.mulf %37, %45 : vector<8x128xf32>
    %47 = arith.addf %44, %46 : vector<8x128xf32>
    %cst_21 = arith.constant dense<0.000000e+00> : vector<8x384xf32>
    %48 = tpu.matmul %11, %8, %cst_21 {dimension_numbers = #tpu.dot_dimension_numbers<[1], [0], [0], [1], [0, 0, 1, 1], [], []>} : vector<8x128xf32>, vector<128x384xf32>, vector<8x384xf32> -> vector<8x384xf32>
    %49 = vector.extract_strided_slice %20 {offsets = [0, 0], sizes = [8, 128], strides = [1, 1]} : vector<8x384xf32> to vector<8x128xf32>
    %50 = vector.extract_strided_slice %48 {offsets = [0, 0], sizes = [8, 128], strides = [1, 1]} : vector<8x384xf32> to vector<8x128xf32>
    %51 = arith.addf %49, %50 : vector<8x128xf32>
    %52 = arith.negf %51 : vector<8x128xf32>
    %53 = math.exp %52 : vector<8x128xf32>
    %cst_22 = arith.constant 1.000000e+00 : f32
    %54 = vector.broadcast %cst_22 : f32 to vector<8x128xf32>
    %55 = arith.addf %54, %53 : vector<8x128xf32>
    %56 = arith.divf %54, %55 : vector<8x128xf32>
    %57 = vector.extract_strided_slice %20 {offsets = [0, 128], sizes = [8, 128], strides = [1, 1]} : vector<8x384xf32> to vector<8x128xf32>
    %58 = vector.extract_strided_slice %48 {offsets = [0, 128], sizes = [8, 128], strides = [1, 1]} : vector<8x384xf32> to vector<8x128xf32>
    %59 = arith.addf %57, %58 : vector<8x128xf32>
    %60 = arith.negf %59 : vector<8x128xf32>
    %61 = math.exp %60 : vector<8x128xf32>
    %cst_23 = arith.constant 1.000000e+00 : f32
    %62 = vector.broadcast %cst_23 : f32 to vector<8x128xf32>
    %63 = arith.addf %62, %61 : vector<8x128xf32>
    %64 = arith.divf %62, %63 : vector<8x128xf32>
    %65 = vector.extract_strided_slice %20 {offsets = [0, 256], sizes = [8, 128], strides = [1, 1]} : vector<8x384xf32> to vector<8x128xf32>
    %66 = vector.extract_strided_slice %48 {offsets = [0, 256], sizes = [8, 128], strides = [1, 1]} : vector<8x384xf32> to vector<8x128xf32>
    %67 = vector.broadcast %10 : vector<1x128xf32> to vector<8x128xf32>
    %68 = arith.addf %66, %67 : vector<8x128xf32>
    %69 = arith.mulf %56, %68 : vector<8x128xf32>
    %70 = arith.addf %65, %69 : vector<8x128xf32>
    %71 = math.tanh %70 : vector<8x128xf32>
    %72 = arith.subf %11, %71 : vector<8x128xf32>
    %73 = arith.mulf %64, %72 : vector<8x128xf32>
    %74 = arith.addf %71, %73 : vector<8x128xf32>
    %75 = arith.index_cast %c0_i32 : i32 to index
    %c0_24 = arith.constant 0 : index
    %c0_25 = arith.constant 0 : index
    %76 = vector.load %arg1[%75, %c0_24, %c0_25] : memref<8x8x1xf32, #tpu.memory_space<vmem>>, vector<1x8x1xf32>
    %77 = vector.shape_cast %76 : vector<1x8x1xf32> to vector<8x1xf32>
    %78 = arith.index_cast %12 : i32 to index
    %c0_26 = arith.constant 0 : index
    %c0_27 = arith.constant 0 : index
    %79 = vector.load %arg1[%78, %c0_26, %c0_27] : memref<8x8x1xf32, #tpu.memory_space<vmem>>, vector<1x8x1xf32>
    %80 = vector.shape_cast %79 : vector<1x8x1xf32> to vector<8x1xf32>
    %81 = vector.broadcast %77 : vector<8x1xf32> to vector<8x128xf32>
    %82 = arith.mulf %47, %81 : vector<8x128xf32>
    %83 = arith.index_cast %c0_i32 : i32 to index
    %c0_28 = arith.constant 0 : index
    %c0_29 = arith.constant 0 : index
    %84 = vector.load %arg8[%83, %c0_28, %c0_29] : memref<8x8x256xf32, #tpu.memory_space<vmem>>, vector<1x8x128xf32>
    %85 = vector.shape_cast %84 : vector<1x8x128xf32> to vector<8x128xf32>
    %86 = vector.shape_cast %82 : vector<8x128xf32> to vector<1x8x128xf32>
    tpu.vector_store %arg8[%83, %c0_28, %c0_29], %86 {strides = array<i32>} : memref<8x8x256xf32, #tpu.memory_space<vmem>>, vector<1x8x128xf32>,
    %87 = vector.broadcast %80 : vector<8x1xf32> to vector<8x128xf32>
    %88 = arith.mulf %74, %87 : vector<8x128xf32>
    %89 = arith.index_cast %12 : i32 to index
    %c0_30 = arith.constant 0 : index
    %c128 = arith.constant 128 : index
    %90 = vector.load %arg8[%89, %c0_30, %c128] : memref<8x8x256xf32, #tpu.memory_space<vmem>>, vector<1x8x128xf32>
    %91 = vector.shape_cast %90 : vector<1x8x128xf32> to vector<8x128xf32>
    %92 = vector.shape_cast %88 : vector<8x128xf32> to vector<1x8x128xf32>
    tpu.vector_store %arg8[%89, %c0_30, %c128], %92 {strides = array<i32>} : memref<8x8x256xf32, #tpu.memory_space<vmem>>, vector<1x8x128xf32>,
    %93 = arith.subf %47, %11 : vector<8x128xf32>
    %94 = vector.broadcast %77 : vector<8x1xf32> to vector<8x128xf32>
    %95 = arith.mulf %94, %93 : vector<8x128xf32>
    %96 = arith.addf %11, %95 : vector<8x128xf32>
    %97 = arith.subf %74, %11 : vector<8x128xf32>
    %98 = vector.broadcast %80 : vector<8x1xf32> to vector<8x128xf32>
    %99 = arith.mulf %98, %97 : vector<8x128xf32>
    %100 = arith.addf %11, %99 : vector<8x128xf32>
    %c1_i32 = arith.constant 1 : i32
    %c7_i32_31 = arith.constant 7 : i32
    %101 = arith.subi %c7_i32_31, %c1_i32 : i32
    %c8_i32_32 = arith.constant 8 : i32
    %102 = arith.muli %c1_i32, %c8_i32_32 : i32
    %103 = tpu.assume_multiple %102, 8 : i32
    %c8_i32_33 = arith.constant 8 : i32
    %104 = arith.muli %101, %c8_i32_33 : i32
    %105 = tpu.assume_multiple %104, 8 : i32
    %106 = arith.index_cast %103 : i32 to index
    %c0_34 = arith.constant 0 : index
    %107 = vector.load %arg10[%106, %c0_34] : memref<64x768xf32, #tpu.memory_space<vmem>>, vector<8x384xf32>
    %108 = arith.index_cast %105 : i32 to index
    %c384_35 = arith.constant 384 : index
    %109 = vector.load %arg10[%108, %c384_35] : memref<64x768xf32, #tpu.memory_space<vmem>>, vector<8x384xf32>
    %cst_36 = arith.constant dense<0.000000e+00> : vector<8x384xf32>
    %110 = tpu.matmul %96, %7, %cst_36 {dimension_numbers = #tpu.dot_dimension_numbers<[1], [0], [0], [1], [0, 0, 1, 1], [], []>} : vector<8x128xf32>, vector<128x384xf32>, vector<8x384xf32> -> vector<8x384xf32>
    %111 = vector.extract_strided_slice %107 {offsets = [0, 0], sizes = [8, 128], strides = [1, 1]} : vector<8x384xf32> to vector<8x128xf32>
    %112 = vector.extract_strided_slice %110 {offsets = [0, 0], sizes = [8, 128], strides = [1, 1]} : vector<8x384xf32> to vector<8x128xf32>
    %113 = arith.addf %111, %112 : vector<8x128xf32>
    %114 = arith.negf %113 : vector<8x128xf32>
    %115 = math.exp %114 : vector<8x128xf32>
    %cst_37 = arith.constant 1.000000e+00 : f32
    %116 = vector.broadcast %cst_37 : f32 to vector<8x128xf32>
    %117 = arith.addf %116, %115 : vector<8x128xf32>
    %118 = arith.divf %116, %117 : vector<8x128xf32>
    %119 = vector.extract_strided_slice %107 {offsets = [0, 128], sizes = [8, 128], strides = [1, 1]} : vector<8x384xf32> to vector<8x128xf32>
    %120 = vector.extract_strided_slice %110 {offsets = [0, 128], sizes = [8, 128], strides = [1, 1]} : vector<8x384xf32> to vector<8x128xf32>
    %121 = arith.addf %119, %120 : vector<8x128xf32>
    %122 = arith.negf %121 : vector<8x128xf32>
    %123 = math.exp %122 : vector<8x128xf32>
    %cst_38 = arith.constant 1.000000e+00 : f32
    %124 = vector.broadcast %cst_38 : f32 to vector<8x128xf32>
    %125 = arith.addf %124, %123 : vector<8x128xf32>
    %126 = arith.divf %124, %125 : vector<8x128xf32>
    %127 = vector.extract_strided_slice %107 {offsets = [0, 256], sizes = [8, 128], strides = [1, 1]} : vector<8x384xf32> to vector<8x128xf32>
    %128 = vector.extract_strided_slice %110 {offsets = [0, 256], sizes = [8, 128], strides = [1, 1]} : vector<8x384xf32> to vector<8x128xf32>
    %129 = vector.broadcast %9 : vector<1x128xf32> to vector<8x128xf32>
    %130 = arith.addf %128, %129 : vector<8x128xf32>
    %131 = arith.mulf %118, %130 : vector<8x128xf32>
    %132 = arith.addf %127, %131 : vector<8x128xf32>
    %133 = math.tanh %132 : vector<8x128xf32>
    %134 = arith.subf %96, %133 : vector<8x128xf32>
    %135 = arith.mulf %126, %134 : vector<8x128xf32>
    %136 = arith.addf %133, %135 : vector<8x128xf32>
    %cst_39 = arith.constant dense<0.000000e+00> : vector<8x384xf32>
    %137 = tpu.matmul %100, %8, %cst_39 {dimension_numbers = #tpu.dot_dimension_numbers<[1], [0], [0], [1], [0, 0, 1, 1], [], []>} : vector<8x128xf32>, vector<128x384xf32>, vector<8x384xf32> -> vector<8x384xf32>
    %138 = vector.extract_strided_slice %109 {offsets = [0, 0], sizes = [8, 128], strides = [1, 1]} : vector<8x384xf32> to vector<8x128xf32>
    %139 = vector.extract_strided_slice %137 {offsets = [0, 0], sizes = [8, 128], strides = [1, 1]} : vector<8x384xf32> to vector<8x128xf32>
    %140 = arith.addf %138, %139 : vector<8x128xf32>
    %141 = arith.negf %140 : vector<8x128xf32>
    %142 = math.exp %141 : vector<8x128xf32>
    %cst_40 = arith.constant 1.000000e+00 : f32
    %143 = vector.broadcast %cst_40 : f32 to vector<8x128xf32>
    %144 = arith.addf %143, %142 : vector<8x128xf32>
    %145 = arith.divf %143, %144 : vector<8x128xf32>
    %146 = vector.extract_strided_slice %109 {offsets = [0, 128], sizes = [8, 128], strides = [1, 1]} : vector<8x384xf32> to vector<8x128xf32>
    %147 = vector.extract_strided_slice %137 {offsets = [0, 128], sizes = [8, 128], strides = [1, 1]} : vector<8x384xf32> to vector<8x128xf32>
    %148 = arith.addf %146, %147 : vector<8x128xf32>
    %149 = arith.negf %148 : vector<8x128xf32>
    %150 = math.exp %149 : vector<8x128xf32>
    %cst_41 = arith.constant 1.000000e+00 : f32
    %151 = vector.broadcast %cst_41 : f32 to vector<8x128xf32>
    %152 = arith.addf %151, %150 : vector<8x128xf32>
    %153 = arith.divf %151, %152 : vector<8x128xf32>
    %154 = vector.extract_strided_slice %109 {offsets = [0, 256], sizes = [8, 128], strides = [1, 1]} : vector<8x384xf32> to vector<8x128xf32>
    %155 = vector.extract_strided_slice %137 {offsets = [0, 256], sizes = [8, 128], strides = [1, 1]} : vector<8x384xf32> to vector<8x128xf32>
    %156 = vector.broadcast %10 : vector<1x128xf32> to vector<8x128xf32>
    %157 = arith.addf %155, %156 : vector<8x128xf32>
    %158 = arith.mulf %145, %157 : vector<8x128xf32>
    %159 = arith.addf %154, %158 : vector<8x128xf32>
    %160 = math.tanh %159 : vector<8x128xf32>
    %161 = arith.subf %100, %160 : vector<8x128xf32>
    %162 = arith.mulf %153, %161 : vector<8x128xf32>
    %163 = arith.addf %160, %162 : vector<8x128xf32>
    %164 = arith.index_cast %c1_i32 : i32 to index
    %c0_42 = arith.constant 0 : index
    %c0_43 = arith.constant 0 : index
    %165 = vector.load %arg1[%164, %c0_42, %c0_43] : memref<8x8x1xf32, #tpu.memory_space<vmem>>, vector<1x8x1xf32>
    %166 = vector.shape_cast %165 : vector<1x8x1xf32> to vector<8x1xf32>
    %167 = arith.index_cast %101 : i32 to index
    %c0_44 = arith.constant 0 : index
    %c0_45 = arith.constant 0 : index
    %168 = vector.load %arg1[%167, %c0_44, %c0_45] : memref<8x8x1xf32, #tpu.memory_space<vmem>>, vector<1x8x1xf32>
    %169 = vector.shape_cast %168 : vector<1x8x1xf32> to vector<8x1xf32>
    %170 = vector.broadcast %166 : vector<8x1xf32> to vector<8x128xf32>
    %171 = arith.mulf %136, %170 : vector<8x128xf32>
    %172 = arith.index_cast %c1_i32 : i32 to index
    %c0_46 = arith.constant 0 : index
    %c0_47 = arith.constant 0 : index
    %173 = vector.load %arg8[%172, %c0_46, %c0_47] : memref<8x8x256xf32, #tpu.memory_space<vmem>>, vector<1x8x128xf32>
    %174 = vector.shape_cast %173 : vector<1x8x128xf32> to vector<8x128xf32>
    %175 = vector.shape_cast %171 : vector<8x128xf32> to vector<1x8x128xf32>
    tpu.vector_store %arg8[%172, %c0_46, %c0_47], %175 {strides = array<i32>} : memref<8x8x256xf32, #tpu.memory_space<vmem>>, vector<1x8x128xf32>,
    %176 = vector.broadcast %169 : vector<8x1xf32> to vector<8x128xf32>
    %177 = arith.mulf %163, %176 : vector<8x128xf32>
    %178 = arith.index_cast %101 : i32 to index
    %c0_48 = arith.constant 0 : index
    %c128_49 = arith.constant 128 : index
    %179 = vector.load %arg8[%178, %c0_48, %c128_49] : memref<8x8x256xf32, #tpu.memory_space<vmem>>, vector<1x8x128xf32>
    %180 = vector.shape_cast %179 : vector<1x8x128xf32> to vector<8x128xf32>
    %181 = vector.shape_cast %177 : vector<8x128xf32> to vector<1x8x128xf32>
    tpu.vector_store %arg8[%178, %c0_48, %c128_49], %181 {strides = array<i32>} : memref<8x8x256xf32, #tpu.memory_space<vmem>>, vector<1x8x128xf32>,
    %182 = arith.subf %136, %96 : vector<8x128xf32>
    %183 = vector.broadcast %166 : vector<8x1xf32> to vector<8x128xf32>
    %184 = arith.mulf %183, %182 : vector<8x128xf32>
    %185 = arith.addf %96, %184 : vector<8x128xf32>
    %186 = arith.subf %163, %100 : vector<8x128xf32>
    %187 = vector.broadcast %169 : vector<8x1xf32> to vector<8x128xf32>
    %188 = arith.mulf %187, %186 : vector<8x128xf32>
    %189 = arith.addf %100, %188 : vector<8x128xf32>
    %c2_i32 = arith.constant 2 : i32
    %c7_i32_50 = arith.constant 7 : i32
    %190 = arith.subi %c7_i32_50, %c2_i32 : i32
    %c8_i32_51 = arith.constant 8 : i32
    %191 = arith.muli %c2_i32, %c8_i32_51 : i32
    %192 = tpu.assume_multiple %191, 8 : i32
    %c8_i32_52 = arith.constant 8 : i32
    %193 = arith.muli %190, %c8_i32_52 : i32
    %194 = tpu.assume_multiple %193, 8 : i32
    %195 = arith.index_cast %192 : i32 to index
    %c0_53 = arith.constant 0 : index
    %196 = vector.load %arg10[%195, %c0_53] : memref<64x768xf32, #tpu.memory_space<vmem>>, vector<8x384xf32>
    %197 = arith.index_cast %194 : i32 to index
    %c384_54 = arith.constant 384 : index
    %198 = vector.load %arg10[%197, %c384_54] : memref<64x768xf32, #tpu.memory_space<vmem>>, vector<8x384xf32>
    %cst_55 = arith.constant dense<0.000000e+00> : vector<8x384xf32>
    %199 = tpu.matmul %185, %7, %cst_55 {dimension_numbers = #tpu.dot_dimension_numbers<[1], [0], [0], [1], [0, 0, 1, 1], [], []>} : vector<8x128xf32>, vector<128x384xf32>, vector<8x384xf32> -> vector<8x384xf32>
    %200 = vector.extract_strided_slice %196 {offsets = [0, 0], sizes = [8, 128], strides = [1, 1]} : vector<8x384xf32> to vector<8x128xf32>
    %201 = vector.extract_strided_slice %199 {offsets = [0, 0], sizes = [8, 128], strides = [1, 1]} : vector<8x384xf32> to vector<8x128xf32>
    %202 = arith.addf %200, %201 : vector<8x128xf32>
    %203 = arith.negf %202 : vector<8x128xf32>
    %204 = math.exp %203 : vector<8x128xf32>
    %cst_56 = arith.constant 1.000000e+00 : f32
    %205 = vector.broadcast %cst_56 : f32 to vector<8x128xf32>
    %206 = arith.addf %205, %204 : vector<8x128xf32>
    %207 = arith.divf %205, %206 : vector<8x128xf32>
    %208 = vector.extract_strided_slice %196 {offsets = [0, 128], sizes = [8, 128], strides = [1, 1]} : vector<8x384xf32> to vector<8x128xf32>
    %209 = vector.extract_strided_slice %199 {offsets = [0, 128], sizes = [8, 128], strides = [1, 1]} : vector<8x384xf32> to vector<8x128xf32>
    %210 = arith.addf %208, %209 : vector<8x128xf32>
    %211 = arith.negf %210 : vector<8x128xf32>
    %212 = math.exp %211 : vector<8x128xf32>
    %cst_57 = arith.constant 1.000000e+00 : f32
    %213 = vector.broadcast %cst_57 : f32 to vector<8x128xf32>
    %214 = arith.addf %213, %212 : vector<8x128xf32>
    %215 = arith.divf %213, %214 : vector<8x128xf32>
    %216 = vector.extract_strided_slice %196 {offsets = [0, 256], sizes = [8, 128], strides = [1, 1]} : vector<8x384xf32> to vector<8x128xf32>
    %217 = vector.extract_strided_slice %199 {offsets = [0, 256], sizes = [8, 128], strides = [1, 1]} : vector<8x384xf32> to vector<8x128xf32>
    %218 = vector.broadcast %9 : vector<1x128xf32> to vector<8x128xf32>
    %219 = arith.addf %217, %218 : vector<8x128xf32>
    %220 = arith.mulf %207, %219 : vector<8x128xf32>
    %221 = arith.addf %216, %220 : vector<8x128xf32>
    %222 = math.tanh %221 : vector<8x128xf32>
    %223 = arith.subf %185, %222 : vector<8x128xf32>
    %224 = arith.mulf %215, %223 : vector<8x128xf32>
    %225 = arith.addf %222, %224 : vector<8x128xf32>
    %cst_58 = arith.constant dense<0.000000e+00> : vector<8x384xf32>
    %226 = tpu.matmul %189, %8, %cst_58 {dimension_numbers = #tpu.dot_dimension_numbers<[1], [0], [0], [1], [0, 0, 1, 1], [], []>} : vector<8x128xf32>, vector<128x384xf32>, vector<8x384xf32> -> vector<8x384xf32>
    %227 = vector.extract_strided_slice %198 {offsets = [0, 0], sizes = [8, 128], strides = [1, 1]} : vector<8x384xf32> to vector<8x128xf32>
    %228 = vector.extract_strided_slice %226 {offsets = [0, 0], sizes = [8, 128], strides = [1, 1]} : vector<8x384xf32> to vector<8x128xf32>
    %229 = arith.addf %227, %228 : vector<8x128xf32>
    %230 = arith.negf %229 : vector<8x128xf32>
    %231 = math.exp %230 : vector<8x128xf32>
    %cst_59 = arith.constant 1.000000e+00 : f32
    %232 = vector.broadcast %cst_59 : f32 to vector<8x128xf32>
    %233 = arith.addf %232, %231 : vector<8x128xf32>
    %234 = arith.divf %232, %233 : vector<8x128xf32>
    %235 = vector.extract_strided_slice %198 {offsets = [0, 128], sizes = [8, 128], strides = [1, 1]} : vector<8x384xf32> to vector<8x128xf32>
    %236 = vector.extract_strided_slice %226 {offsets = [0, 128], sizes = [8, 128], strides = [1, 1]} : vector<8x384xf32> to vector<8x128xf32>
    %237 = arith.addf %235, %236 : vector<8x128xf32>
    %238 = arith.negf %237 : vector<8x128xf32>
    %239 = math.exp %238 : vector<8x128xf32>
    %cst_60 = arith.constant 1.000000e+00 : f32
    %240 = vector.broadcast %cst_60 : f32 to vector<8x128xf32>
    %241 = arith.addf %240, %239 : vector<8x128xf32>
    %242 = arith.divf %240, %241 : vector<8x128xf32>
    %243 = vector.extract_strided_slice %198 {offsets = [0, 256], sizes = [8, 128], strides = [1, 1]} : vector<8x384xf32> to vector<8x128xf32>
    %244 = vector.extract_strided_slice %226 {offsets = [0, 256], sizes = [8, 128], strides = [1, 1]} : vector<8x384xf32> to vector<8x128xf32>
    %245 = vector.broadcast %10 : vector<1x128xf32> to vector<8x128xf32>
    %246 = arith.addf %244, %245 : vector<8x128xf32>
    %247 = arith.mulf %234, %246 : vector<8x128xf32>
    %248 = arith.addf %243, %247 : vector<8x128xf32>
    %249 = math.tanh %248 : vector<8x128xf32>
    %250 = arith.subf %189, %249 : vector<8x128xf32>
    %251 = arith.mulf %242, %250 : vector<8x128xf32>
    %252 = arith.addf %249, %251 : vector<8x128xf32>
    %253 = arith.index_cast %c2_i32 : i32 to index
    %c0_61 = arith.constant 0 : index
    %c0_62 = arith.constant 0 : index
    %254 = vector.load %arg1[%253, %c0_61, %c0_62] : memref<8x8x1xf32, #tpu.memory_space<vmem>>, vector<1x8x1xf32>
    %255 = vector.shape_cast %254 : vector<1x8x1xf32> to vector<8x1xf32>
    %256 = arith.index_cast %190 : i32 to index
    %c0_63 = arith.constant 0 : index
    %c0_64 = arith.constant 0 : index
    %257 = vector.load %arg1[%256, %c0_63, %c0_64] : memref<8x8x1xf32, #tpu.memory_space<vmem>>, vector<1x8x1xf32>
    %258 = vector.shape_cast %257 : vector<1x8x1xf32> to vector<8x1xf32>
    %259 = vector.broadcast %255 : vector<8x1xf32> to vector<8x128xf32>
    %260 = arith.mulf %225, %259 : vector<8x128xf32>
    %261 = arith.index_cast %c2_i32 : i32 to index
    %c0_65 = arith.constant 0 : index
    %c0_66 = arith.constant 0 : index
    %262 = vector.load %arg8[%261, %c0_65, %c0_66] : memref<8x8x256xf32, #tpu.memory_space<vmem>>, vector<1x8x128xf32>
    %263 = vector.shape_cast %262 : vector<1x8x128xf32> to vector<8x128xf32>
    %264 = vector.shape_cast %260 : vector<8x128xf32> to vector<1x8x128xf32>
    tpu.vector_store %arg8[%261, %c0_65, %c0_66], %264 {strides = array<i32>} : memref<8x8x256xf32, #tpu.memory_space<vmem>>, vector<1x8x128xf32>,
    %265 = vector.broadcast %258 : vector<8x1xf32> to vector<8x128xf32>
    %266 = arith.mulf %252, %265 : vector<8x128xf32>
    %267 = arith.index_cast %190 : i32 to index
    %c0_67 = arith.constant 0 : index
    %c128_68 = arith.constant 128 : index
    %268 = vector.load %arg8[%267, %c0_67, %c128_68] : memref<8x8x256xf32, #tpu.memory_space<vmem>>, vector<1x8x128xf32>
    %269 = vector.shape_cast %268 : vector<1x8x128xf32> to vector<8x128xf32>
    %270 = vector.shape_cast %266 : vector<8x128xf32> to vector<1x8x128xf32>
    tpu.vector_store %arg8[%267, %c0_67, %c128_68], %270 {strides = array<i32>} : memref<8x8x256xf32, #tpu.memory_space<vmem>>, vector<1x8x128xf32>,
    %271 = arith.subf %225, %185 : vector<8x128xf32>
    %272 = vector.broadcast %255 : vector<8x1xf32> to vector<8x128xf32>
    %273 = arith.mulf %272, %271 : vector<8x128xf32>
    %274 = arith.addf %185, %273 : vector<8x128xf32>
    %275 = arith.subf %252, %189 : vector<8x128xf32>
    %276 = vector.broadcast %258 : vector<8x1xf32> to vector<8x128xf32>
    %277 = arith.mulf %276, %275 : vector<8x128xf32>
    %278 = arith.addf %189, %277 : vector<8x128xf32>
    %c3_i32 = arith.constant 3 : i32
    %c7_i32_69 = arith.constant 7 : i32
    %279 = arith.subi %c7_i32_69, %c3_i32 : i32
    %c8_i32_70 = arith.constant 8 : i32
    %280 = arith.muli %c3_i32, %c8_i32_70 : i32
    %281 = tpu.assume_multiple %280, 8 : i32
    %c8_i32_71 = arith.constant 8 : i32
    %282 = arith.muli %279, %c8_i32_71 : i32
    %283 = tpu.assume_multiple %282, 8 : i32
    %284 = arith.index_cast %281 : i32 to index
    %c0_72 = arith.constant 0 : index
    %285 = vector.load %arg10[%284, %c0_72] : memref<64x768xf32, #tpu.memory_space<vmem>>, vector<8x384xf32>
    %286 = arith.index_cast %283 : i32 to index
    %c384_73 = arith.constant 384 : index
    %287 = vector.load %arg10[%286, %c384_73] : memref<64x768xf32, #tpu.memory_space<vmem>>, vector<8x384xf32>
    %cst_74 = arith.constant dense<0.000000e+00> : vector<8x384xf32>
    %288 = tpu.matmul %274, %7, %cst_74 {dimension_numbers = #tpu.dot_dimension_numbers<[1], [0], [0], [1], [0, 0, 1, 1], [], []>} : vector<8x128xf32>, vector<128x384xf32>, vector<8x384xf32> -> vector<8x384xf32>
    %289 = vector.extract_strided_slice %285 {offsets = [0, 0], sizes = [8, 128], strides = [1, 1]} : vector<8x384xf32> to vector<8x128xf32>
    %290 = vector.extract_strided_slice %288 {offsets = [0, 0], sizes = [8, 128], strides = [1, 1]} : vector<8x384xf32> to vector<8x128xf32>
    %291 = arith.addf %289, %290 : vector<8x128xf32>
    %292 = arith.negf %291 : vector<8x128xf32>
    %293 = math.exp %292 : vector<8x128xf32>
    %cst_75 = arith.constant 1.000000e+00 : f32
    %294 = vector.broadcast %cst_75 : f32 to vector<8x128xf32>
    %295 = arith.addf %294, %293 : vector<8x128xf32>
    %296 = arith.divf %294, %295 : vector<8x128xf32>
    %297 = vector.extract_strided_slice %285 {offsets = [0, 128], sizes = [8, 128], strides = [1, 1]} : vector<8x384xf32> to vector<8x128xf32>
    %298 = vector.extract_strided_slice %288 {offsets = [0, 128], sizes = [8, 128], strides = [1, 1]} : vector<8x384xf32> to vector<8x128xf32>
    %299 = arith.addf %297, %298 : vector<8x128xf32>
    %300 = arith.negf %299 : vector<8x128xf32>
    %301 = math.exp %300 : vector<8x128xf32>
    %cst_76 = arith.constant 1.000000e+00 : f32
    %302 = vector.broadcast %cst_76 : f32 to vector<8x128xf32>
    %303 = arith.addf %302, %301 : vector<8x128xf32>
    %304 = arith.divf %302, %303 : vector<8x128xf32>
    %305 = vector.extract_strided_slice %285 {offsets = [0, 256], sizes = [8, 128], strides = [1, 1]} : vector<8x384xf32> to vector<8x128xf32>
    %306 = vector.extract_strided_slice %288 {offsets = [0, 256], sizes = [8, 128], strides = [1, 1]} : vector<8x384xf32> to vector<8x128xf32>
    %307 = vector.broadcast %9 : vector<1x128xf32> to vector<8x128xf32>
    %308 = arith.addf %306, %307 : vector<8x128xf32>
    %309 = arith.mulf %296, %308 : vector<8x128xf32>
    %310 = arith.addf %305, %309 : vector<8x128xf32>
    %311 = math.tanh %310 : vector<8x128xf32>
    %312 = arith.subf %274, %311 : vector<8x128xf32>
    %313 = arith.mulf %304, %312 : vector<8x128xf32>
    %314 = arith.addf %311, %313 : vector<8x128xf32>
    %cst_77 = arith.constant dense<0.000000e+00> : vector<8x384xf32>
    %315 = tpu.matmul %278, %8, %cst_77 {dimension_numbers = #tpu.dot_dimension_numbers<[1], [0], [0], [1], [0, 0, 1, 1], [], []>} : vector<8x128xf32>, vector<128x384xf32>, vector<8x384xf32> -> vector<8x384xf32>
    %316 = vector.extract_strided_slice %287 {offsets = [0, 0], sizes = [8, 128], strides = [1, 1]} : vector<8x384xf32> to vector<8x128xf32>
    %317 = vector.extract_strided_slice %315 {offsets = [0, 0], sizes = [8, 128], strides = [1, 1]} : vector<8x384xf32> to vector<8x128xf32>
    %318 = arith.addf %316, %317 : vector<8x128xf32>
    %319 = arith.negf %318 : vector<8x128xf32>
    %320 = math.exp %319 : vector<8x128xf32>
    %cst_78 = arith.constant 1.000000e+00 : f32
    %321 = vector.broadcast %cst_78 : f32 to vector<8x128xf32>
    %322 = arith.addf %321, %320 : vector<8x128xf32>
    %323 = arith.divf %321, %322 : vector<8x128xf32>
    %324 = vector.extract_strided_slice %287 {offsets = [0, 128], sizes = [8, 128], strides = [1, 1]} : vector<8x384xf32> to vector<8x128xf32>
    %325 = vector.extract_strided_slice %315 {offsets = [0, 128], sizes = [8, 128], strides = [1, 1]} : vector<8x384xf32> to vector<8x128xf32>
    %326 = arith.addf %324, %325 : vector<8x128xf32>
    %327 = arith.negf %326 : vector<8x128xf32>
    %328 = math.exp %327 : vector<8x128xf32>
    %cst_79 = arith.constant 1.000000e+00 : f32
    %329 = vector.broadcast %cst_79 : f32 to vector<8x128xf32>
    %330 = arith.addf %329, %328 : vector<8x128xf32>
    %331 = arith.divf %329, %330 : vector<8x128xf32>
    %332 = vector.extract_strided_slice %287 {offsets = [0, 256], sizes = [8, 128], strides = [1, 1]} : vector<8x384xf32> to vector<8x128xf32>
    %333 = vector.extract_strided_slice %315 {offsets = [0, 256], sizes = [8, 128], strides = [1, 1]} : vector<8x384xf32> to vector<8x128xf32>
    %334 = vector.broadcast %10 : vector<1x128xf32> to vector<8x128xf32>
    %335 = arith.addf %333, %334 : vector<8x128xf32>
    %336 = arith.mulf %323, %335 : vector<8x128xf32>
    %337 = arith.addf %332, %336 : vector<8x128xf32>
    %338 = math.tanh %337 : vector<8x128xf32>
    %339 = arith.subf %278, %338 : vector<8x128xf32>
    %340 = arith.mulf %331, %339 : vector<8x128xf32>
    %341 = arith.addf %338, %340 : vector<8x128xf32>
    %342 = arith.index_cast %c3_i32 : i32 to index
    %c0_80 = arith.constant 0 : index
    %c0_81 = arith.constant 0 : index
    %343 = vector.load %arg1[%342, %c0_80, %c0_81] : memref<8x8x1xf32, #tpu.memory_space<vmem>>, vector<1x8x1xf32>
    %344 = vector.shape_cast %343 : vector<1x8x1xf32> to vector<8x1xf32>
    %345 = arith.index_cast %279 : i32 to index
    %c0_82 = arith.constant 0 : index
    %c0_83 = arith.constant 0 : index
    %346 = vector.load %arg1[%345, %c0_82, %c0_83] : memref<8x8x1xf32, #tpu.memory_space<vmem>>, vector<1x8x1xf32>
    %347 = vector.shape_cast %346 : vector<1x8x1xf32> to vector<8x1xf32>
    %348 = vector.broadcast %344 : vector<8x1xf32> to vector<8x128xf32>
    %349 = arith.mulf %314, %348 : vector<8x128xf32>
    %350 = arith.index_cast %c3_i32 : i32 to index
    %c0_84 = arith.constant 0 : index
    %c0_85 = arith.constant 0 : index
    %351 = vector.load %arg8[%350, %c0_84, %c0_85] : memref<8x8x256xf32, #tpu.memory_space<vmem>>, vector<1x8x128xf32>
    %352 = vector.shape_cast %351 : vector<1x8x128xf32> to vector<8x128xf32>
    %353 = vector.shape_cast %349 : vector<8x128xf32> to vector<1x8x128xf32>
    tpu.vector_store %arg8[%350, %c0_84, %c0_85], %353 {strides = array<i32>} : memref<8x8x256xf32, #tpu.memory_space<vmem>>, vector<1x8x128xf32>,
    %354 = vector.broadcast %347 : vector<8x1xf32> to vector<8x128xf32>
    %355 = arith.mulf %341, %354 : vector<8x128xf32>
    %356 = arith.index_cast %279 : i32 to index
    %c0_86 = arith.constant 0 : index
    %c128_87 = arith.constant 128 : index
    %357 = vector.load %arg8[%356, %c0_86, %c128_87] : memref<8x8x256xf32, #tpu.memory_space<vmem>>, vector<1x8x128xf32>
    %358 = vector.shape_cast %357 : vector<1x8x128xf32> to vector<8x128xf32>
    %359 = vector.shape_cast %355 : vector<8x128xf32> to vector<1x8x128xf32>
    tpu.vector_store %arg8[%356, %c0_86, %c128_87], %359 {strides = array<i32>} : memref<8x8x256xf32, #tpu.memory_space<vmem>>, vector<1x8x128xf32>,
    %360 = arith.subf %314, %274 : vector<8x128xf32>
    %361 = vector.broadcast %344 : vector<8x1xf32> to vector<8x128xf32>
    %362 = arith.mulf %361, %360 : vector<8x128xf32>
    %363 = arith.addf %274, %362 : vector<8x128xf32>
    %364 = arith.subf %341, %278 : vector<8x128xf32>
    %365 = vector.broadcast %347 : vector<8x1xf32> to vector<8x128xf32>
    %366 = arith.mulf %365, %364 : vector<8x128xf32>
    %367 = arith.addf %278, %366 : vector<8x128xf32>
    %c4_i32 = arith.constant 4 : i32
    %c7_i32_88 = arith.constant 7 : i32
    %368 = arith.subi %c7_i32_88, %c4_i32 : i32
    %c8_i32_89 = arith.constant 8 : i32
    %369 = arith.muli %c4_i32, %c8_i32_89 : i32
    %370 = tpu.assume_multiple %369, 8 : i32
    %c8_i32_90 = arith.constant 8 : i32
    %371 = arith.muli %368, %c8_i32_90 : i32
    %372 = tpu.assume_multiple %371, 8 : i32
    %373 = arith.index_cast %370 : i32 to index
    %c0_91 = arith.constant 0 : index
    %374 = vector.load %arg10[%373, %c0_91] : memref<64x768xf32, #tpu.memory_space<vmem>>, vector<8x384xf32>
    %375 = arith.index_cast %372 : i32 to index
    %c384_92 = arith.constant 384 : index
    %376 = vector.load %arg10[%375, %c384_92] : memref<64x768xf32, #tpu.memory_space<vmem>>, vector<8x384xf32>
    %cst_93 = arith.constant dense<0.000000e+00> : vector<8x384xf32>
    %377 = tpu.matmul %363, %7, %cst_93 {dimension_numbers = #tpu.dot_dimension_numbers<[1], [0], [0], [1], [0, 0, 1, 1], [], []>} : vector<8x128xf32>, vector<128x384xf32>, vector<8x384xf32> -> vector<8x384xf32>
    %378 = vector.extract_strided_slice %374 {offsets = [0, 0], sizes = [8, 128], strides = [1, 1]} : vector<8x384xf32> to vector<8x128xf32>
    %379 = vector.extract_strided_slice %377 {offsets = [0, 0], sizes = [8, 128], strides = [1, 1]} : vector<8x384xf32> to vector<8x128xf32>
    %380 = arith.addf %378, %379 : vector<8x128xf32>
    %381 = arith.negf %380 : vector<8x128xf32>
    %382 = math.exp %381 : vector<8x128xf32>
    %cst_94 = arith.constant 1.000000e+00 : f32
    %383 = vector.broadcast %cst_94 : f32 to vector<8x128xf32>
    %384 = arith.addf %383, %382 : vector<8x128xf32>
    %385 = arith.divf %383, %384 : vector<8x128xf32>
    %386 = vector.extract_strided_slice %374 {offsets = [0, 128], sizes = [8, 128], strides = [1, 1]} : vector<8x384xf32> to vector<8x128xf32>
    %387 = vector.extract_strided_slice %377 {offsets = [0, 128], sizes = [8, 128], strides = [1, 1]} : vector<8x384xf32> to vector<8x128xf32>
    %388 = arith.addf %386, %387 : vector<8x128xf32>
    %389 = arith.negf %388 : vector<8x128xf32>
    %390 = math.exp %389 : vector<8x128xf32>
    %cst_95 = arith.constant 1.000000e+00 : f32
    %391 = vector.broadcast %cst_95 : f32 to vector<8x128xf32>
    %392 = arith.addf %391, %390 : vector<8x128xf32>
    %393 = arith.divf %391, %392 : vector<8x128xf32>
    %394 = vector.extract_strided_slice %374 {offsets = [0, 256], sizes = [8, 128], strides = [1, 1]} : vector<8x384xf32> to vector<8x128xf32>
    %395 = vector.extract_strided_slice %377 {offsets = [0, 256], sizes = [8, 128], strides = [1, 1]} : vector<8x384xf32> to vector<8x128xf32>
    %396 = vector.broadcast %9 : vector<1x128xf32> to vector<8x128xf32>
    %397 = arith.addf %395, %396 : vector<8x128xf32>
    %398 = arith.mulf %385, %397 : vector<8x128xf32>
    %399 = arith.addf %394, %398 : vector<8x128xf32>
    %400 = math.tanh %399 : vector<8x128xf32>
    %401 = arith.subf %363, %400 : vector<8x128xf32>
    %402 = arith.mulf %393, %401 : vector<8x128xf32>
    %403 = arith.addf %400, %402 : vector<8x128xf32>
    %cst_96 = arith.constant dense<0.000000e+00> : vector<8x384xf32>
    %404 = tpu.matmul %367, %8, %cst_96 {dimension_numbers = #tpu.dot_dimension_numbers<[1], [0], [0], [1], [0, 0, 1, 1], [], []>} : vector<8x128xf32>, vector<128x384xf32>, vector<8x384xf32> -> vector<8x384xf32>
    %405 = vector.extract_strided_slice %376 {offsets = [0, 0], sizes = [8, 128], strides = [1, 1]} : vector<8x384xf32> to vector<8x128xf32>
    %406 = vector.extract_strided_slice %404 {offsets = [0, 0], sizes = [8, 128], strides = [1, 1]} : vector<8x384xf32> to vector<8x128xf32>
    %407 = arith.addf %405, %406 : vector<8x128xf32>
    %408 = arith.negf %407 : vector<8x128xf32>
    %409 = math.exp %408 : vector<8x128xf32>
    %cst_97 = arith.constant 1.000000e+00 : f32
    %410 = vector.broadcast %cst_97 : f32 to vector<8x128xf32>
    %411 = arith.addf %410, %409 : vector<8x128xf32>
    %412 = arith.divf %410, %411 : vector<8x128xf32>
    %413 = vector.extract_strided_slice %376 {offsets = [0, 128], sizes = [8, 128], strides = [1, 1]} : vector<8x384xf32> to vector<8x128xf32>
    %414 = vector.extract_strided_slice %404 {offsets = [0, 128], sizes = [8, 128], strides = [1, 1]} : vector<8x384xf32> to vector<8x128xf32>
    %415 = arith.addf %413, %414 : vector<8x128xf32>
    %416 = arith.negf %415 : vector<8x128xf32>
    %417 = math.exp %416 : vector<8x128xf32>
    %cst_98 = arith.constant 1.000000e+00 : f32
    %418 = vector.broadcast %cst_98 : f32 to vector<8x128xf32>
    %419 = arith.addf %418, %417 : vector<8x128xf32>
    %420 = arith.divf %418, %419 : vector<8x128xf32>
    %421 = vector.extract_strided_slice %376 {offsets = [0, 256], sizes = [8, 128], strides = [1, 1]} : vector<8x384xf32> to vector<8x128xf32>
    %422 = vector.extract_strided_slice %404 {offsets = [0, 256], sizes = [8, 128], strides = [1, 1]} : vector<8x384xf32> to vector<8x128xf32>
    %423 = vector.broadcast %10 : vector<1x128xf32> to vector<8x128xf32>
    %424 = arith.addf %422, %423 : vector<8x128xf32>
    %425 = arith.mulf %412, %424 : vector<8x128xf32>
    %426 = arith.addf %421, %425 : vector<8x128xf32>
    %427 = math.tanh %426 : vector<8x128xf32>
    %428 = arith.subf %367, %427 : vector<8x128xf32>
    %429 = arith.mulf %420, %428 : vector<8x128xf32>
    %430 = arith.addf %427, %429 : vector<8x128xf32>
    %431 = arith.index_cast %c4_i32 : i32 to index
    %c0_99 = arith.constant 0 : index
    %c0_100 = arith.constant 0 : index
    %432 = vector.load %arg1[%431, %c0_99, %c0_100] : memref<8x8x1xf32, #tpu.memory_space<vmem>>, vector<1x8x1xf32>
    %433 = vector.shape_cast %432 : vector<1x8x1xf32> to vector<8x1xf32>
    %434 = arith.index_cast %368 : i32 to index
    %c0_101 = arith.constant 0 : index
    %c0_102 = arith.constant 0 : index
    %435 = vector.load %arg1[%434, %c0_101, %c0_102] : memref<8x8x1xf32, #tpu.memory_space<vmem>>, vector<1x8x1xf32>
    %436 = vector.shape_cast %435 : vector<1x8x1xf32> to vector<8x1xf32>
    %437 = vector.broadcast %433 : vector<8x1xf32> to vector<8x128xf32>
    %438 = arith.mulf %403, %437 : vector<8x128xf32>
    %439 = arith.index_cast %c4_i32 : i32 to index
    %c0_103 = arith.constant 0 : index
    %c0_104 = arith.constant 0 : index
    %440 = vector.load %arg8[%439, %c0_103, %c0_104] : memref<8x8x256xf32, #tpu.memory_space<vmem>>, vector<1x8x128xf32>
    %441 = vector.shape_cast %440 : vector<1x8x128xf32> to vector<8x128xf32>
    %442 = vector.shape_cast %438 : vector<8x128xf32> to vector<1x8x128xf32>
    tpu.vector_store %arg8[%439, %c0_103, %c0_104], %442 {strides = array<i32>} : memref<8x8x256xf32, #tpu.memory_space<vmem>>, vector<1x8x128xf32>,
    %443 = vector.broadcast %436 : vector<8x1xf32> to vector<8x128xf32>
    %444 = arith.mulf %430, %443 : vector<8x128xf32>
    %445 = arith.index_cast %368 : i32 to index
    %c0_105 = arith.constant 0 : index
    %c128_106 = arith.constant 128 : index
    %446 = vector.load %arg8[%445, %c0_105, %c128_106] : memref<8x8x256xf32, #tpu.memory_space<vmem>>, vector<1x8x128xf32>
    %447 = vector.shape_cast %446 : vector<1x8x128xf32> to vector<8x128xf32>
    %448 = vector.shape_cast %444 : vector<8x128xf32> to vector<1x8x128xf32>
    tpu.vector_store %arg8[%445, %c0_105, %c128_106], %448 {strides = array<i32>} : memref<8x8x256xf32, #tpu.memory_space<vmem>>, vector<1x8x128xf32>,
    %449 = arith.subf %403, %363 : vector<8x128xf32>
    %450 = vector.broadcast %433 : vector<8x1xf32> to vector<8x128xf32>
    %451 = arith.mulf %450, %449 : vector<8x128xf32>
    %452 = arith.addf %363, %451 : vector<8x128xf32>
    %453 = arith.subf %430, %367 : vector<8x128xf32>
    %454 = vector.broadcast %436 : vector<8x1xf32> to vector<8x128xf32>
    %455 = arith.mulf %454, %453 : vector<8x128xf32>
    %456 = arith.addf %367, %455 : vector<8x128xf32>
    %c5_i32 = arith.constant 5 : i32
    %c7_i32_107 = arith.constant 7 : i32
    %457 = arith.subi %c7_i32_107, %c5_i32 : i32
    %c8_i32_108 = arith.constant 8 : i32
    %458 = arith.muli %c5_i32, %c8_i32_108 : i32
    %459 = tpu.assume_multiple %458, 8 : i32
    %c8_i32_109 = arith.constant 8 : i32
    %460 = arith.muli %457, %c8_i32_109 : i32
    %461 = tpu.assume_multiple %460, 8 : i32
    %462 = arith.index_cast %459 : i32 to index
    %c0_110 = arith.constant 0 : index
    %463 = vector.load %arg10[%462, %c0_110] : memref<64x768xf32, #tpu.memory_space<vmem>>, vector<8x384xf32>
    %464 = arith.index_cast %461 : i32 to index
    %c384_111 = arith.constant 384 : index
    %465 = vector.load %arg10[%464, %c384_111] : memref<64x768xf32, #tpu.memory_space<vmem>>, vector<8x384xf32>
    %cst_112 = arith.constant dense<0.000000e+00> : vector<8x384xf32>
    %466 = tpu.matmul %452, %7, %cst_112 {dimension_numbers = #tpu.dot_dimension_numbers<[1], [0], [0], [1], [0, 0, 1, 1], [], []>} : vector<8x128xf32>, vector<128x384xf32>, vector<8x384xf32> -> vector<8x384xf32>
    %467 = vector.extract_strided_slice %463 {offsets = [0, 0], sizes = [8, 128], strides = [1, 1]} : vector<8x384xf32> to vector<8x128xf32>
    %468 = vector.extract_strided_slice %466 {offsets = [0, 0], sizes = [8, 128], strides = [1, 1]} : vector<8x384xf32> to vector<8x128xf32>
    %469 = arith.addf %467, %468 : vector<8x128xf32>
    %470 = arith.negf %469 : vector<8x128xf32>
    %471 = math.exp %470 : vector<8x128xf32>
    %cst_113 = arith.constant 1.000000e+00 : f32
    %472 = vector.broadcast %cst_113 : f32 to vector<8x128xf32>
    %473 = arith.addf %472, %471 : vector<8x128xf32>
    %474 = arith.divf %472, %473 : vector<8x128xf32>
    %475 = vector.extract_strided_slice %463 {offsets = [0, 128], sizes = [8, 128], strides = [1, 1]} : vector<8x384xf32> to vector<8x128xf32>
    %476 = vector.extract_strided_slice %466 {offsets = [0, 128], sizes = [8, 128], strides = [1, 1]} : vector<8x384xf32> to vector<8x128xf32>
    %477 = arith.addf %475, %476 : vector<8x128xf32>
    %478 = arith.negf %477 : vector<8x128xf32>
    %479 = math.exp %478 : vector<8x128xf32>
    %cst_114 = arith.constant 1.000000e+00 : f32
    %480 = vector.broadcast %cst_114 : f32 to vector<8x128xf32>
    %481 = arith.addf %480, %479 : vector<8x128xf32>
    %482 = arith.divf %480, %481 : vector<8x128xf32>
    %483 = vector.extract_strided_slice %463 {offsets = [0, 256], sizes = [8, 128], strides = [1, 1]} : vector<8x384xf32> to vector<8x128xf32>
    %484 = vector.extract_strided_slice %466 {offsets = [0, 256], sizes = [8, 128], strides = [1, 1]} : vector<8x384xf32> to vector<8x128xf32>
    %485 = vector.broadcast %9 : vector<1x128xf32> to vector<8x128xf32>
    %486 = arith.addf %484, %485 : vector<8x128xf32>
    %487 = arith.mulf %474, %486 : vector<8x128xf32>
    %488 = arith.addf %483, %487 : vector<8x128xf32>
    %489 = math.tanh %488 : vector<8x128xf32>
    %490 = arith.subf %452, %489 : vector<8x128xf32>
    %491 = arith.mulf %482, %490 : vector<8x128xf32>
    %492 = arith.addf %489, %491 : vector<8x128xf32>
    %cst_115 = arith.constant dense<0.000000e+00> : vector<8x384xf32>
    %493 = tpu.matmul %456, %8, %cst_115 {dimension_numbers = #tpu.dot_dimension_numbers<[1], [0], [0], [1], [0, 0, 1, 1], [], []>} : vector<8x128xf32>, vector<128x384xf32>, vector<8x384xf32> -> vector<8x384xf32>
    %494 = vector.extract_strided_slice %465 {offsets = [0, 0], sizes = [8, 128], strides = [1, 1]} : vector<8x384xf32> to vector<8x128xf32>
    %495 = vector.extract_strided_slice %493 {offsets = [0, 0], sizes = [8, 128], strides = [1, 1]} : vector<8x384xf32> to vector<8x128xf32>
    %496 = arith.addf %494, %495 : vector<8x128xf32>
    %497 = arith.negf %496 : vector<8x128xf32>
    %498 = math.exp %497 : vector<8x128xf32>
    %cst_116 = arith.constant 1.000000e+00 : f32
    %499 = vector.broadcast %cst_116 : f32 to vector<8x128xf32>
    %500 = arith.addf %499, %498 : vector<8x128xf32>
    %501 = arith.divf %499, %500 : vector<8x128xf32>
    %502 = vector.extract_strided_slice %465 {offsets = [0, 128], sizes = [8, 128], strides = [1, 1]} : vector<8x384xf32> to vector<8x128xf32>
    %503 = vector.extract_strided_slice %493 {offsets = [0, 128], sizes = [8, 128], strides = [1, 1]} : vector<8x384xf32> to vector<8x128xf32>
    %504 = arith.addf %502, %503 : vector<8x128xf32>
    %505 = arith.negf %504 : vector<8x128xf32>
    %506 = math.exp %505 : vector<8x128xf32>
    %cst_117 = arith.constant 1.000000e+00 : f32
    %507 = vector.broadcast %cst_117 : f32 to vector<8x128xf32>
    %508 = arith.addf %507, %506 : vector<8x128xf32>
    %509 = arith.divf %507, %508 : vector<8x128xf32>
    %510 = vector.extract_strided_slice %465 {offsets = [0, 256], sizes = [8, 128], strides = [1, 1]} : vector<8x384xf32> to vector<8x128xf32>
    %511 = vector.extract_strided_slice %493 {offsets = [0, 256], sizes = [8, 128], strides = [1, 1]} : vector<8x384xf32> to vector<8x128xf32>
    %512 = vector.broadcast %10 : vector<1x128xf32> to vector<8x128xf32>
    %513 = arith.addf %511, %512 : vector<8x128xf32>
    %514 = arith.mulf %501, %513 : vector<8x128xf32>
    %515 = arith.addf %510, %514 : vector<8x128xf32>
    %516 = math.tanh %515 : vector<8x128xf32>
    %517 = arith.subf %456, %516 : vector<8x128xf32>
    %518 = arith.mulf %509, %517 : vector<8x128xf32>
    %519 = arith.addf %516, %518 : vector<8x128xf32>
    %520 = arith.index_cast %c5_i32 : i32 to index
    %c0_118 = arith.constant 0 : index
    %c0_119 = arith.constant 0 : index
    %521 = vector.load %arg1[%520, %c0_118, %c0_119] : memref<8x8x1xf32, #tpu.memory_space<vmem>>, vector<1x8x1xf32>
    %522 = vector.shape_cast %521 : vector<1x8x1xf32> to vector<8x1xf32>
    %523 = arith.index_cast %457 : i32 to index
    %c0_120 = arith.constant 0 : index
    %c0_121 = arith.constant 0 : index
    %524 = vector.load %arg1[%523, %c0_120, %c0_121] : memref<8x8x1xf32, #tpu.memory_space<vmem>>, vector<1x8x1xf32>
    %525 = vector.shape_cast %524 : vector<1x8x1xf32> to vector<8x1xf32>
    %526 = vector.broadcast %522 : vector<8x1xf32> to vector<8x128xf32>
    %527 = arith.mulf %492, %526 : vector<8x128xf32>
    %528 = arith.index_cast %c5_i32 : i32 to index
    %c0_122 = arith.constant 0 : index
    %c0_123 = arith.constant 0 : index
    %529 = vector.load %arg8[%528, %c0_122, %c0_123] : memref<8x8x256xf32, #tpu.memory_space<vmem>>, vector<1x8x128xf32>
    %530 = vector.shape_cast %529 : vector<1x8x128xf32> to vector<8x128xf32>
    %531 = vector.shape_cast %527 : vector<8x128xf32> to vector<1x8x128xf32>
    tpu.vector_store %arg8[%528, %c0_122, %c0_123], %531 {strides = array<i32>} : memref<8x8x256xf32, #tpu.memory_space<vmem>>, vector<1x8x128xf32>,
    %532 = vector.broadcast %525 : vector<8x1xf32> to vector<8x128xf32>
    %533 = arith.mulf %519, %532 : vector<8x128xf32>
    %534 = arith.index_cast %457 : i32 to index
    %c0_124 = arith.constant 0 : index
    %c128_125 = arith.constant 128 : index
    %535 = vector.load %arg8[%534, %c0_124, %c128_125] : memref<8x8x256xf32, #tpu.memory_space<vmem>>, vector<1x8x128xf32>
    %536 = vector.shape_cast %535 : vector<1x8x128xf32> to vector<8x128xf32>
    %537 = vector.shape_cast %533 : vector<8x128xf32> to vector<1x8x128xf32>
    tpu.vector_store %arg8[%534, %c0_124, %c128_125], %537 {strides = array<i32>} : memref<8x8x256xf32, #tpu.memory_space<vmem>>, vector<1x8x128xf32>,
    %538 = arith.subf %492, %452 : vector<8x128xf32>
    %539 = vector.broadcast %522 : vector<8x1xf32> to vector<8x128xf32>
    %540 = arith.mulf %539, %538 : vector<8x128xf32>
    %541 = arith.addf %452, %540 : vector<8x128xf32>
    %542 = arith.subf %519, %456 : vector<8x128xf32>
    %543 = vector.broadcast %525 : vector<8x1xf32> to vector<8x128xf32>
    %544 = arith.mulf %543, %542 : vector<8x128xf32>
    %545 = arith.addf %456, %544 : vector<8x128xf32>
    %c6_i32 = arith.constant 6 : i32
    %c7_i32_126 = arith.constant 7 : i32
    %546 = arith.subi %c7_i32_126, %c6_i32 : i32
    %c8_i32_127 = arith.constant 8 : i32
    %547 = arith.muli %c6_i32, %c8_i32_127 : i32
    %548 = tpu.assume_multiple %547, 8 : i32
    %c8_i32_128 = arith.constant 8 : i32
    %549 = arith.muli %546, %c8_i32_128 : i32
    %550 = tpu.assume_multiple %549, 8 : i32
    %551 = arith.index_cast %548 : i32 to index
    %c0_129 = arith.constant 0 : index
    %552 = vector.load %arg10[%551, %c0_129] : memref<64x768xf32, #tpu.memory_space<vmem>>, vector<8x384xf32>
    %553 = arith.index_cast %550 : i32 to index
    %c384_130 = arith.constant 384 : index
    %554 = vector.load %arg10[%553, %c384_130] : memref<64x768xf32, #tpu.memory_space<vmem>>, vector<8x384xf32>
    %cst_131 = arith.constant dense<0.000000e+00> : vector<8x384xf32>
    %555 = tpu.matmul %541, %7, %cst_131 {dimension_numbers = #tpu.dot_dimension_numbers<[1], [0], [0], [1], [0, 0, 1, 1], [], []>} : vector<8x128xf32>, vector<128x384xf32>, vector<8x384xf32> -> vector<8x384xf32>
    %556 = vector.extract_strided_slice %552 {offsets = [0, 0], sizes = [8, 128], strides = [1, 1]} : vector<8x384xf32> to vector<8x128xf32>
    %557 = vector.extract_strided_slice %555 {offsets = [0, 0], sizes = [8, 128], strides = [1, 1]} : vector<8x384xf32> to vector<8x128xf32>
    %558 = arith.addf %556, %557 : vector<8x128xf32>
    %559 = arith.negf %558 : vector<8x128xf32>
    %560 = math.exp %559 : vector<8x128xf32>
    %cst_132 = arith.constant 1.000000e+00 : f32
    %561 = vector.broadcast %cst_132 : f32 to vector<8x128xf32>
    %562 = arith.addf %561, %560 : vector<8x128xf32>
    %563 = arith.divf %561, %562 : vector<8x128xf32>
    %564 = vector.extract_strided_slice %552 {offsets = [0, 128], sizes = [8, 128], strides = [1, 1]} : vector<8x384xf32> to vector<8x128xf32>
    %565 = vector.extract_strided_slice %555 {offsets = [0, 128], sizes = [8, 128], strides = [1, 1]} : vector<8x384xf32> to vector<8x128xf32>
    %566 = arith.addf %564, %565 : vector<8x128xf32>
    %567 = arith.negf %566 : vector<8x128xf32>
    %568 = math.exp %567 : vector<8x128xf32>
    %cst_133 = arith.constant 1.000000e+00 : f32
    %569 = vector.broadcast %cst_133 : f32 to vector<8x128xf32>
    %570 = arith.addf %569, %568 : vector<8x128xf32>
    %571 = arith.divf %569, %570 : vector<8x128xf32>
    %572 = vector.extract_strided_slice %552 {offsets = [0, 256], sizes = [8, 128], strides = [1, 1]} : vector<8x384xf32> to vector<8x128xf32>
    %573 = vector.extract_strided_slice %555 {offsets = [0, 256], sizes = [8, 128], strides = [1, 1]} : vector<8x384xf32> to vector<8x128xf32>
    %574 = vector.broadcast %9 : vector<1x128xf32> to vector<8x128xf32>
    %575 = arith.addf %573, %574 : vector<8x128xf32>
    %576 = arith.mulf %563, %575 : vector<8x128xf32>
    %577 = arith.addf %572, %576 : vector<8x128xf32>
    %578 = math.tanh %577 : vector<8x128xf32>
    %579 = arith.subf %541, %578 : vector<8x128xf32>
    %580 = arith.mulf %571, %579 : vector<8x128xf32>
    %581 = arith.addf %578, %580 : vector<8x128xf32>
    %cst_134 = arith.constant dense<0.000000e+00> : vector<8x384xf32>
    %582 = tpu.matmul %545, %8, %cst_134 {dimension_numbers = #tpu.dot_dimension_numbers<[1], [0], [0], [1], [0, 0, 1, 1], [], []>} : vector<8x128xf32>, vector<128x384xf32>, vector<8x384xf32> -> vector<8x384xf32>
    %583 = vector.extract_strided_slice %554 {offsets = [0, 0], sizes = [8, 128], strides = [1, 1]} : vector<8x384xf32> to vector<8x128xf32>
    %584 = vector.extract_strided_slice %582 {offsets = [0, 0], sizes = [8, 128], strides = [1, 1]} : vector<8x384xf32> to vector<8x128xf32>
    %585 = arith.addf %583, %584 : vector<8x128xf32>
    %586 = arith.negf %585 : vector<8x128xf32>
    %587 = math.exp %586 : vector<8x128xf32>
    %cst_135 = arith.constant 1.000000e+00 : f32
    %588 = vector.broadcast %cst_135 : f32 to vector<8x128xf32>
    %589 = arith.addf %588, %587 : vector<8x128xf32>
    %590 = arith.divf %588, %589 : vector<8x128xf32>
    %591 = vector.extract_strided_slice %554 {offsets = [0, 128], sizes = [8, 128], strides = [1, 1]} : vector<8x384xf32> to vector<8x128xf32>
    %592 = vector.extract_strided_slice %582 {offsets = [0, 128], sizes = [8, 128], strides = [1, 1]} : vector<8x384xf32> to vector<8x128xf32>
    %593 = arith.addf %591, %592 : vector<8x128xf32>
    %594 = arith.negf %593 : vector<8x128xf32>
    %595 = math.exp %594 : vector<8x128xf32>
    %cst_136 = arith.constant 1.000000e+00 : f32
    %596 = vector.broadcast %cst_136 : f32 to vector<8x128xf32>
    %597 = arith.addf %596, %595 : vector<8x128xf32>
    %598 = arith.divf %596, %597 : vector<8x128xf32>
    %599 = vector.extract_strided_slice %554 {offsets = [0, 256], sizes = [8, 128], strides = [1, 1]} : vector<8x384xf32> to vector<8x128xf32>
    %600 = vector.extract_strided_slice %582 {offsets = [0, 256], sizes = [8, 128], strides = [1, 1]} : vector<8x384xf32> to vector<8x128xf32>
    %601 = vector.broadcast %10 : vector<1x128xf32> to vector<8x128xf32>
    %602 = arith.addf %600, %601 : vector<8x128xf32>
    %603 = arith.mulf %590, %602 : vector<8x128xf32>
    %604 = arith.addf %599, %603 : vector<8x128xf32>
    %605 = math.tanh %604 : vector<8x128xf32>
    %606 = arith.subf %545, %605 : vector<8x128xf32>
    %607 = arith.mulf %598, %606 : vector<8x128xf32>
    %608 = arith.addf %605, %607 : vector<8x128xf32>
    %609 = arith.index_cast %c6_i32 : i32 to index
    %c0_137 = arith.constant 0 : index
    %c0_138 = arith.constant 0 : index
    %610 = vector.load %arg1[%609, %c0_137, %c0_138] : memref<8x8x1xf32, #tpu.memory_space<vmem>>, vector<1x8x1xf32>
    %611 = vector.shape_cast %610 : vector<1x8x1xf32> to vector<8x1xf32>
    %612 = arith.index_cast %546 : i32 to index
    %c0_139 = arith.constant 0 : index
    %c0_140 = arith.constant 0 : index
    %613 = vector.load %arg1[%612, %c0_139, %c0_140] : memref<8x8x1xf32, #tpu.memory_space<vmem>>, vector<1x8x1xf32>
    %614 = vector.shape_cast %613 : vector<1x8x1xf32> to vector<8x1xf32>
    %615 = vector.broadcast %611 : vector<8x1xf32> to vector<8x128xf32>
    %616 = arith.mulf %581, %615 : vector<8x128xf32>
    %617 = arith.index_cast %c6_i32 : i32 to index
    %c0_141 = arith.constant 0 : index
    %c0_142 = arith.constant 0 : index
    %618 = vector.load %arg8[%617, %c0_141, %c0_142] : memref<8x8x256xf32, #tpu.memory_space<vmem>>, vector<1x8x128xf32>
    %619 = vector.shape_cast %618 : vector<1x8x128xf32> to vector<8x128xf32>
    %620 = vector.shape_cast %616 : vector<8x128xf32> to vector<1x8x128xf32>
    tpu.vector_store %arg8[%617, %c0_141, %c0_142], %620 {strides = array<i32>} : memref<8x8x256xf32, #tpu.memory_space<vmem>>, vector<1x8x128xf32>,
    %621 = vector.broadcast %614 : vector<8x1xf32> to vector<8x128xf32>
    %622 = arith.mulf %608, %621 : vector<8x128xf32>
    %623 = arith.index_cast %546 : i32 to index
    %c0_143 = arith.constant 0 : index
    %c128_144 = arith.constant 128 : index
    %624 = vector.load %arg8[%623, %c0_143, %c128_144] : memref<8x8x256xf32, #tpu.memory_space<vmem>>, vector<1x8x128xf32>
    %625 = vector.shape_cast %624 : vector<1x8x128xf32> to vector<8x128xf32>
    %626 = vector.shape_cast %622 : vector<8x128xf32> to vector<1x8x128xf32>
    tpu.vector_store %arg8[%623, %c0_143, %c128_144], %626 {strides = array<i32>} : memref<8x8x256xf32, #tpu.memory_space<vmem>>, vector<1x8x128xf32>,
    %627 = arith.subf %581, %541 : vector<8x128xf32>
    %628 = vector.broadcast %611 : vector<8x1xf32> to vector<8x128xf32>
    %629 = arith.mulf %628, %627 : vector<8x128xf32>
    %630 = arith.addf %541, %629 : vector<8x128xf32>
    %631 = arith.subf %608, %545 : vector<8x128xf32>
    %632 = vector.broadcast %614 : vector<8x1xf32> to vector<8x128xf32>
    %633 = arith.mulf %632, %631 : vector<8x128xf32>
    %634 = arith.addf %545, %633 : vector<8x128xf32>
    %c7_i32_145 = arith.constant 7 : i32
    %c7_i32_146 = arith.constant 7 : i32
    %635 = arith.subi %c7_i32_146, %c7_i32_145 : i32
    %c8_i32_147 = arith.constant 8 : i32
    %636 = arith.muli %c7_i32_145, %c8_i32_147 : i32
    %637 = tpu.assume_multiple %636, 8 : i32
    %c8_i32_148 = arith.constant 8 : i32
    %638 = arith.muli %635, %c8_i32_148 : i32
    %639 = tpu.assume_multiple %638, 8 : i32
    %640 = arith.index_cast %637 : i32 to index
    %c0_149 = arith.constant 0 : index
    %641 = vector.load %arg10[%640, %c0_149] : memref<64x768xf32, #tpu.memory_space<vmem>>, vector<8x384xf32>
    %642 = arith.index_cast %639 : i32 to index
    %c384_150 = arith.constant 384 : index
    %643 = vector.load %arg10[%642, %c384_150] : memref<64x768xf32, #tpu.memory_space<vmem>>, vector<8x384xf32>
    %cst_151 = arith.constant dense<0.000000e+00> : vector<8x384xf32>
    %644 = tpu.matmul %630, %7, %cst_151 {dimension_numbers = #tpu.dot_dimension_numbers<[1], [0], [0], [1], [0, 0, 1, 1], [], []>} : vector<8x128xf32>, vector<128x384xf32>, vector<8x384xf32> -> vector<8x384xf32>
    %645 = vector.extract_strided_slice %641 {offsets = [0, 0], sizes = [8, 128], strides = [1, 1]} : vector<8x384xf32> to vector<8x128xf32>
    %646 = vector.extract_strided_slice %644 {offsets = [0, 0], sizes = [8, 128], strides = [1, 1]} : vector<8x384xf32> to vector<8x128xf32>
    %647 = arith.addf %645, %646 : vector<8x128xf32>
    %648 = arith.negf %647 : vector<8x128xf32>
    %649 = math.exp %648 : vector<8x128xf32>
    %cst_152 = arith.constant 1.000000e+00 : f32
    %650 = vector.broadcast %cst_152 : f32 to vector<8x128xf32>
    %651 = arith.addf %650, %649 : vector<8x128xf32>
    %652 = arith.divf %650, %651 : vector<8x128xf32>
    %653 = vector.extract_strided_slice %641 {offsets = [0, 128], sizes = [8, 128], strides = [1, 1]} : vector<8x384xf32> to vector<8x128xf32>
    %654 = vector.extract_strided_slice %644 {offsets = [0, 128], sizes = [8, 128], strides = [1, 1]} : vector<8x384xf32> to vector<8x128xf32>
    %655 = arith.addf %653, %654 : vector<8x128xf32>
    %656 = arith.negf %655 : vector<8x128xf32>
    %657 = math.exp %656 : vector<8x128xf32>
    %cst_153 = arith.constant 1.000000e+00 : f32
    %658 = vector.broadcast %cst_153 : f32 to vector<8x128xf32>
    %659 = arith.addf %658, %657 : vector<8x128xf32>
    %660 = arith.divf %658, %659 : vector<8x128xf32>
    %661 = vector.extract_strided_slice %641 {offsets = [0, 256], sizes = [8, 128], strides = [1, 1]} : vector<8x384xf32> to vector<8x128xf32>
    %662 = vector.extract_strided_slice %644 {offsets = [0, 256], sizes = [8, 128], strides = [1, 1]} : vector<8x384xf32> to vector<8x128xf32>
    %663 = vector.broadcast %9 : vector<1x128xf32> to vector<8x128xf32>
    %664 = arith.addf %662, %663 : vector<8x128xf32>
    %665 = arith.mulf %652, %664 : vector<8x128xf32>
    %666 = arith.addf %661, %665 : vector<8x128xf32>
    %667 = math.tanh %666 : vector<8x128xf32>
    %668 = arith.subf %630, %667 : vector<8x128xf32>
    %669 = arith.mulf %660, %668 : vector<8x128xf32>
    %670 = arith.addf %667, %669 : vector<8x128xf32>
    %cst_154 = arith.constant dense<0.000000e+00> : vector<8x384xf32>
    %671 = tpu.matmul %634, %8, %cst_154 {dimension_numbers = #tpu.dot_dimension_numbers<[1], [0], [0], [1], [0, 0, 1, 1], [], []>} : vector<8x128xf32>, vector<128x384xf32>, vector<8x384xf32> -> vector<8x384xf32>
    %672 = vector.extract_strided_slice %643 {offsets = [0, 0], sizes = [8, 128], strides = [1, 1]} : vector<8x384xf32> to vector<8x128xf32>
    %673 = vector.extract_strided_slice %671 {offsets = [0, 0], sizes = [8, 128], strides = [1, 1]} : vector<8x384xf32> to vector<8x128xf32>
    %674 = arith.addf %672, %673 : vector<8x128xf32>
    %675 = arith.negf %674 : vector<8x128xf32>
    %676 = math.exp %675 : vector<8x128xf32>
    %cst_155 = arith.constant 1.000000e+00 : f32
    %677 = vector.broadcast %cst_155 : f32 to vector<8x128xf32>
    %678 = arith.addf %677, %676 : vector<8x128xf32>
    %679 = arith.divf %677, %678 : vector<8x128xf32>
    %680 = vector.extract_strided_slice %643 {offsets = [0, 128], sizes = [8, 128], strides = [1, 1]} : vector<8x384xf32> to vector<8x128xf32>
    %681 = vector.extract_strided_slice %671 {offsets = [0, 128], sizes = [8, 128], strides = [1, 1]} : vector<8x384xf32> to vector<8x128xf32>
    %682 = arith.addf %680, %681 : vector<8x128xf32>
    %683 = arith.negf %682 : vector<8x128xf32>
    %684 = math.exp %683 : vector<8x128xf32>
    %cst_156 = arith.constant 1.000000e+00 : f32
    %685 = vector.broadcast %cst_156 : f32 to vector<8x128xf32>
    %686 = arith.addf %685, %684 : vector<8x128xf32>
    %687 = arith.divf %685, %686 : vector<8x128xf32>
    %688 = vector.extract_strided_slice %643 {offsets = [0, 256], sizes = [8, 128], strides = [1, 1]} : vector<8x384xf32> to vector<8x128xf32>
    %689 = vector.extract_strided_slice %671 {offsets = [0, 256], sizes = [8, 128], strides = [1, 1]} : vector<8x384xf32> to vector<8x128xf32>
    %690 = vector.broadcast %10 : vector<1x128xf32> to vector<8x128xf32>
    %691 = arith.addf %689, %690 : vector<8x128xf32>
    %692 = arith.mulf %679, %691 : vector<8x128xf32>
    %693 = arith.addf %688, %692 : vector<8x128xf32>
    %694 = math.tanh %693 : vector<8x128xf32>
    %695 = arith.subf %634, %694 : vector<8x128xf32>
    %696 = arith.mulf %687, %695 : vector<8x128xf32>
    %697 = arith.addf %694, %696 : vector<8x128xf32>
    %698 = arith.index_cast %c7_i32_145 : i32 to index
    %c0_157 = arith.constant 0 : index
    %c0_158 = arith.constant 0 : index
    %699 = vector.load %arg1[%698, %c0_157, %c0_158] : memref<8x8x1xf32, #tpu.memory_space<vmem>>, vector<1x8x1xf32>
    %700 = vector.shape_cast %699 : vector<1x8x1xf32> to vector<8x1xf32>
    %701 = arith.index_cast %635 : i32 to index
    %c0_159 = arith.constant 0 : index
    %c0_160 = arith.constant 0 : index
    %702 = vector.load %arg1[%701, %c0_159, %c0_160] : memref<8x8x1xf32, #tpu.memory_space<vmem>>, vector<1x8x1xf32>
    %703 = vector.shape_cast %702 : vector<1x8x1xf32> to vector<8x1xf32>
    %704 = vector.broadcast %700 : vector<8x1xf32> to vector<8x128xf32>
    %705 = arith.mulf %670, %704 : vector<8x128xf32>
    %706 = arith.index_cast %c7_i32_145 : i32 to index
    %c0_161 = arith.constant 0 : index
    %c0_162 = arith.constant 0 : index
    %707 = vector.load %arg8[%706, %c0_161, %c0_162] : memref<8x8x256xf32, #tpu.memory_space<vmem>>, vector<1x8x128xf32>
    %708 = vector.shape_cast %707 : vector<1x8x128xf32> to vector<8x128xf32>
    %709 = vector.shape_cast %705 : vector<8x128xf32> to vector<1x8x128xf32>
    tpu.vector_store %arg8[%706, %c0_161, %c0_162], %709 {strides = array<i32>} : memref<8x8x256xf32, #tpu.memory_space<vmem>>, vector<1x8x128xf32>,
    %710 = vector.broadcast %703 : vector<8x1xf32> to vector<8x128xf32>
    %711 = arith.mulf %697, %710 : vector<8x128xf32>
    %712 = arith.index_cast %635 : i32 to index
    %c0_163 = arith.constant 0 : index
    %c128_164 = arith.constant 128 : index
    %713 = vector.load %arg8[%712, %c0_163, %c128_164] : memref<8x8x256xf32, #tpu.memory_space<vmem>>, vector<1x8x128xf32>
    %714 = vector.shape_cast %713 : vector<1x8x128xf32> to vector<8x128xf32>
    %715 = vector.shape_cast %711 : vector<8x128xf32> to vector<1x8x128xf32>
    tpu.vector_store %arg8[%712, %c0_163, %c128_164], %715 {strides = array<i32>} : memref<8x8x256xf32, #tpu.memory_space<vmem>>, vector<1x8x128xf32>,
    %716 = arith.subf %670, %630 : vector<8x128xf32>
    %717 = vector.broadcast %700 : vector<8x1xf32> to vector<8x128xf32>
    %718 = arith.mulf %717, %716 : vector<8x128xf32>
    %719 = arith.addf %630, %718 : vector<8x128xf32>
    %720 = arith.subf %697, %634 : vector<8x128xf32>
    %721 = vector.broadcast %703 : vector<8x1xf32> to vector<8x128xf32>
    %722 = arith.mulf %721, %720 : vector<8x128xf32>
    %723 = arith.addf %634, %722 : vector<8x128xf32>
    %c8_i32_165 = arith.constant 8 : i32
    %c0_166 = arith.constant 0 : index
    %c0_167 = arith.constant 0 : index
    %724 = vector.load %arg9[%c0_166, %c0_167] : memref<8x256xf32, #tpu.memory_space<vmem>>, vector<8x128xf32>
    tpu.vector_store %arg9[%c0_166, %c0_167], %719 {strides = array<i32>} : memref<8x256xf32, #tpu.memory_space<vmem>>, vector<8x128xf32>,
    %c0_168 = arith.constant 0 : index
    %c128_169 = arith.constant 128 : index
    %725 = vector.load %arg9[%c0_168, %c128_169] : memref<8x256xf32, #tpu.memory_space<vmem>>, vector<8x128xf32>
    tpu.vector_store %arg9[%c0_168, %c128_169], %723 {strides = array<i32>} : memref<8x256xf32, #tpu.memory_space<vmem>>, vector<8x128xf32>,
    return
  }
}

</mosaic_0001>

<bundles_post_ra>
// kernel: tpu_custom_call.1
= control target key start
LH: loop header
LB: loop body
LE: loop exit
PB: predicated region body
PF: predicated region fallthrough
CT: control target
= control target key end

     0   :  { %15 = vsyncpa [#allocation4], 0  ;;  %s7155_s0 = inlined_call_operand.vmem [shape: f32[64,16], index: 0, kind: input, shape index: {}]   ;;  %s7156_s1 = inlined_call_operand.vmem [shape: f32[8,8,1], index: 1, kind: input, shape index: {}]   ;;  %s7157_s2 = inlined_call_operand.vmem [shape: f32[16,768], index: 2, kind: input, shape index: {}]   ;;  %s7158_s3 = inlined_call_operand.vmem [shape: f32[1,768], index: 3, kind: input, shape index: {}]   ;;  %s7159_s4 = inlined_call_operand.hbm [shape: f32[128,384], index: 4, kind: input, shape index: {}]   ;;  %s7160_s5 = inlined_call_operand.vmem [shape: f32[1,128], index: 5, kind: input, shape index: {}]   ;;  %s7161_s6 = inlined_call_operand.hbm [shape: f32[128,384], index: 6, kind: input, shape index: {}]   ;;  %s7162_s7 = inlined_call_operand.vmem [shape: f32[1,128], index: 7, kind: input, shape index: {}]   ;;  %s7163_s8 = inlined_call_operand.hbm [shape: f32[8,8,256], index: 8, kind: output, shape index: {0}]   ;;  %s7164_s9 = inlined_call_operand.hbm [shape: f32[8,256], index: 9, kind: output, shape index: {1}]  }
   0x1   :  { %16 = vsyncpa [#allocation7], 0 }
   0x2   :  { %17 = vsyncpa [#allocation5], 0 }
   0x3   :  { %18 = vsyncpa [#allocation10], 0  ;;  %s4891_s30 = smov [#allocation3]  }
   0x4   :  { %s32_s10 = sshll.u32 %s4891_s30, 4  ;;  %s33_s10 = int_to_ptr.vmem [resolvable:$true] %s32_s10 }
   0x5   :  { %s4811_s11 = scalar_lea.vmem %s33_s10, 6144  ;;  %p4816_p1 = scmp.lt.s32.totalorder %s33_s10, %s33_s10 }
   0x6   :  { %p4812_p0 = scmp.ne.s32.totalorder %s33_s10, %s4811_s11  ;;  %p4817_p2 = scmp.lt.s32.totalorder %s4811_s11, %s4811_s11 }
   0x8   :  { %p4818_p3 = por %p4817_p2, %p4816_p1 }
   0xa   :  { %p4819_p4 = pnand %p4818_p3, %p4812_p0 }
   0xc   :  { %4822 = shalt.err (!%p4819_p4)
}
   0xd   :  { %s4892_s12 = smov 384   ;;  %s4893_s13 = smov 24  }
   0xe   :  { %38 = dma.hbm_to_vmem [thread:$0]  %s7159_s4, 6144, %s33_s10, [#allocation4], %s4892_s12, %s4892_s12, %s4893_s13  }
   0xf   :  { %s4894_s16 = smov [#allocation6]  }
  0x10   :  { %s46_s17 = sshll.u32 %s4894_s16, 4  ;;  %s47_s17 = int_to_ptr.vmem [resolvable:$true] %s46_s17 }
  0x11   :  { %s4831_s18 = scalar_lea.vmem %s47_s17, 6144  ;;  %p4836_p6 = scmp.lt.s32.totalorder %s47_s17, %s47_s17 }
  0x12   :  { %p4832_p5 = scmp.ne.s32.totalorder %s47_s17, %s4831_s18  ;;  %p4837_p7 = scmp.lt.s32.totalorder %s4831_s18, %s4831_s18 }
  0x14   :  { %p4838_p8 = por %p4837_p7, %p4836_p6 }
  0x16   :  { %p4839_p9 = pnand %p4838_p8, %p4832_p5 }
  0x18   :  { %4842 = shalt.err (!%p4839_p9)
}
  0x19   :  { %52 = dma.hbm_to_vmem [thread:$0]  %s7161_s6, 6144, %s47_s17, [#allocation7], %s4892_s12, %s4892_s12, %s4893_s13  }
  0x1a   :  { %4883 = dma.done.wait [#allocation4], 6144  }
  0x1b   :  { %4884 = vsyncadd [#allocation4], 4294961152 }
  0x1c   :  { %4885 = dma.done.wait [#allocation7], 6144  }
  0x1d   :  { %4886 = vsyncadd [#allocation7], 4294961152  ;;  %v7189_v0 = vmov 0.0   ;;  %v4896_v1 = vmov 0   ;;  %v76_v2 = vld [vmem:[%s7157_s2 + $0x38] sm:$0xff]  ;;  %v75_v3 = vld [vmem:[%s7157_s2 + $0x30] sm:$0xff] }
  0x1e   :  { %226 = vmatprep.mubr.f32.mxu1 %v7189_v0  ;;  %202 = vmatprep.mubr.f32.mxu0 %v7189_v0  ;;  %v70_v4 = vld [vmem:[%s7157_s2 + $0x8] sm:$0xff]  ;;  %v69_v5 = vld [vmem:[%s7157_s2] sm:$0xff]  ;;  %vm113_vm0 = vcmask 130048   ;;  %v72_v9 = vld [vmem:[%s7157_s2 + $0x18] sm:$0xff]  ;;  %vm4897_vm1 = vmmov 0   ;;  %s4899_s16 = smov [#allocation9]  }
  0x1f   :  { %4445 = vset.pattern.permute.xlu0 %v4896_v1  ;;  %4446 = vset.pattern.permute.xlu1 %v4896_v1  ;;  %v4975_v6 = vld [vmem:[%s7155_s0 + $0x20] sm:$0xff]  ;;  %v78_v7 = vld [vmem:[%s7157_s2 + $0x48] sm:$0xff]  ;;  %v71_v10 = vld [vmem:[%s7157_s2 + $0x10] sm:$0xff]  ;;  %s3505_s17 = sshll.u32 %s4899_s16, 4  ;;  %s3506_s17 = int_to_ptr.vmem [resolvable:$true] %s3505_s17 }
  0x20   :  { %4430 = vmatprep.subr.mxu1 %v76_v2  ;;  %166 = vmatprep.subr.mxu0 %v76_v2  ;;  %v77_v8 = vld [vmem:[%s7157_s2 + $0x40] sm:$0xff]  ;;  %v4995_v11 = vld [vmem:[%s7155_s0 + $0x28] sm:$0xff]  ;;  %v4997_v12 = vld [vmem:[#allocation3 + $0x170] sm:$0xff] }
  0x21   :  { %4432 = vmatpush1.msra.mxu1 %v75_v3  ;;  %167 = vmatpush1.msra.mxu0 %v75_v3  ;;  %v61_v13 = vld [vmem:[%s7155_s0] sm:$0xff]  ;;  %v5011_v14 = vld [vmem:[%s7155_s0 + $0x30] sm:$0xff]  ;;  %v5016_v15 = vld [vmem:[%s7155_s0 + $0x8] sm:$0xff] }
  0x22   :  { %4431 = vmatprep.subr.mxu1 %v70_v4  ;;  %168 = vmatprep.subr.mxu0 %v70_v4  ;;  %v80_v16 = vld [vmem:[%s7157_s2 + $0x58] sm:$0xff]  ;;  %v79_v17 = vld [vmem:[%s7157_s2 + $0x50] sm:$0xff]  ;;  %v74_v20 = vld [vmem:[%s7157_s2 + $0x28] sm:$0xff] }
  0x23   :  { %4433 = vmatpush1.msra.mxu1 %v69_v5  ;;  %169 = vmatpush1.msra.mxu0 %v69_v5  ;;  %v5033_v18 = vld [vmem:[%s7155_s0 + $0x38] sm:$0xff]  ;;  %v5038_v19 = vld [vmem:[%s7155_s0 + $0x10] sm:$0xff]  ;;  %v73_v21 = vld [vmem:[%s7157_s2 + $0x20] sm:$0xff] }
  0x24   :  { %3530 = vmatmul.mubr.msk.f32.vlgmr.msra.gmra.mxu1 %vm113_vm0, %v4975_v6  ;;  %279 = vmatprep.subr.mxu1 %v78_v7  ;;  %v5056_v22 = vld [vmem:[%s7155_s0 + $0x18] sm:$0xff]  ;;  %v5058_v23 = vld [vmem:[#allocation3 + $0x168] sm:$0xff]  ;;  %v5066_v25 = vld [vmem:[#allocation3 + $0x150] sm:$0xff] }
  0x25   :  { %280 = vmatpush1.msra.mxu1 %v77_v8  ;;  %232 = vmatprep.mubr.f32.mxu1 %v7189_v0  ;;  %v5062_v24 = vld [vmem:[#allocation3 + $0x158] sm:$0xff]  ;;  %v5072_v27 = vld [vmem:[#allocation3 + $0x140] sm:$0xff]  ;;  %v5079_v29 = vld [vmem:[#allocation3 + $0x128] sm:$0xff] }
  0x26   :  { %281 = vmatprep.subr.mxu1 %v72_v9  ;;  %3526 = vmatmul.mubr.msk.f32.vlgmr.msra.gmra.mxu0 %vm113_vm0, %v61_v13  ;;  %v5068_v26 = vld [vmem:[#allocation3 + $0x178] sm:$0xff]  ;;  %v5085_v30 = vld [vmem:[#allocation3 + $0x120] sm:$0xff]  ;;  %v5091_v32 = vld [vmem:[#allocation3 + $0x110] sm:$0xff] }
  0x27   :  { %282 = vmatpush1.msra.mxu1 %v71_v10  ;;  %208 = vmatprep.mubr.f32.mxu0 %v7189_v0  ;;  %v5075_v28 = vld [vmem:[#allocation3 + $0x138] sm:$0xff]  ;;  %v5087_v31 = vld [vmem:[#allocation3 + $0x160] sm:$0xff]  ;;  %v5094_v33 = vld [vmem:[#allocation3 + $0x108] sm:$0xff] }
  0x28   :  { %3531 = vmatmul.mubr.msk.f32.gmra.mxu1 %vm113_vm0, %v4995_v11  ;;  %635 = vmatprep.subr.mxu1 %v4997_v12  ;;  %v5098_v34 = vld [vmem:[#allocation3 + $0xf8] sm:$0xff]  ;;  %v5104_v35 = vld [vmem:[#allocation3 + $0xf0] sm:$0xff]  ;;  %v5108_v36 = vld [vmem:[#allocation3 + $0xe0] sm:$0xff] }
  0x29   :  { %238 = vmatprep.mubr.f32.mxu1 %v7189_v0  ;;  %392 = vmatprep.subr.mxu0 %v80_v16  ;;  %v5111_v37 = vld [vmem:[#allocation3 + $0xd8] sm:$0xff]  ;;  %v5115_v38 = vld [vmem:[#allocation3 + $0xc8] sm:$0xff]  ;;  %v5121_v39 = vld [vmem:[#allocation3 + $0xc0] sm:$0xff] }
  0x2a   :  { %3527 = vmatmul.mubr.msk.f32.gmra.mxu0 %vm113_vm0, %v5016_v15  ;;  %v5123_v40 = vld [vmem:[#allocation3 + $0x148] sm:$0xff]  ;;  %v5127_v41 = vld [vmem:[#allocation3 + $0xb0] sm:$0xff]  ;;  %v5135_v43 = vld [vmem:[#allocation3 + $0x98] sm:$0xff] }
  0x2b   :  { %214 = vmatprep.mubr.f32.mxu0 %v7189_v0  ;;  %393 = vmatpush1.msra.mxu0 %v79_v17  ;;  %v5130_v42 = vld [vmem:[#allocation3 + $0xa8] sm:$0xff]  ;;  %v5141_v44 = vld [vmem:[#allocation3 + $0x90] sm:$0xff]  ;;  %v5147_v46 = vld [vmem:[#allocation3 + $0x80] sm:$0xff] }
  0x2c   :  { %3532 = vmatmul.mubr.msk.f32.gmra.mxu1 %vm113_vm0, %v5011_v14  ;;  %394 = vmatprep.subr.mxu0 %v74_v20  ;;  %v5143_v45 = vld [vmem:[#allocation3 + $0x130] sm:$0xff]  ;;  %v5150_v47 = vld [vmem:[#allocation3 + $0x78] sm:$0xff]  ;;  %v5154_v48 = vld [vmem:[#allocation3 + $0x68] sm:$0xff] }
  0x2d   :  { %244 = vmatprep.mubr.f32.mxu1 %v7189_v0  ;;  %395 = vmatpush1.msra.mxu0 %v73_v21  ;;  %v5160_v49 = vld [vmem:[#allocation3 + $0x60] sm:$0xff]  ;;  %v5164_v50 = vld [vmem:[#allocation3 + $0x50] sm:$0xff]  ;;  %v5167_v51 = vld [vmem:[#allocation3 + $0x48] sm:$0xff] }
  0x2e   :  { %3528 = vmatmul.mubr.msk.f32.gmra.mxu0 %vm113_vm0, %v5038_v19  ;;  %3870 = vmatprep.subr.mxu0 %v7189_v0  ;;  %v5171_v52 = vld [vmem:[#allocation3 + $0x38] sm:$0xff]  ;;  %v5177_v53 = vld [vmem:[#allocation3 + $0x30] sm:$0xff]  ;;  %v5183_v55 = vld [vmem:[#allocation3 + $0x20] sm:$0xff] }
  0x2f   :  { %220 = vmatprep.mubr.f32.mxu0 %v7189_v0  ;;  %v5179_v54 = vld [vmem:[#allocation3 + $0x118] sm:$0xff]  ;;  %v5191_v57 = vld [vmem:[#allocation3 + $0x8] sm:$0xff]  ;;  %v5197_v58 = vld [vmem:[#allocation3] sm:$0xff] }
  0x30   :  { %3533 = vmatmul.mubr.msk.f32.gmra.mxu1 %vm113_vm0, %v5033_v18  ;;  %v5186_v56 = vld [vmem:[#allocation3 + $0x18] sm:$0xff]  ;;  %v5199_v59 = vld [vmem:[#allocation3 + $0x100] sm:$0xff]  ;;  %v5203_v60 = vld [vmem:[#allocation6 + $0x170] sm:$0xff] }
  0x31   :  { %315 = vmatprep.mubr.f32.mxu1 %v7189_v0  ;;  %v5206_v61 = vld [vmem:[#allocation6 + $0x168] sm:$0xff]  ;;  %v5210_v62 = vld [vmem:[#allocation6 + $0x158] sm:$0xff]  ;;  %v5215_v63 = vld [vmem:[#allocation6 + $0x150] sm:$0xff] }
  0x32   :  { %3529 = vmatmul.mubr.msk.f32.gmra.mxu0 %vm113_vm0, %v5056_v22  ;;  %v5218_v1 = vld [vmem:[#allocation6 + $0x140] sm:$0xff]  ;;  %v5221_v2 = vld [vmem:[#allocation3 + $0xe8] sm:$0xff]  ;;  %v5224_v3 = vld [vmem:[#allocation6 + $0x138] sm:$0xff] }
  0x33   :  { %428 = vmatprep.mubr.f32.mxu0 %v7189_v0  ;;  %v5228_v4 = vld [vmem:[#allocation6 + $0x128] sm:$0xff]  ;;  %v5232_v5 = vld [vmem:[#allocation3 + $0xd0] sm:$0xff]  ;;  %v5235_v7 = vld [vmem:[#allocation6 + $0x120] sm:$0xff] }
  0x34   :  { %3534 = vmatmul.mubr.msk.f32.vlgmr.msra.gmra.mxu1 %vm113_vm0, %v61_v13  ;;  %v5239_v8 = vld [vmem:[#allocation6 + $0x110] sm:$0xff]  ;;  %v5243_v9 = vld [vmem:[#allocation6 + $0x108] sm:$0xff]  ;;  %v5247_v10 = vld [vmem:[#allocation6 + $0xf8] sm:$0xff] }
  0x35   :  { %636 = vmatpush1.msra.mxu1 %v5058_v23  ;;  %321 = vmatprep.mubr.f32.mxu1 %v7189_v0  ;;  %7338 = vst [vmem:[#allocation15_spill] sm:$0xff] %v5239_v8  ;;  %7339 = vst [vmem:[#allocation16_spill] sm:$0xff] %v5243_v9  ;;  %v5257_v16 = vld [vmem:[#allocation6 + $0xe0] sm:$0xff]  ;;  %v5268_v20 = vld [vmem:[#allocation6 + $0xc8] sm:$0xff] }
  0x36   :  { %637 = vmatprep.subr.mxu1 %v5062_v24  ;;  %3542 = vmatmul.mubr.msk.f32.vlgmr.msra.gmra.mxu0 %vm113_vm0, %v61_v13  ;;  %7340 = vst [vmem:[#allocation17_spill] sm:$0xff] %v5247_v10  ;;  %v5250_v13 = vld [vmem:[#allocation3 + $0xb8] sm:$0xff]  ;;  %7342 = vst [vmem:[#allocation19_spill] sm:$0xff] %v5257_v16  ;;  %v5261_v17 = vld [vmem:[#allocation3 + $0xa0] sm:$0xff] }
  0x37   :  { %638 = vmatpush1.msra.mxu1 %v5066_v25  ;;  %3871 = vmatpush3.msra.mxu0 %v5068_v26  ;;  %7344 = vst [vmem:[#allocation21_spill] sm:$0xff] %v5268_v20  ;;  %v5272_v21 = vld [vmem:[#allocation6 + $0xc0] sm:$0xff] }
  0x38   :  { %639 = vmatprep.subr.mxu1 %v5072_v27  ;;  %3535 = vmatmul.mubr.msk.f32.gmra.mxu1 %vm113_vm0, %v5016_v15  ;;  %7345 = vst [vmem:[#allocation22_spill] sm:$0xff] %v5272_v21 }
  0x39   :  { %640 = vmatpush1.msra.mxu1 %v5075_v28  ;;  %327 = vmatprep.mubr.f32.mxu1 %v7189_v0 }
  0x3a   :  { %641 = vmatprep.subr.mxu1 %v5079_v29  ;;  %3872 = vmatprep.subr.mxu0 %v7189_v0 }
  0x3b   :  { %642 = vmatpush1.msra.mxu1 %v5085_v30  ;;  %3873 = vmatpush3.msra.mxu0 %v5087_v31 }
  0x3c   :  { %643 = vmatprep.subr.mxu1 %v5091_v32  ;;  %3536 = vmatmul.mubr.msk.f32.gmra.mxu1 %vm113_vm0, %v5038_v19 }
  0x3d   :  { %644 = vmatpush1.msra.mxu1 %v5094_v33  ;;  %333 = vmatprep.mubr.f32.mxu1 %v7189_v0 }
  0x3e   :  { %645 = vmatprep.subr.mxu1 %v5098_v34  ;;  %434 = vmatprep.mubr.f32.mxu0 %v7189_v0 }
  0x3f   :  { %646 = vmatpush1.msra.mxu1 %v5104_v35  ;;  %3874 = vmatprep.subr.mxu0 %v7189_v0 }
  0x40   :  { %647 = vmatprep.subr.mxu1 %v5108_v36  ;;  %3537 = vmatmul.mubr.msk.f32.gmra.mxu1 %vm113_vm0, %v5056_v22 }
  0x41   :  { %648 = vmatpush1.msra.mxu1 %v5111_v37  ;;  %339 = vmatprep.mubr.f32.mxu1 %v7189_v0 }
  0x42   :  { %649 = vmatprep.subr.mxu1 %v5115_v38  ;;  %3543 = vmatmul.mubr.msk.f32.gmra.mxu0 %vm113_vm0, %v5016_v15  ;;  %v5253_v15 = vld [vmem:[#allocation6 + $0xf0] sm:$0xff] }
  0x43   :  { %650 = vmatpush1.msra.mxu1 %v5121_v39  ;;  %3875 = vmatpush3.msra.mxu0 %v5123_v40  ;;  %7341 = vst [vmem:[#allocation18_spill] sm:$0xff] %v5253_v15 }
  0x44   :  { %651 = vmatprep.subr.mxu1 %v5127_v41  ;;  %3538 = vmatmul.mubr.msk.f32.gmra.mxu1 %vm113_vm0, %v4975_v6 }
  0x45   :  { %652 = vmatpush1.msra.mxu1 %v5130_v42  ;;  %345 = vmatprep.mubr.f32.mxu1 %v7189_v0 }
  0x46   :  { %653 = vmatprep.subr.mxu1 %v5135_v43  ;;  %3876 = vmatprep.subr.mxu0 %v7189_v0 }
  0x47   :  { %654 = vmatpush1.msra.mxu1 %v5141_v44  ;;  %3877 = vmatpush3.msra.mxu0 %v5143_v45 }
  0x48   :  { %655 = vmatprep.subr.mxu1 %v5147_v46  ;;  %3539 = vmatmul.mubr.msk.f32.gmra.mxu1 %vm113_vm0, %v4995_v11 }
  0x49   :  { %656 = vmatpush1.msra.mxu1 %v5150_v47  ;;  %351 = vmatprep.mubr.f32.mxu1 %v7189_v0 }
  0x4a   :  { %657 = vmatprep.subr.mxu1 %v5154_v48  ;;  %440 = vmatprep.mubr.f32.mxu0 %v7189_v0 }
  0x4b   :  { %658 = vmatpush1.msra.mxu1 %v5160_v49  ;;  %3878 = vmatprep.subr.mxu0 %v7189_v0 }
  0x4c   :  { %659 = vmatprep.subr.mxu1 %v5164_v50  ;;  %3540 = vmatmul.mubr.msk.f32.gmra.mxu1 %vm113_vm0, %v5011_v14 }
  0x4d   :  { %660 = vmatpush1.msra.mxu1 %v5167_v51  ;;  %357 = vmatprep.mubr.f32.mxu1 %v7189_v0 }
  0x4e   :  { %661 = vmatprep.subr.mxu1 %v5171_v52  ;;  %3544 = vmatmul.mubr.msk.f32.gmra.mxu0 %vm113_vm0, %v5038_v19  ;;  %v5264_v19 = vld [vmem:[#allocation6 + $0xd8] sm:$0xff] }
  0x4f   :  { %662 = vmatpush1.msra.mxu1 %v5177_v53  ;;  %3879 = vmatpush3.msra.mxu0 %v5179_v54  ;;  %7343 = vst [vmem:[#allocation20_spill] sm:$0xff] %v5264_v19 }
  0x50   :  { %663 = vmatprep.subr.mxu1 %v5183_v55  ;;  %3541 = vmatmul.mubr.msk.f32.gmra.mxu1 %vm113_vm0, %v5033_v18 }
  0x51   :  { %664 = vmatpush1.msra.mxu1 %v5186_v56  ;;  %699 = vmatprep.mubr.f32.mxu1 %v7189_v0 }
  0x52   :  { %665 = vmatprep.subr.mxu1 %v5191_v57  ;;  %3880 = vmatprep.subr.mxu0 %v7189_v0 }
  0x53   :  { %666 = vmatpush1.msra.mxu1 %v5197_v58  ;;  %3881 = vmatpush3.msra.mxu0 %v5199_v59 }
  0x54   :  { %803 = vmatprep.subr.mxu1 %v5203_v60  ;;  %700 = vmatmul.mubr.f32.vlgmr.msra.gmra.mxu1 %v7189_v0 }
  0x55   :  { %804 = vmatpush1.msra.mxu1 %v5206_v61  ;;  %446 = vmatprep.mubr.f32.mxu0 %v7189_v0 }
  0x56   :  { %805 = vmatprep.subr.mxu1 %v5210_v62  ;;  %3882 = vmatprep.subr.mxu0 %v7189_v0 }
  0x57   :  { %806 = vmatpush1.msra.mxu1 %v5215_v63  ;;  %3545 = vmatmul.mubr.msk.f32.gmra.mxu0 %vm113_vm0, %v5056_v22  ;;  %v5279_v22 = vld [vmem:[#allocation3 + $0x88] sm:$0xff] }
  0x58   :  { %807 = vmatprep.subr.mxu1 %v5218_v1  ;;  %3883 = vmatpush3.msra.mxu0 %v5221_v2 }
  0x59   :  { %808 = vmatpush1.msra.mxu1 %v5224_v3  ;;  %3884 = vmatprep.subr.mxu0 %v7189_v0 }
  0x5a   :  { %809 = vmatprep.subr.mxu1 %v5228_v4  ;;  %3885 = vmatpush3.msra.mxu0 %v5232_v5 }
  0x5b   :  { %810 = vmatpush1.msra.mxu1 %v5235_v7  ;;  %452 = vmatprep.mubr.f32.mxu0 %v7189_v0 }
  0x5c   :  { %811 = vmatprep.subr.mxu1 %v5239_v8  ;;  %3886 = vmatprep.subr.mxu0 %v7189_v0  ;;  %v5352_v8 = vld [vmem:[#allocation6] sm:$0xff] }
  0x5d   :  { %812 = vmatpush1.msra.mxu1 %v5243_v9  ;;  %3546 = vmatmul.mubr.msk.f32.gmra.mxu0 %vm113_vm0, %v4975_v6  ;;  %v5276_v6 = vld [vmem:[#allocation6 + $0xb0] sm:$0xff]  ;;  %v5323_v9 = vld [vmem:[#allocation6 + $0x48] sm:$0xff]  ;;  %7361 = vst [vmem:[#allocation38_spill] sm:$0xff] %v5352_v8 }
  0x5e   :  { %813 = vmatprep.subr.mxu1 %v5247_v10  ;;  %3887 = vmatpush3.msra.mxu0 %v5250_v13  ;;  %7346 = vst [vmem:[#allocation23_spill] sm:$0xff] %v5276_v6  ;;  %v5293_v10 = vld [vmem:[#allocation6 + $0x90] sm:$0xff]  ;;  %7355 = vst [vmem:[#allocation32_spill] sm:$0xff] %v5323_v9 }
  0x5f   :  { %814 = vmatpush1.msra.mxu1 %v5253_v15  ;;  %3888 = vmatprep.subr.mxu0 %v7189_v0  ;;  %v5282_v15 = vld [vmem:[#allocation6 + $0xa8] sm:$0xff]  ;;  %7349 = vst [vmem:[#allocation26_spill] sm:$0xff] %v5293_v10 }
  0x60   :  { %815 = vmatprep.subr.mxu1 %v5257_v16  ;;  %3889 = vmatpush3.msra.mxu0 %v5261_v17  ;;  %7347 = vst [vmem:[#allocation24_spill] sm:$0xff] %v5282_v15  ;;  %v5286_v16 = vld [vmem:[#allocation6 + $0x98] sm:$0xff] }
  0x61   :  { %816 = vmatpush1.msra.mxu1 %v5264_v19  ;;  %458 = vmatprep.mubr.f32.mxu0 %v7189_v0  ;;  %7348 = vst [vmem:[#allocation25_spill] sm:$0xff] %v5286_v16  ;;  %v5290_v19 = vld [vmem:[#allocation3 + $0x70] sm:$0xff] }
  0x62   :  { %817 = vmatprep.subr.mxu1 %v5268_v20  ;;  %3890 = vmatprep.subr.mxu0 %v7189_v0  ;;  %v5297_v20 = vld [vmem:[#allocation6 + $0x80] sm:$0xff] }
  0x63   :  { %818 = vmatpush1.msra.mxu1 %v5272_v21  ;;  %3547 = vmatmul.mubr.msk.f32.gmra.mxu0 %vm113_vm0, %v4995_v11  ;;  %7350 = vst [vmem:[#allocation27_spill] sm:$0xff] %v5297_v20  ;;  %v5301_v21 = vld [vmem:[#allocation6 + $0x78] sm:$0xff]  ;;  %v5305_v11 = vld [vmem:[#allocation6 + $0x68] sm:$0xff] }
  0x64   :  { %819 = vmatprep.subr.mxu1 %v5276_v6  ;;  %3891 = vmatpush3.msra.mxu0 %v5279_v22  ;;  %7351 = vst [vmem:[#allocation28_spill] sm:$0xff] %v5301_v21  ;;  %7352 = vst [vmem:[#allocation29_spill] sm:$0xff] %v5305_v11  ;;  %v5308_v6 = vld [vmem:[#allocation3 + $0x58] sm:$0xff] }
  0x65   :  { %820 = vmatpush1.msra.mxu1 %v5282_v15  ;;  %3892 = vmatprep.subr.mxu0 %v7189_v0  ;;  %v5312_v15 = vld [vmem:[#allocation6 + $0x60] sm:$0xff] }
  0x66   :  { %821 = vmatprep.subr.mxu1 %v5286_v16  ;;  %3893 = vmatpush3.msra.mxu0 %v5290_v19  ;;  %7353 = vst [vmem:[#allocation30_spill] sm:$0xff] %v5312_v15  ;;  %v5317_v16 = vld [vmem:[#allocation6 + $0x50] sm:$0xff] }
  0x67   :  { %822 = vmatpush1.msra.mxu1 %v5293_v10  ;;  %464 = vmatprep.mubr.f32.mxu0 %v7189_v0  ;;  %7354 = vst [vmem:[#allocation31_spill] sm:$0xff] %v5317_v16  ;;  %v5319_v10 = vld [vmem:[#allocation3 + $0x40] sm:$0xff] }
  0x68   :  { %823 = vmatprep.subr.mxu1 %v5297_v20  ;;  %3894 = vmatprep.subr.mxu0 %v7189_v0  ;;  %v5327_v20 = vld [vmem:[#allocation6 + $0x38] sm:$0xff] }
  0x69   :  { %824 = vmatpush1.msra.mxu1 %v5301_v21  ;;  %3548 = vmatmul.mubr.msk.f32.gmra.mxu0 %vm113_vm0, %v5011_v14  ;;  %7356 = vst [vmem:[#allocation33_spill] sm:$0xff] %v5327_v20  ;;  %v5331_v14 = vld [vmem:[#allocation6 + $0x30] sm:$0xff]  ;;  %v5337_v21 = vld [vmem:[#allocation6 + $0x20] sm:$0xff] }
  0x6a   :  { %825 = vmatprep.subr.mxu1 %v5305_v11  ;;  %3895 = vmatpush3.msra.mxu0 %v5308_v6  ;;  %7357 = vst [vmem:[#allocation34_spill] sm:$0xff] %v5331_v14  ;;  %v5335_v11 = vld [vmem:[#allocation3 + $0x28] sm:$0xff]  ;;  %7358 = vst [vmem:[#allocation35_spill] sm:$0xff] %v5337_v21 }
  0x6b   :  { %826 = vmatpush1.msra.mxu1 %v5312_v15  ;;  %3896 = vmatprep.subr.mxu0 %v7189_v0  ;;  %v5341_v15 = vld [vmem:[#allocation6 + $0x18] sm:$0xff] }
  0x6c   :  { %827 = vmatprep.subr.mxu1 %v5317_v16  ;;  %3897 = vmatpush3.msra.mxu0 %v5319_v10  ;;  %7359 = vst [vmem:[#allocation36_spill] sm:$0xff] %v5341_v15  ;;  %v5346_v16 = vld [vmem:[#allocation3 + $0x10] sm:$0xff] }
  0x6d   :  { %828 = vmatpush1.msra.mxu1 %v5323_v9  ;;  %470 = vmatprep.mubr.f32.mxu0 %v7189_v0  ;;  %v5348_v9 = vld [vmem:[#allocation6 + $0x8] sm:$0xff] }
  0x6e   :  { %829 = vmatprep.subr.mxu1 %v5327_v20  ;;  %3898 = vmatprep.subr.mxu0 %v7189_v0  ;;  %7360 = vst [vmem:[#allocation37_spill] sm:$0xff] %v5348_v9  ;;  %v5395_v20 = vld [vmem:[#allocation6 + $0x118] sm:$0xff] }
  0x6f   :  { %830 = vmatpush1.msra.mxu1 %v5331_v14  ;;  %3549 = vmatmul.mubr.msk.f32.gmra.mxu0 %vm113_vm0, %v5033_v18  ;;  %v5361_v18 = vld [vmem:[#allocation6 + $0x178] sm:$0xff]  ;;  %v5389_v14 = vld [vmem:[#allocation6 + $0x130] sm:$0xff] }
  0x70   :  { %3899 = vmatpush3.msra.mxu0 %v5335_v11  ;;  %831 = vmatprep.subr.mxu1 %v5337_v21  ;;  %v5385_v21 = vld [vmem:[%s7156_s1 + $0x38] sm:$0xff] }
  0x71   :  { %3900 = vmatprep.subr.mxu0 %v7189_v0  ;;  %832 = vmatpush1.msra.mxu1 %v5341_v15  ;;  %v5368_v15 = vld [vmem:[%s7156_s1] sm:$0xff] }
  0x72   :  { %3901 = vmatpush3.msra.mxu0 %v5346_v16  ;;  %833 = vmatprep.subr.mxu1 %v5348_v9  ;;  %v5372_v9 = vld [vmem:[#allocation6 + $0x160] sm:$0xff] }
  0x73   :  { %3902 = vmatprep.mubr.msk.f32.mxu0 %vm4897_vm1, %v7189_v0  ;;  %834 = vmatpush1.msra.mxu1 %v5352_v8  ;;  %v5378_v8 = vld [vmem:[#allocation6 + $0x148] sm:$0xff] }
  0x74   :  { %867 = vmatprep.mubr.f32.mxu1 %v7189_v0  ;;  %3905 = vmatprep.subr.mxu0 %v7189_v0 }
  0x75   :  { %3903 = vmatmul.mubr.f32.vlgmr.msra.gmra.mxu0 %v7189_v0  ;;  %868 = vmatmul.mubr.f32.vlgmr.msra.gmra.mxu1 %v7189_v0 }
  0x76   :  { %3906 = vmatpush3.msra.mxu0 %v5361_v18  ;;  %3937 = vmatprep.mubr.msk.f32.mxu0 %vm4897_vm1, %v7189_v0 }
  0x77   :  { %3907 = vmatprep.subr.mxu0 %v7189_v0  ;;  %976 = vperm.xlu0 %4445, %v5368_v15  }
  0x78   :  { %3908 = vmatpush3.msra.mxu0 %v5372_v9  ;;  %1003 = vmatprep.subr.mxu1 %v4997_v12  ;;  %v5402_v12 = vld [vmem:[%s7156_s1 + $0x10] sm:$0xff] }
  0x79   :  { %3909 = vmatprep.subr.mxu0 %v7189_v0  ;;  %1004 = vmatpush1.msra.mxu1 %v5058_v23  ;;  %v5406_v23 = vld [vmem:[#allocation6 + $0x100] sm:$0xff] }
  0x7a   :  { %3910 = vmatpush3.msra.mxu0 %v5378_v8  ;;  %1005 = vmatprep.subr.mxu1 %v5062_v24  ;;  %v5412_v24 = vld [vmem:[#allocation6 + $0xe8] sm:$0xff] }
  0x7b   :  { %3911 = vmatprep.subr.mxu0 %v7189_v0  ;;  %983 = vperm.xlu0 %4445, %v5385_v21  }
  0x7c   :  { %3912 = vmatpush3.msra.mxu0 %v5389_v14  ;;  %1006 = vmatpush1.msra.mxu1 %v5066_v25  ;;  %v5419_v25 = vld [vmem:[%s7156_s1 + $0x18] sm:$0xff] }
  0x7d   :  { %3913 = vmatprep.subr.mxu0 %v7189_v0  ;;  %1007 = vmatprep.subr.mxu1 %v5072_v27  ;;  %v5423_v27 = vld [vmem:[#allocation6 + $0xd0] sm:$0xff] }
  0x7e   :  { %3914 = vmatpush3.msra.mxu0 %v5395_v20  ;;  %1008 = vmatpush1.msra.mxu1 %v5075_v28  ;;  %v5429_v28 = vld [vmem:[#allocation6 + $0xb8] sm:$0xff] }
  0x7f   :  { %3915 = vmatprep.subr.mxu0 %v7189_v0  ;;  %1695 = vperm.xlu0 %4445, %v5402_v12  }
  0x80   :  { %3916 = vmatpush3.msra.mxu0 %v5406_v23  ;;  %1009 = vmatprep.subr.mxu1 %v5079_v29  ;;  %v5436_v29 = vld [vmem:[%s7156_s1 + $0x20] sm:$0xff] }
  0x81   :  { %3917 = vmatprep.subr.mxu0 %v7189_v0  ;;  %1010 = vmatpush1.msra.mxu1 %v5085_v30  ;;  %v5440_v30 = vld [vmem:[#allocation6 + $0xa0] sm:$0xff] }
  0x82   :  { %3918 = vmatpush3.msra.mxu0 %v5412_v24  ;;  %1011 = vmatprep.subr.mxu1 %v5091_v32  ;;  %v5446_v32 = vld [vmem:[#allocation6 + $0x88] sm:$0xff] }
  0x83   :  { %3919 = vmatprep.subr.mxu0 %v7189_v0  ;;  %2057 = vperm.xlu0 %4445, %v5419_v25  }
  0x84   :  { %3920 = vmatpush3.msra.mxu0 %v5423_v27  ;;  %1012 = vmatpush1.msra.mxu1 %v5094_v33  ;;  %v5453_v33 = vld [vmem:[%s7156_s1 + $0x28] sm:$0xff] }
  0x85   :  { %3921 = vmatprep.subr.mxu0 %v7189_v0  ;;  %1013 = vmatprep.subr.mxu1 %v5098_v34  ;;  %v5457_v34 = vld [vmem:[#allocation6 + $0x70] sm:$0xff] }
  0x86   :  { %3922 = vmatpush3.msra.mxu0 %v5429_v28  ;;  %1014 = vmatpush1.msra.mxu1 %v5104_v35  ;;  %v5463_v35 = vld [vmem:[#allocation6 + $0x58] sm:$0xff] }
  0x87   :  { %3923 = vmatprep.subr.mxu0 %v7189_v0  ;;  %2411 = vperm.xlu0 %4445, %v5436_v29  }
  0x88   :  { %3924 = vmatpush3.msra.mxu0 %v5440_v30  ;;  %1015 = vmatprep.subr.mxu1 %v5108_v36  ;;  %v5470_v36 = vld [vmem:[%s7156_s1 + $0x30] sm:$0xff] }
  0x89   :  { %3925 = vmatprep.subr.mxu0 %v7189_v0  ;;  %1016 = vmatpush1.msra.mxu1 %v5111_v37  ;;  %v5474_v37 = vld [vmem:[#allocation6 + $0x40] sm:$0xff] }
  0x8a   :  { %3926 = vmatpush3.msra.mxu0 %v5446_v32  ;;  %1017 = vmatprep.subr.mxu1 %v5115_v38  ;;  %v5480_v38 = vld [vmem:[#allocation6 + $0x28] sm:$0xff] }
  0x8b   :  { %3927 = vmatprep.subr.mxu0 %v7189_v0  ;;  %2763 = vperm.xlu0 %4445, %v5453_v33  }
  0x8c   :  { %3928 = vmatpush3.msra.mxu0 %v5457_v34  ;;  %1018 = vmatpush1.msra.mxu1 %v5121_v39  ;;  %v5486_v39 = vld [vmem:[#allocation6 + $0x10] sm:$0xff] }
  0x8d   :  { %3929 = vmatprep.subr.mxu0 %v7189_v0  ;;  %1019 = vmatprep.subr.mxu1 %v5127_v41  ;;  %v81_v41 = vld [vmem:[%s7158_s3] sm:$0x3f] }
  0x8e   :  { %3930 = vmatpush3.msra.mxu0 %v5463_v35  ;;  %1020 = vmatpush1.msra.mxu1 %v5130_v42 }
  0x8f   :  { %3931 = vmatprep.subr.mxu0 %v7189_v0  ;;  %3115 = vperm.xlu0 %4445, %v5470_v36  }
  0x90   :  { %3932 = vmatpush3.msra.mxu0 %v5474_v37  ;;  %1021 = vmatprep.subr.mxu1 %v5135_v43 }
  0x91   :  { %3933 = vmatprep.subr.mxu0 %v7189_v0  ;;  %1022 = vmatpush1.msra.mxu1 %v5141_v44 }
  0x92   :  { %3934 = vmatpush3.msra.mxu0 %v5480_v38  ;;  %1023 = vmatprep.subr.mxu1 %v5147_v46 }
  0x93   :  { %3935 = vmatprep.subr.mxu0 %v7189_v0  ;;  %3467 = vperm.xlu0 %4445, %v5385_v21  }
  0x94   :  { %3936 = vmatpush3.msra.mxu0 %v5486_v39  ;;  %1024 = vmatpush1.msra.mxu1 %v5150_v47 }
  0x95   :  { %3938 = vmatmul.mubr.f32.vlgmr.msra.gmra.mxu0 %v7189_v0  ;;  %3940 = vmatprep.subr.mxu0 %v7189_v0 }
  0x96   :  { %3941 = vmatpush3.msra.mxu0 %v5068_v26  ;;  %1025 = vmatprep.subr.mxu1 %v5154_v48  ;;  %v83_v26 = vlaneseq }
  0x97   :  { %3942 = vmatprep.subr.mxu0 %v7189_v0  ;;  %1026 = vmatpush1.msra.mxu1 %v5160_v49 }
  0x98   :  { %3943 = vmatpush3.msra.mxu0 %v5087_v31  ;;  %1027 = vmatprep.subr.mxu1 %v5164_v50  ;;  %v84_v31 = vshrl.u32 %v83_v26, 7 }
  0x99   :  { %3944 = vmatprep.subr.mxu0 %v7189_v0  ;;  %1028 = vmatpush1.msra.mxu1 %v5167_v51 }
  0x9a   :  { %3945 = vmatpush3.msra.mxu0 %v5123_v40  ;;  %1029 = vmatprep.subr.mxu1 %v5171_v52  ;;  %v85_v40 = vsub.s32 0, %v84_v31  ;;  %v89_v42 = vsub.s32 1, %v84_v31 }
  0x9b   :  { %3946 = vmatprep.subr.mxu0 %v7189_v0  ;;  %1030 = vmatpush1.msra.mxu1 %v5177_v53 }
  0x9c   :  { %3947 = vmatpush3.msra.mxu0 %v5143_v45  ;;  %1031 = vmatprep.subr.mxu1 %v5183_v55  ;;  %v5546_v43 = vrot.slane %v81_v41, %v85_v40  ;;  %v5548_v44 = vrot.slane %v81_v41, %v89_v42  ;;  %v97_v42 = vsub.s32 3, %v84_v31 }
  0x9d   :  { %3948 = vmatprep.subr.mxu0 %v7189_v0  ;;  %1032 = vmatpush1.msra.mxu1 %v5186_v56 }
  0x9e   :  { %3949 = vmatpush3.msra.mxu0 %v5179_v54  ;;  %1033 = vmatprep.subr.mxu1 %v5191_v57 }
  0x9f   :  { %3950 = vmatprep.subr.mxu0 %v7189_v0  ;;  %1034 = vmatpush1.msra.mxu1 %v5197_v58 }
  0xa0   :  { %3951 = vmatpush3.msra.mxu0 %v5199_v59  ;;  %1067 = vmatprep.mubr.f32.mxu1 %v7189_v0 }
  0xa1   :  { %3952 = vmatprep.subr.mxu0 %v7189_v0  ;;  %3972 = vmatprep.mubr.msk.f32.mxu0 %vm4897_vm1, %v7189_v0 }
  0xa2   :  { %3953 = vmatpush3.msra.mxu0 %v5221_v2  ;;  %1165 = vmatprep.subr.mxu1 %v5203_v60 }
  0xa3   :  { %3954 = vmatprep.subr.mxu0 %v7189_v0 }
  0xa4   :  { %3955 = vmatpush3.msra.mxu0 %v5232_v5 }
  0xa5   :  { %3956 = vmatprep.subr.mxu0 %v7189_v0 }
  0xa6   :  { %3957 = vmatpush3.msra.mxu0 %v5250_v13 }
  0xa7   :  { %3958 = vmatprep.subr.mxu0 %v7189_v0 }
  0xa8   :  { %3959 = vmatpush3.msra.mxu0 %v5261_v17 }
  0xa9   :  { %3960 = vmatprep.subr.mxu0 %v7189_v0 }
  0xaa   :  { %3961 = vmatpush3.msra.mxu0 %v5279_v22 }
  0xab   :  { %3962 = vmatprep.subr.mxu0 %v7189_v0 }
  0xac   :  { %3963 = vmatpush3.msra.mxu0 %v5290_v19 }
  0xad   :  { %3964 = vmatprep.subr.mxu0 %v7189_v0 }
  0xae   :  { %3965 = vmatpush3.msra.mxu0 %v5308_v6 }
  0xaf   :  { %3966 = vmatprep.subr.mxu0 %v7189_v0 }
  0xb0   :  { %3967 = vmatpush3.msra.mxu0 %v5319_v10 }
  0xb1   :  { %3968 = vmatprep.subr.mxu0 %v7189_v0 }
  0xb2   :  { %3969 = vmatpush3.msra.mxu0 %v5335_v11 }
  0xb3   :  { %3970 = vmatprep.subr.mxu0 %v7189_v0 }
  0xb4   :  { %3971 = vmatpush3.msra.mxu0 %v5346_v16 }
  0xb5   :  { %3975 = vmatprep.subr.mxu0 %v7189_v0 }
  0xe4   :  { %v228_v45 = vpop.f32.mrf.mxu1 }
  0xe5   :  { %v5551_v46 = vadd.f32 %v228_v45, %v5546_v43 }
  0xe6   :  { %v230_v47 = vpop.f32.mrf.mxu1  ;;  %v5553_v48 = vpop.f32.mrf.mxu0 }
  0xe7   :  { %7362 = vst [vmem:[#allocation39_spill] sm:$0xff] %v5551_v46  ;;  %v5556_v49 = vadd.f32 %v230_v47, %v5548_v44  ;;  %v101_v47 = vsub.s32 4, %v84_v31 }
  0xe8   :  { %v234_v50 = vpop.f32.mrf.mxu1  ;;  %v5558_v51 = vpop.f32.mrf.mxu0 }
  0xe9   :  { %7363 = vst [vmem:[#allocation40_spill] sm:$0xff] %v5556_v49  ;;  %v5561_v52 = vadd.f32 %v234_v50, %v5546_v43 }
  0xea   :  { %v236_v53 = vpop.f32.mrf.mxu1  ;;  %v210_v54 = vpop.f32.mrf.mxu0 }
  0xeb   :  { %7364 = vst [vmem:[#allocation41_spill] sm:$0xff] %v5561_v52  ;;  %v5564_v55 = vadd.f32 %v236_v53, %v5548_v44  ;;  %v5567_v56 = vadd.f32 %v210_v54, %v5546_v43  ;;  %v5595_v52 = vrot.slane %v81_v41, %v101_v47 }
  0xec   :  { %v240_v57 = vpop.f32.mrf.mxu1  ;;  %v212_v58 = vpop.f32.mrf.mxu0 }
  0xed   :  { %7365 = vst [vmem:[#allocation42_spill] sm:$0xff] %v5564_v55  ;;  %v5570_v59 = vadd.f32 %v240_v57, %v5546_v43  ;;  %v5573_v60 = vadd.f32 %v212_v58, %v5548_v44  ;;  %v105_v58 = vsub.s32 5, %v84_v31 }
  0xee   :  { %v242_v21 = vpop.f32.mrf.mxu1  ;;  %v216_v26 = vpop.f32.mrf.mxu0 }
  0xef   :  { %7366 = vst [vmem:[#allocation43_spill] sm:$0xff] %v5570_v59  ;;  %v5576_v40 = vadd.f32 %v242_v21, %v5548_v44  ;;  %v5579_v45 = vadd.f32 %v216_v26, %v5546_v43  ;;  %v93_v59 = vsub.s32 2, %v84_v31 }
  0xf0   :  { %v246_v50 = vpop.f32.mrf.mxu1  ;;  %v218_v53 = vpop.f32.mrf.mxu0 }
  0xf1   :  { %7367 = vst [vmem:[#allocation44_spill] sm:$0xff] %v5576_v40  ;;  %7368 = vst [vmem:[#allocation45_spill] sm:$0xff] %v5579_v45  ;;  %v5582_v54 = vadd.f32 %v246_v50, %v5546_v43  ;;  %v5585_v57 = vadd.f32 %v218_v53, %v5548_v44  ;;  %v5590_v40 = vrot.slane %v81_v41, %v97_v42  ;;  %v3561_v50 = vld [vmem:[%s7156_s1 + $0x8] sm:$0xff] }
  0xf2   :  { %v248_v0 = vpop.f32.mrf.mxu1  ;;  %v222_v55 = vpop.f32.mrf.mxu0  ;;  %1333 = vperm.xlu1 %4446, %v3561_v50   ;;  %v5607_v49 = vrot.slane %v81_v41, %v93_v59 }
  0xf3   :  { %7369 = vst [vmem:[#allocation46_spill] sm:$0xff] %v5582_v54  ;;  %7370 = vst [vmem:[#allocation47_spill] sm:$0xff] %v5585_v57  ;;  %v5588_v21 = vadd.f32 %v248_v0, %v5548_v44  ;;  %v5593_v26 = vadd.f32 %v222_v55, %v5546_v43  ;;  %v5605_v0 = vrot.slane %v81_v41, %v105_v58 }
  0xf4   :  { %v5600_v53 = vpop.f32.mrf.mxu1  ;;  %v224_v54 = vpop.f32.mrf.mxu0 }
  0xf5   :  { %7371 = vst [vmem:[#allocation48_spill] sm:$0xff] %v5588_v21  ;;  %7372 = vst [vmem:[#allocation49_spill] sm:$0xff] %v5593_v26  ;;  %v5603_v31 = vadd.f32 %v224_v54, %v5548_v44 }
  0xf6   :  { %v319_v42 = vpop.f32.mrf.mxu1  ;;  %v430_v21 = vpop.f32.mrf.mxu0  ;;  %1341 = vperm.xlu1 %4446, %v5470_v36  }
  0xf7   :  { %7373 = vst [vmem:[#allocation50_spill] sm:$0xff] %v5603_v31  ;;  %v5610_v55 = vadd.f32 %v319_v42, %v5590_v40  ;;  %v5613_v47 = vadd.f32 %v430_v21, %v5595_v52 }
  0xf8   :  { %v323_v46 = vpop.f32.mrf.mxu1  ;;  %v432_v26 = vpop.f32.mrf.mxu0 }
  0xf9   :  { %7374 = vst [vmem:[#allocation51_spill] sm:$0xff] %v5610_v55  ;;  %7375 = vst [vmem:[#allocation52_spill] sm:$0xff] %v5613_v47  ;;  %v5617_v57 = vadd.f32 %v323_v46, %v5607_v49  ;;  %v5620_v54 = vadd.f32 %v432_v26, %v5605_v0 }
  0xfa   :  { %v325_v58 = vpop.f32.mrf.mxu1  ;;  %1703 = vperm.xlu1 %4446, %v5453_v33  }
  0xfb   :  { %7376 = vst [vmem:[#allocation53_spill] sm:$0xff] %v5620_v54  ;;  %v5623_v41 = vadd.f32 %v325_v58, %v5590_v40 }
  0xfc   :  { %v329_v59 = vpop.f32.mrf.mxu1 }
  0xfd   :  { %7377 = vst [vmem:[#allocation54_spill] sm:$0xff] %v5623_v41  ;;  %v5627_v21 = vadd.f32 %v329_v59, %v5607_v49 }
  0xfe   :  { %v331_v42 = vpop.f32.mrf.mxu1  ;;  %2065 = vperm.xlu1 %4446, %v5436_v29  }
  0xff   :  { %7378 = vst [vmem:[#allocation55_spill] sm:$0xff] %v5627_v21  ;;  %v5630_v47 = vadd.f32 %v331_v42, %v5590_v40 }
 0x100   :  { %v335_v36 = vpop.f32.mrf.mxu1 }
 0x101   :  { %7379 = vst [vmem:[#allocation56_spill] sm:$0xff] %v5630_v47  ;;  %v5634_v46 = vadd.f32 %v335_v36, %v5607_v49 }
 0x102   :  { %v337_v26 = vpop.f32.mrf.mxu1  ;;  %v436_v54 = vpop.f32.mrf.mxu0  ;;  %2418 = vperm.xlu1 %4446, %v5419_v25  }
 0x103   :  { %7380 = vst [vmem:[#allocation57_spill] sm:$0xff] %v5634_v46  ;;  %v5637_v58 = vadd.f32 %v337_v26, %v5590_v40  ;;  %v5640_v33 = vadd.f32 %v436_v54, %v5595_v52 }
 0x104   :  { %v341_v59 = vpop.f32.mrf.mxu1  ;;  %v438_v55 = vpop.f32.mrf.mxu0 }
 0x105   :  { %7381 = vst [vmem:[#allocation58_spill] sm:$0xff] %v5637_v58  ;;  %7382 = vst [vmem:[#allocation59_spill] sm:$0xff] %v5640_v33  ;;  %v5644_v42 = vadd.f32 %v341_v59, %v5607_v49  ;;  %v5647_v29 = vadd.f32 %v438_v55, %v5605_v0 }
 0x106   :  { %v343_v36 = vpop.f32.mrf.mxu1  ;;  %2770 = vperm.xlu1 %4446, %v5402_v12  }
 0x107   :  { %7383 = vst [vmem:[#allocation60_spill] sm:$0xff] %v5644_v42  ;;  %7384 = vst [vmem:[#allocation61_spill] sm:$0xff] %v5647_v29  ;;  %v5650_v41 = vadd.f32 %v343_v36, %v5590_v40 }
 0x108   :  { %v347_v47 = vpop.f32.mrf.mxu1 }
 0x109   :  { %7385 = vst [vmem:[#allocation62_spill] sm:$0xff] %v5650_v41  ;;  %v5654_v54 = vadd.f32 %v347_v47, %v5607_v49 }
 0x10a   :  { %v349_v26 = vpop.f32.mrf.mxu1  ;;  %3122 = vperm.xlu1 %4446, %v3561_v50  }
 0x10b   :  { %7386 = vst [vmem:[#allocation63_spill] sm:$0xff] %v5654_v54  ;;  %v5657_v33 = vadd.f32 %v349_v26, %v5590_v40 }
 0x10c   :  { %v353_v25 = vpop.f32.mrf.mxu1 }
 0x10d   :  { %7387 = vst [vmem:[#allocation64_spill] sm:$0xff] %v5657_v33  ;;  %v5660_v59 = vadd.f32 %v353_v25, %v5607_v49 }
 0x10e   :  { %v355_v55 = vpop.f32.mrf.mxu1  ;;  %v442_v29 = vpop.f32.mrf.mxu0  ;;  %3474 = vperm.xlu1 %4446, %v5368_v15  }
 0x10f   :  { %7388 = vst [vmem:[#allocation65_spill] sm:$0xff] %v5660_v59  ;;  %v5663_v36 = vadd.f32 %v355_v55, %v5590_v40  ;;  %v5666_v42 = vadd.f32 %v442_v29, %v5595_v52  ;;  %v205_v59 = vadd.f32 %v5553_v48, %v5546_v43  ;;  %v207_v43 = vadd.f32 %v5558_v51, %v5548_v44 }
 0x110   :  { %v359_v12 = vpop.f32.mrf.mxu1  ;;  %v444_v47 = vpop.f32.mrf.mxu0 }
 0x111   :  { %7389 = vst [vmem:[#allocation66_spill] sm:$0xff] %v5666_v42  ;;  %v5670_v26 = vadd.f32 %v359_v12, %v5607_v49  ;;  %v5673_v50 = vadd.f32 %v444_v47, %v5605_v0 }
 0x112   :  { %v361_v25 = vpop.f32.mrf.mxu1 }
 0x113   :  { %7390 = vst [vmem:[#allocation67_spill] sm:$0xff] %v5670_v26  ;;  %7391 = vst [vmem:[#allocation68_spill] sm:$0xff] %v5673_v50 }
 0x114   :  { %v701_v54 = vpop.f32.mrf.mxu1 }
 0x115   :  { %v776_v55 = vadd.f32 %v701_v54, %v205_v59 }
 0x116   :  { %v703_v26 = vpop.f32.mrf.mxu1 }
 0x117   :  { %v3550_v58 = vmul.f32 -1.442695, %v776_v55  ;;  %v448_v46 = vpop.f32.mrf.mxu0  ;;  %v783_v54 = vadd.f32 %v703_v26, %v207_v43 }
 0x118   :  { %v5678_v29 = vadd.f32 %v448_v46, %v5595_v52 }
 0x119   :  { %4447 = vpow2.f32 %v3550_v58  ;;  %v450_v42 = vpop.f32.mrf.mxu0  ;;  %v3551_v55 = vmul.f32 -1.442695, %v783_v54  ;;  %v5706_v54 = vld [vmem:[%s7160_s5] ss:$0 sm:$0xff] }
 0x11a   :  { %7392 = vst [vmem:[#allocation69_spill] sm:$0xff] %v5678_v29  ;;  %v5681_v15 = vadd.f32 %v450_v42, %v5605_v0 }
 0x11c   :  { %7393 = vst [vmem:[#allocation70_spill] sm:$0xff] %v5681_v15 }
 0x11d   :  { %v454_v12 = vpop.f32.mrf.mxu0 }
 0x11e   :  { %v5684_v47 = vadd.f32 %v454_v12, %v5595_v52 }
 0x11f   :  { %v456_v50 = vpop.f32.mrf.mxu0 }
 0x120   :  { %7394 = vst [vmem:[#allocation71_spill] sm:$0xff] %v5684_v47  ;;  %v5689_v48 = vadd.f32 %v456_v50, %v5605_v0 }
 0x122   :  { %7395 = vst [vmem:[#allocation72_spill] sm:$0xff] %v5689_v48 }
 0x123   :  { %v460_v46 = vpop.f32.mrf.mxu0 }
 0x124   :  { %v5692_v58 = vadd.f32 %v460_v46, %v5595_v52  ;;  %v362_v46 = vadd.f32 %v361_v25, %v5590_v40 }
 0x125   :  { %v462_v59 = vpop.f32.mrf.mxu0 }
 0x126   :  { %7396 = vst [vmem:[#allocation73_spill] sm:$0xff] %v5692_v58  ;;  %v4448_v42 = vpop.eup %4447  ;;  %v5695_v15 = vadd.f32 %v462_v59, %v5605_v0 }
 0x127   :  { %v780_v12 = vadd.f32 1.0, %v4448_v42 }
 0x128   :  { %7397 = vst [vmem:[#allocation74_spill] sm:$0xff] %v5695_v15 }
 0x129   :  { %4449 = vrcp.f32 %v780_v12  ;;  %v466_v29 = vpop.f32.mrf.mxu0 }
 0x12a   :  { %4451 = vpow2.f32 %v3551_v55  ;;  %v5698_v44 = vadd.f32 %v466_v29, %v5595_v52 }
 0x12b   :  { %v468_v51 = vpop.f32.mrf.mxu0 }
 0x12c   :  { %v5701_v26 = vadd.f32 %v468_v51, %v5605_v0  ;;  %v318_v51 = vadd.f32 %v5600_v53, %v5607_v49 }
 0x12f   :  { %v472_v50 = vpop.f32.mrf.mxu0 }
 0x130   :  { %v473_v40 = vadd.f32 %v472_v50, %v5595_v52  ;;  %v5723_v52 = vld [vmem:[%s7162_s7] ss:$0 sm:$0xff]  ;;  %v7404_v50 = vld [vmem:[#allocation20_spill] sm:$0xff] }
 0x131   :  { %v474_v43 = vpop.f32.mrf.mxu0 }
 0x135   :  { %v772_v59 = vpop.f32.mrf.mxu0  ;;  %v869_v42 = vpop.f32.mrf.mxu1 }
 0x136   :  { %v4450_v12 = vpop.eup %4449  ;;  %v796_v55 = vadd.f32 %v5706_v54, %v772_v59  ;;  %v944_v29 = vadd.f32 %v869_v42, %v362_v46 }
 0x137   :  { %v4452_v48 = vpop.eup %4451  ;;  %v3904_v47 = vpop.f32.mrf.mxu0 }
 0x138   :  { %v797_v41 = vmul.f32 %v4450_v12, %v796_v55  ;;  %v3553_v31 = vmul.f32 -1.442695, %v944_v29  ;;  %v787_v15 = vadd.f32 1.0, %v4452_v48  ;;  %v871_v21 = vpop.f32.mrf.mxu1  ;;  %v977_v12 = vpop.permute.xlu0 %976  ;;  %v7406_v55 = vld [vmem:[#allocation22_spill] sm:$0xff]  ;;  %v7407_v29 = vld [vmem:[#allocation23_spill] sm:$0xff] }
 0x139   :  { %v951_v25 = vadd.f32 %v871_v21, %v473_v40  ;;  %v7409_v40 = vld [vmem:[#allocation25_spill] sm:$0xff] }
 0x13a   :  { %v798_v58 = vadd.f32 %v797_v41, %v318_v51  ;;  %4453 = vpow2.f32 %v3553_v31  ;;  %v7408_v51 = vld [vmem:[#allocation24_spill] sm:$0xff] }
 0x13b   :  { %v3554_v33 = vmul.f32 -1.442695, %v951_v25  ;;  %v7410_v25 = vld [vmem:[#allocation26_spill] sm:$0xff] }
 0x13c   :  { %4455 = vtanh.f32 %v798_v58  ;;  %v7399_v58 = vld [vmem:[#allocation15_spill] sm:$0xff] }
 0x13d   :  { %4457 = vrcp.f32 %v787_v15 }
 0x13e   :  { %4459 = vpow2.f32 %v3554_v33 }
 0x147   :  { %v4454_v45 = vpop.eup %4453 }
 0x148   :  { %v948_v59 = vadd.f32 1.0, %v4454_v45  ;;  %v7398_v45 = vmov 0.0  }
 0x149   :  { %v4456_v46 = vpop.eup %4455 }
 0x14a   :  { %v800_v47 = vsub.f32 0.0, %v4456_v46  ;;  %4461 = vrcp.f32 %v948_v59  ;;  %v4458_v42 = vpop.eup %4457  ;;  %v7411_v59 = vld [vmem:[#allocation27_spill] sm:$0xff] }
 0x14b   :  { %v4460_v41 = vpop.eup %4459 }
 0x14c   :  { %v801_v49 = vmul.f32 %v4458_v42, %v800_v47  ;;  %v7413_v47 = vld [vmem:[#allocation29_spill] sm:$0xff] }
 0x14e   :  { %v802_v53 = vadd.f32 %v4456_v46, %v801_v49  ;;  %v7412_v46 = vld [vmem:[#allocation28_spill] sm:$0xff]  ;;  %v7414_v49 = vld [vmem:[#allocation30_spill] sm:$0xff] }
 0x150   :  { %v5713_v48 = vmul.f32 %v977_v12, %v802_v53  ;;  %v7415_v12 = vld [vmem:[#allocation31_spill] sm:$0xff] }
 0x152   :  { %980 = vst [vmem:[#allocation8] sm:$0xff] %v5713_v48  ;;  %1068 = vmatmul.mubr.f32.vlgmr.msra.gmra.mxu1 %v5713_v48  ;;  %3973 = vmatmul.mubr.f32.vlgmr.msra.gmra.mxu0 %v5713_v48 }
 0x153   :  { %1166 = vmatpush1.msra.mxu1 %v5206_v61  ;;  %3976 = vmatpush3.msra.mxu0 %v5361_v18 }
 0x154   :  { %1167 = vmatprep.subr.mxu1 %v5210_v62  ;;  %3977 = vmatprep.subr.mxu0 %v7398_v45  ;;  %v475_v62 = vadd.f32 %v474_v43, %v5605_v0  ;;  %v7401_v0 = vld [vmem:[#allocation17_spill] sm:$0xff] }
 0x155   :  { %v940_v31 = vpop.f32.mrf.mxu0  ;;  %1168 = vmatpush1.msra.mxu1 %v5215_v63  ;;  %3978 = vmatpush3.msra.mxu0 %v5372_v9  ;;  %v955_v63 = vadd.f32 1.0, %v4460_v41  ;;  %v7405_v43 = vld [vmem:[#allocation21_spill] sm:$0xff]  ;;  %v7416_v41 = vld [vmem:[#allocation32_spill] sm:$0xff] }
 0x156   :  { %v964_v21 = vadd.f32 %v5723_v52, %v940_v31  ;;  %1169 = vmatprep.subr.mxu1 %v5218_v1  ;;  %3979 = vmatprep.subr.mxu0 %v7398_v45 }
 0x157   :  { %v4462_v61 = vpop.eup %4461  ;;  %v3939_v33 = vpop.f32.mrf.mxu0  ;;  %1170 = vmatpush1.msra.mxu1 %v5224_v3  ;;  %3980 = vmatpush3.msra.mxu0 %v5378_v8  ;;  %v7400_v3 = vld [vmem:[#allocation16_spill] sm:$0xff] }
 0x158   :  { %v965_v15 = vmul.f32 %v4462_v61, %v964_v21  ;;  %1171 = vmatprep.subr.mxu1 %v5228_v4  ;;  %3981 = vmatprep.subr.mxu0 %v7398_v45  ;;  %v7402_v4 = vld [vmem:[#allocation18_spill] sm:$0xff]  ;;  %v7417_v61 = vld [vmem:[#allocation33_spill] sm:$0xff] }
 0x159   :  { %1172 = vmatpush1.msra.mxu1 %v5235_v7  ;;  %3982 = vmatpush3.msra.mxu0 %v5389_v14  ;;  %v7403_v7 = vld [vmem:[#allocation19_spill] sm:$0xff]  ;;  %v7418_v33 = vld [vmem:[#allocation34_spill] sm:$0xff] }
 0x15a   :  { %v966_v1 = vadd.f32 %v965_v15, %v475_v62  ;;  %1173 = vmatprep.subr.mxu1 %v7399_v58  ;;  %3983 = vmatprep.subr.mxu0 %v7398_v45  ;;  %v7419_v15 = vld [vmem:[#allocation35_spill] sm:$0xff]  ;;  %v7421_v58 = vld [vmem:[#allocation37_spill] sm:$0xff] }
 0x15b   :  { %1174 = vmatpush1.msra.mxu1 %v7400_v3  ;;  %3984 = vmatpush3.msra.mxu0 %v5395_v20 }
 0x15c   :  { %4463 = vtanh.f32 %v966_v1  ;;  %1175 = vmatprep.subr.mxu1 %v7401_v0  ;;  %3985 = vmatprep.subr.mxu0 %v7398_v45  ;;  %v7420_v1 = vld [vmem:[#allocation36_spill] sm:$0xff]  ;;  %v7422_v0 = vld [vmem:[#allocation38_spill] sm:$0xff] }
 0x15d   :  { %1176 = vmatpush1.msra.mxu1 %v7402_v4  ;;  %3986 = vmatpush3.msra.mxu0 %v5406_v23  ;;  %4465 = vrcp.f32 %v955_v63  ;;  %v984_v63 = vpop.permute.xlu0 %983  ;;  %v5795_v4 = vld [vmem:[#allocation3 + $0x170] sm:$0xff] }
 0x15e   :  { %1177 = vmatprep.subr.mxu1 %v7403_v7  ;;  %3987 = vmatprep.subr.mxu0 %v7398_v45  ;;  %v5799_v7 = vld [vmem:[#allocation3 + $0x168] sm:$0xff] }
 0x15f   :  { %1178 = vmatpush1.msra.mxu1 %v7404_v50  ;;  %3988 = vmatpush3.msra.mxu0 %v5412_v24  ;;  %v5802_v50 = vld [vmem:[#allocation3 + $0x178] sm:$0xff] }
 0x160   :  { %1179 = vmatprep.subr.mxu1 %v7405_v43  ;;  %3989 = vmatprep.subr.mxu0 %v7398_v45  ;;  %v5805_v43 = vld [vmem:[#allocation3 + $0x158] sm:$0xff] }
 0x161   :  { %1180 = vmatpush1.msra.mxu1 %v7406_v55  ;;  %3990 = vmatpush3.msra.mxu0 %v5423_v27  ;;  %v5809_v55 = vld [vmem:[#allocation3 + $0x150] sm:$0xff] }
 0x162   :  { %1181 = vmatprep.subr.mxu1 %v7407_v29  ;;  %3991 = vmatprep.subr.mxu0 %v7398_v45  ;;  %v5812_v29 = vld [vmem:[#allocation3 + $0x160] sm:$0xff] }
 0x163   :  { %1182 = vmatpush1.msra.mxu1 %v7408_v51  ;;  %3992 = vmatpush3.msra.mxu0 %v5429_v28  ;;  %v5815_v51 = vld [vmem:[#allocation3 + $0x140] sm:$0xff] }
 0x164   :  { %1183 = vmatprep.subr.mxu1 %v7409_v40  ;;  %3993 = vmatprep.subr.mxu0 %v7398_v45  ;;  %v5819_v40 = vld [vmem:[#allocation3 + $0x138] sm:$0xff] }
 0x165   :  { %1184 = vmatpush1.msra.mxu1 %v7410_v25  ;;  %3994 = vmatpush3.msra.mxu0 %v5440_v30  ;;  %v5822_v25 = vld [vmem:[#allocation3 + $0x148] sm:$0xff] }
 0x166   :  { %1185 = vmatprep.subr.mxu1 %v7411_v59  ;;  %3995 = vmatprep.subr.mxu0 %v7398_v45  ;;  %7423 = vst [vmem:[#allocation15_spill] sm:$0xff] %v5822_v25  ;;  %v5825_v59 = vld [vmem:[#allocation3 + $0x128] sm:$0xff] }
 0x167   :  { %1186 = vmatpush1.msra.mxu1 %v7412_v46  ;;  %3996 = vmatpush3.msra.mxu0 %v5446_v32  ;;  %7424 = vst [vmem:[#allocation16_spill] sm:$0xff] %v5825_v59  ;;  %v5829_v46 = vld [vmem:[#allocation3 + $0x120] sm:$0xff] }
 0x168   :  { %1187 = vmatprep.subr.mxu1 %v7413_v47  ;;  %3997 = vmatprep.subr.mxu0 %v7398_v45  ;;  %7425 = vst [vmem:[#allocation17_spill] sm:$0xff] %v5829_v46  ;;  %v5832_v47 = vld [vmem:[#allocation3 + $0x130] sm:$0xff] }
 0x169   :  { %v4464_v42 = vpop.eup %4463  ;;  %1188 = vmatpush1.msra.mxu1 %v7414_v49  ;;  %3998 = vmatpush3.msra.mxu0 %v5457_v34  ;;  %7426 = vst [vmem:[#allocation18_spill] sm:$0xff] %v5832_v47  ;;  %v5839_v49 = vld [vmem:[#allocation3 + $0x108] sm:$0xff] }
 0x16a   :  { %v968_v53 = vsub.f32 0.0, %v4464_v42  ;;  %1189 = vmatprep.subr.mxu1 %v7415_v12  ;;  %3999 = vmatprep.subr.mxu0 %v7398_v45  ;;  %v4466_v31 = vpop.eup %4465  ;;  %7428 = vst [vmem:[#allocation20_spill] sm:$0xff] %v5839_v49  ;;  %v5845_v12 = vld [vmem:[#allocation3 + $0xf8] sm:$0xff] }
 0x16b   :  { %1190 = vmatpush1.msra.mxu1 %v7416_v41  ;;  %4000 = vmatpush3.msra.mxu0 %v5463_v35  ;;  %7430 = vst [vmem:[#allocation22_spill] sm:$0xff] %v5845_v12  ;;  %v5852_v41 = vld [vmem:[#allocation3 + $0x100] sm:$0xff] }
 0x16c   :  { %v969_v21 = vmul.f32 %v4466_v31, %v968_v53  ;;  %1191 = vmatprep.subr.mxu1 %v7417_v61  ;;  %4001 = vmatprep.subr.mxu0 %v7398_v45  ;;  %v5842_v53 = vld [vmem:[#allocation3 + $0x118] sm:$0xff]  ;;  %v5849_v31 = vld [vmem:[#allocation3 + $0xf0] sm:$0xff]  ;;  %7432 = vst [vmem:[#allocation24_spill] sm:$0xff] %v5852_v41 }
 0x16d   :  { %1192 = vmatpush1.msra.mxu1 %v7418_v33  ;;  %4002 = vmatpush3.msra.mxu0 %v5474_v37  ;;  %7429 = vst [vmem:[#allocation21_spill] sm:$0xff] %v5842_v53  ;;  %7431 = vst [vmem:[#allocation23_spill] sm:$0xff] %v5849_v31  ;;  %v5859_v61 = vld [vmem:[#allocation3 + $0xd8] sm:$0xff]  ;;  %v5863_v33 = vld [vmem:[#allocation3 + $0xc8] sm:$0xff] }
 0x16e   :  { %v970_v62 = vadd.f32 %v4464_v42, %v969_v21  ;;  %1193 = vmatprep.subr.mxu1 %v7419_v15  ;;  %4003 = vmatprep.subr.mxu0 %v7398_v45  ;;  %v5835_v42 = vld [vmem:[#allocation3 + $0x110] sm:$0xff]  ;;  %v5855_v21 = vld [vmem:[#allocation3 + $0xe0] sm:$0xff]  ;;  %7434 = vst [vmem:[#allocation26_spill] sm:$0xff] %v5859_v61  ;;  %7435 = vst [vmem:[#allocation27_spill] sm:$0xff] %v5863_v33 }
 0x16f   :  { %1194 = vmatpush1.msra.mxu1 %v7420_v1  ;;  %4004 = vmatpush3.msra.mxu0 %v5480_v38  ;;  %7427 = vst [vmem:[#allocation19_spill] sm:$0xff] %v5835_v42  ;;  %7433 = vst [vmem:[#allocation25_spill] sm:$0xff] %v5855_v21  ;;  %v5871_v15 = vld [vmem:[#allocation3 + $0xb0] sm:$0xff] }
 0x170   :  { %1195 = vmatprep.subr.mxu1 %v7421_v58  ;;  %4005 = vmatprep.subr.mxu0 %v7398_v45  ;;  %v5785_v3 = vmul.f32 %v984_v63, %v970_v62  ;;  %v5867_v62 = vld [vmem:[#allocation3 + $0xc0] sm:$0xff]  ;;  %7437 = vst [vmem:[#allocation29_spill] sm:$0xff] %v5871_v15  ;;  %v5875_v63 = vld [vmem:[#allocation3 + $0xa8] sm:$0xff]  ;;  %v5883_v1 = vld [vmem:[#allocation3 + $0x90] sm:$0xff] }
 0x171   :  { %1196 = vmatpush1.msra.mxu1 %v7422_v0  ;;  %1229 = vmatprep.mubr.f32.mxu1 %v7398_v45  ;;  %7436 = vst [vmem:[#allocation28_spill] sm:$0xff] %v5867_v62  ;;  %7438 = vst [vmem:[#allocation30_spill] sm:$0xff] %v5875_v63  ;;  %v5891_v58 = vld [vmem:[#allocation3 + $0x78] sm:$0xff]  ;;  %v5899_v0 = vld [vmem:[#allocation3 + $0x60] sm:$0xff] }
 0x172   :  { %4006 = vmatpush3.msra.mxu0 %v5486_v39  ;;  %4007 = vmatprep.mubr.msk.f32.mxu0 %vm4897_vm1, %v7398_v45  ;;  %988 = vst [vmem:[#allocation8 + $0x78] sm:$0xff] %v5785_v3  ;;  %7440 = vst [vmem:[#allocation32_spill] sm:$0xff] %v5883_v1 }
 0x173   :  { %1230 = vmatmul.mubr.f32.vlgmr.msra.gmra.mxu1 %v5785_v3  ;;  %4008 = vmatmul.mubr.f32.vlgmr.msra.gmra.mxu0 %v5785_v3  ;;  %7442 = vst [vmem:[#allocation34_spill] sm:$0xff] %v5891_v58  ;;  %7444 = vst [vmem:[#allocation36_spill] sm:$0xff] %v5899_v0 }
 0x174   :  { %1365 = vmatprep.subr.mxu1 %v5795_v4  ;;  %4010 = vmatprep.subr.mxu0 %v7398_v45 }
 0x175   :  { %1366 = vmatpush1.msra.mxu1 %v5799_v7  ;;  %4011 = vmatpush3.msra.mxu0 %v5802_v50 }
 0x176   :  { %1367 = vmatprep.subr.mxu1 %v5805_v43  ;;  %4012 = vmatprep.subr.mxu0 %v7398_v45 }
 0x177   :  { %1368 = vmatpush1.msra.mxu1 %v5809_v55  ;;  %4013 = vmatpush3.msra.mxu0 %v5812_v29 }
 0x178   :  { %1369 = vmatprep.subr.mxu1 %v5815_v51  ;;  %4014 = vmatprep.subr.mxu0 %v7398_v45 }
 0x179   :  { %1370 = vmatpush1.msra.mxu1 %v5819_v40  ;;  %4015 = vmatpush3.msra.mxu0 %v5822_v25 }
 0x17a   :  { %1371 = vmatprep.subr.mxu1 %v5825_v59  ;;  %4016 = vmatprep.subr.mxu0 %v7398_v45 }
 0x17b   :  { %1372 = vmatpush1.msra.mxu1 %v5829_v46  ;;  %4017 = vmatpush3.msra.mxu0 %v5832_v47 }
 0x17c   :  { %1373 = vmatprep.subr.mxu1 %v5835_v42  ;;  %4018 = vmatprep.subr.mxu0 %v7398_v45 }
 0x17d   :  { %1374 = vmatpush1.msra.mxu1 %v5839_v49  ;;  %4019 = vmatpush3.msra.mxu0 %v5842_v53 }
 0x17e   :  { %1375 = vmatprep.subr.mxu1 %v5845_v12  ;;  %4020 = vmatprep.subr.mxu0 %v7398_v45 }
 0x17f   :  { %1376 = vmatpush1.msra.mxu1 %v5849_v31  ;;  %4021 = vmatpush3.msra.mxu0 %v5852_v41 }
 0x180   :  { %1377 = vmatprep.subr.mxu1 %v5855_v21  ;;  %4022 = vmatprep.subr.mxu0 %v7398_v45 }
 0x181   :  { %1378 = vmatpush1.msra.mxu1 %v5859_v61  ;;  %4023 = vmatpush3.msra.mxu0 %v5221_v2  ;;  %v5879_v2 = vld [vmem:[#allocation3 + $0x98] sm:$0xff] }
 0x182   :  { %1379 = vmatprep.subr.mxu1 %v5863_v33  ;;  %4024 = vmatprep.subr.mxu0 %v7398_v45  ;;  %7439 = vst [vmem:[#allocation31_spill] sm:$0xff] %v5879_v2 }
 0x183   :  { %1380 = vmatpush1.msra.mxu1 %v5867_v62  ;;  %4025 = vmatpush3.msra.mxu0 %v5232_v5  ;;  %v5887_v5 = vld [vmem:[#allocation3 + $0x80] sm:$0xff] }
 0x184   :  { %1381 = vmatprep.subr.mxu1 %v5871_v15  ;;  %4026 = vmatprep.subr.mxu0 %v7398_v45  ;;  %7441 = vst [vmem:[#allocation33_spill] sm:$0xff] %v5887_v5 }
 0x185   :  { %1382 = vmatpush1.msra.mxu1 %v5875_v63  ;;  %4027 = vmatpush3.msra.mxu0 %v5250_v13  ;;  %v5895_v13 = vld [vmem:[#allocation3 + $0x68] sm:$0xff] }
 0x186   :  { %1383 = vmatprep.subr.mxu1 %v5879_v2  ;;  %4028 = vmatprep.subr.mxu0 %v7398_v45  ;;  %7443 = vst [vmem:[#allocation35_spill] sm:$0xff] %v5895_v13 }
 0x187   :  { %1384 = vmatpush1.msra.mxu1 %v5883_v1  ;;  %4029 = vmatpush3.msra.mxu0 %v5261_v17  ;;  %v5903_v17 = vld [vmem:[#allocation3 + $0x50] sm:$0xff] }
 0x188   :  { %1385 = vmatprep.subr.mxu1 %v5887_v5  ;;  %4030 = vmatprep.subr.mxu0 %v7398_v45  ;;  %7445 = vst [vmem:[#allocation37_spill] sm:$0xff] %v5903_v17 }
 0x189   :  { %1386 = vmatpush1.msra.mxu1 %v5891_v58  ;;  %4031 = vmatpush3.msra.mxu0 %v5279_v22  ;;  %v5907_v58 = vld [vmem:[#allocation3 + $0x48] sm:$0xff]  ;;  %v5911_v22 = vld [vmem:[#allocation3 + $0x38] sm:$0xff] }
 0x18a   :  { %1387 = vmatprep.subr.mxu1 %v5895_v13  ;;  %4032 = vmatprep.subr.mxu0 %v7398_v45  ;;  %7446 = vst [vmem:[#allocation38_spill] sm:$0xff] %v5907_v58  ;;  %7447 = vst [vmem:[#allocation75_spill] sm:$0xff] %v5911_v22 }
 0x18b   :  { %1388 = vmatpush1.msra.mxu1 %v5899_v0  ;;  %4033 = vmatpush3.msra.mxu0 %v5290_v19  ;;  %v5915_v0 = vld [vmem:[#allocation3 + $0x30] sm:$0xff]  ;;  %v5919_v19 = vld [vmem:[#allocation3 + $0x20] sm:$0xff] }
 0x18c   :  { %1389 = vmatprep.subr.mxu1 %v5903_v17  ;;  %4034 = vmatprep.subr.mxu0 %v7398_v45  ;;  %7448 = vst [vmem:[#allocation76_spill] sm:$0xff] %v5915_v0  ;;  %7449 = vst [vmem:[#allocation77_spill] sm:$0xff] %v5919_v19 }
 0x18d   :  { %1390 = vmatpush1.msra.mxu1 %v5907_v58  ;;  %4035 = vmatpush3.msra.mxu0 %v5308_v6  ;;  %v5923_v58 = vld [vmem:[#allocation3 + $0x18] sm:$0xff]  ;;  %v5927_v6 = vld [vmem:[#allocation3 + $0x8] sm:$0xff] }
 0x18e   :  { %1391 = vmatprep.subr.mxu1 %v5911_v22  ;;  %4036 = vmatprep.subr.mxu0 %v7398_v45  ;;  %7450 = vst [vmem:[#allocation78_spill] sm:$0xff] %v5923_v58  ;;  %7451 = vst [vmem:[#allocation79_spill] sm:$0xff] %v5927_v6 }
 0x18f   :  { %1392 = vmatpush1.msra.mxu1 %v5915_v0  ;;  %4037 = vmatpush3.msra.mxu0 %v5319_v10  ;;  %v5931_v0 = vld [vmem:[#allocation3] sm:$0xff]  ;;  %v5938_v10 = vld [vmem:[#allocation6 + $0x170] sm:$0xff] }
 0x190   :  { %1393 = vmatprep.subr.mxu1 %v5919_v19  ;;  %4038 = vmatprep.subr.mxu0 %v7398_v45  ;;  %7452 = vst [vmem:[#allocation80_spill] sm:$0xff] %v5931_v0  ;;  %7453 = vst [vmem:[#allocation81_spill] sm:$0xff] %v5938_v10 }
 0x191   :  { %1394 = vmatpush1.msra.mxu1 %v5923_v58  ;;  %4039 = vmatpush3.msra.mxu0 %v5335_v11 }
 0x192   :  { %1395 = vmatprep.subr.mxu1 %v5927_v6  ;;  %4040 = vmatprep.subr.mxu0 %v7398_v45 }
 0x193   :  { %1396 = vmatpush1.msra.mxu1 %v5931_v0  ;;  %4041 = vmatpush3.msra.mxu0 %v5346_v16 }
 0x194   :  { %1429 = vmatprep.mubr.f32.mxu1 %v7398_v45  ;;  %4042 = vmatprep.mubr.msk.f32.mxu0 %vm4897_vm1, %v7398_v45 }
 0x195   :  { %1527 = vmatprep.subr.mxu1 %v5938_v10  ;;  %4045 = vmatprep.subr.mxu0 %v7398_v45 }
 0x212   :  { %v1069_v11 = vpop.f32.mrf.mxu1  ;;  %v1140_v6 = vpop.f32.mrf.mxu0 }
 0x213   :  { %v1144_v58 = vadd.f32 %v1069_v11, %v5567_v56  ;;  %v1158_v10 = vadd.f32 %v5706_v54, %v1140_v6 }
 0x214   :  { %v3974_v19 = vpop.f32.mrf.mxu0  ;;  %v1071_v0 = vpop.f32.mrf.mxu1 }
 0x215   :  { %v3557_v22 = vmul.f32 -1.442695, %v1144_v58  ;;  %v1151_v16 = vadd.f32 %v1071_v0, %v5573_v60 }
 0x217   :  { %4467 = vpow2.f32 %v3557_v22  ;;  %v3558_v17 = vmul.f32 -1.442695, %v1151_v16 }
 0x219   :  { %4469 = vpow2.f32 %v3558_v17 }
 0x224   :  { %v4468_v13 = vpop.eup %4467 }
 0x225   :  { %v1148_v5 = vadd.f32 1.0, %v4468_v13 }
 0x226   :  { %v4470_v1 = vpop.eup %4469 }
 0x227   :  { %4471 = vrcp.f32 %v1148_v5  ;;  %v1155_v11 = vadd.f32 1.0, %v4470_v1 }
 0x233   :  { %v1231_v2 = vpop.f32.mrf.mxu1  ;;  %v1302_v63 = vpop.f32.mrf.mxu0 }
 0x234   :  { %v4472_v15 = vpop.eup %4471  ;;  %v1306_v62 = vadd.f32 %v1231_v2, %v5663_v36  ;;  %v1334_v2 = vpop.permute.xlu1 %1333 }
 0x235   :  { %v1159_v56 = vmul.f32 %v4472_v15, %v1158_v10  ;;  %v4009_v19 = vpop.f32.mrf.mxu0  ;;  %v1233_v60 = vpop.f32.mrf.mxu1 }
 0x236   :  { %v3559_v58 = vmul.f32 -1.442695, %v1306_v62  ;;  %v1313_v5 = vadd.f32 %v1233_v60, %v5698_v44  ;;  %v1320_v19 = vadd.f32 %v5723_v52, %v1302_v63  ;;  %v5964_v60 = vld [vmem:[#allocation6 + $0x150] sm:$0xff]  ;;  %v5968_v63 = vld [vmem:[#allocation6 + $0x140] sm:$0xff] }
 0x237   :  { %v1160_v22 = vadd.f32 %v1159_v56, %v5617_v57 }
 0x238   :  { %4473 = vpow2.f32 %v3559_v58  ;;  %v3560_v13 = vmul.f32 -1.442695, %v1313_v5  ;;  %v5956_v58 = vld [vmem:[#allocation6 + $0x168] sm:$0xff] }
 0x239   :  { %4475 = vtanh.f32 %v1160_v22 }
 0x23a   :  { %4477 = vrcp.f32 %v1155_v11  ;;  %v5960_v11 = vld [vmem:[#allocation6 + $0x158] sm:$0xff] }
 0x23b   :  { %4479 = vpow2.f32 %v3560_v13  ;;  %v5973_v13 = vld [vmem:[#allocation6 + $0x138] sm:$0xff] }
 0x245   :  { %v4474_v0 = vpop.eup %4473 }
 0x246   :  { %v4476_v17 = vpop.eup %4475  ;;  %v1310_v6 = vadd.f32 1.0, %v4474_v0  ;;  %v5977_v0 = vld [vmem:[#allocation6 + $0x128] sm:$0xff] }
 0x247   :  { %v1162_v16 = vsub.f32 %v5713_v48, %v4476_v17  ;;  %v4478_v36 = vpop.eup %4477 }
 0x248   :  { %4481 = vrcp.f32 %v1310_v6  ;;  %v4480_v44 = vpop.eup %4479  ;;  %v6001_v6 = vld [vmem:[#allocation6 + $0xe0] sm:$0xff] }
 0x249   :  { %v1163_v15 = vmul.f32 %v4478_v36, %v1162_v16  ;;  %v1317_v5 = vadd.f32 1.0, %v4480_v44  ;;  %v6005_v16 = vld [vmem:[#allocation6 + $0xd8] sm:$0xff]  ;;  %v6013_v36 = vld [vmem:[#allocation6 + $0xc0] sm:$0xff] }
 0x24a   :  { %v6046_v44 = vld [vmem:[#allocation6 + $0x60] sm:$0xff] }
 0x24b   :  { %v1164_v62 = vadd.f32 %v4476_v17, %v1163_v15  ;;  %v5993_v17 = vld [vmem:[#allocation6 + $0xf8] sm:$0xff]  ;;  %v6021_v15 = vld [vmem:[#allocation6 + $0xa8] sm:$0xff] }
 0x24d   :  { %v1336_v57 = vmul.f32 %v1334_v2, %v1164_v62  ;;  %v1347_v1 = vsub.f32 %v1164_v62, %v5713_v48  ;;  %v6029_v62 = vld [vmem:[#allocation6 + $0x90] sm:$0xff] }
 0x24f   :  { %1338 = vst [vmem:[#allocation8 + $0x10] sm:$0xff] %v1336_v57  ;;  %v1348_v10 = vmul.f32 %v1347_v1, %v1334_v2  ;;  %v6033_v2 = vld [vmem:[#allocation6 + $0x80] sm:$0xff]  ;;  %v6038_v57 = vld [vmem:[#allocation6 + $0x78] sm:$0xff] }
 0x251   :  { %v5951_v56 = vadd.f32 %v1348_v10, %v5713_v48  ;;  %v6042_v10 = vld [vmem:[#allocation6 + $0x68] sm:$0xff] }
 0x253   :  { %1430 = vmatmul.mubr.f32.vlgmr.msra.gmra.mxu1 %v5951_v56  ;;  %4043 = vmatmul.mubr.f32.vlgmr.msra.gmra.mxu0 %v5951_v56 }
 0x254   :  { %1528 = vmatpush1.msra.mxu1 %v5956_v58  ;;  %4046 = vmatpush3.msra.mxu0 %v5361_v18 }
 0x255   :  { %v4482_v22 = vpop.eup %4481  ;;  %1529 = vmatprep.subr.mxu1 %v5960_v11  ;;  %4047 = vmatprep.subr.mxu0 %v7398_v45 }
 0x256   :  { %v1321_v48 = vmul.f32 %v4482_v22, %v1320_v19  ;;  %1530 = vmatpush1.msra.mxu1 %v5964_v60  ;;  %4048 = vmatpush3.msra.mxu0 %v5372_v9  ;;  %v5981_v9 = vld [vmem:[#allocation6 + $0x120] sm:$0xff]  ;;  %v6050_v19 = vld [vmem:[#allocation6 + $0x50] sm:$0xff]  ;;  %v6054_v22 = vld [vmem:[#allocation6 + $0x48] sm:$0xff] }
 0x257   :  { %1531 = vmatprep.subr.mxu1 %v5968_v63  ;;  %4049 = vmatprep.subr.mxu0 %v7398_v45 }
 0x258   :  { %v1322_v18 = vadd.f32 %v1321_v48, %v5701_v26  ;;  %1532 = vmatpush1.msra.mxu1 %v5973_v13  ;;  %4050 = vmatpush3.msra.mxu0 %v5378_v8  ;;  %v5985_v26 = vld [vmem:[#allocation6 + $0x110] sm:$0xff]  ;;  %v5989_v8 = vld [vmem:[#allocation6 + $0x108] sm:$0xff]  ;;  %v1342_v48 = vpop.permute.xlu1 %1341 }
 0x259   :  { %1533 = vmatprep.subr.mxu1 %v5977_v0  ;;  %4051 = vmatprep.subr.mxu0 %v7398_v45 }
 0x25a   :  { %4483 = vtanh.f32 %v1322_v18  ;;  %1534 = vmatpush1.msra.mxu1 %v5981_v9  ;;  %4052 = vmatpush3.msra.mxu0 %v5389_v14  ;;  %v5997_v14 = vld [vmem:[#allocation6 + $0xf0] sm:$0xff]  ;;  %v6058_v18 = vld [vmem:[#allocation6 + $0x38] sm:$0xff] }
 0x25b   :  { %1535 = vmatprep.subr.mxu1 %v5985_v26  ;;  %4053 = vmatprep.subr.mxu0 %v7398_v45  ;;  %4485 = vrcp.f32 %v1317_v5 }
 0x25c   :  { %1536 = vmatpush1.msra.mxu1 %v5989_v8  ;;  %4054 = vmatpush3.msra.mxu0 %v5395_v20  ;;  %v6009_v20 = vld [vmem:[#allocation6 + $0xc8] sm:$0xff] }
 0x25d   :  { %1537 = vmatprep.subr.mxu1 %v5993_v17  ;;  %4055 = vmatprep.subr.mxu0 %v7398_v45 }
 0x25e   :  { %1538 = vmatpush1.msra.mxu1 %v5997_v14  ;;  %4056 = vmatpush3.msra.mxu0 %v5406_v23  ;;  %v6017_v23 = vld [vmem:[#allocation6 + $0xb0] sm:$0xff] }
 0x25f   :  { %1539 = vmatprep.subr.mxu1 %v6001_v6  ;;  %4057 = vmatprep.subr.mxu0 %v7398_v45 }
 0x260   :  { %1540 = vmatpush1.msra.mxu1 %v6005_v16  ;;  %4058 = vmatpush3.msra.mxu0 %v5412_v24  ;;  %v6025_v24 = vld [vmem:[#allocation6 + $0x98] sm:$0xff] }
 0x261   :  { %1541 = vmatprep.subr.mxu1 %v6009_v20  ;;  %4059 = vmatprep.subr.mxu0 %v7398_v45 }
 0x262   :  { %1542 = vmatpush1.msra.mxu1 %v6013_v36  ;;  %4060 = vmatpush3.msra.mxu0 %v5423_v27 }
 0x263   :  { %1543 = vmatprep.subr.mxu1 %v6017_v23  ;;  %4061 = vmatprep.subr.mxu0 %v7398_v45 }
 0x264   :  { %1544 = vmatpush1.msra.mxu1 %v6021_v15  ;;  %4062 = vmatpush3.msra.mxu0 %v5429_v28 }
 0x265   :  { %1545 = vmatprep.subr.mxu1 %v6025_v24  ;;  %4063 = vmatprep.subr.mxu0 %v7398_v45 }
 0x266   :  { %1546 = vmatpush1.msra.mxu1 %v6029_v62  ;;  %4064 = vmatpush3.msra.mxu0 %v5440_v30 }
 0x267   :  { %v4484_v27 = vpop.eup %4483  ;;  %1547 = vmatprep.subr.mxu1 %v6033_v2  ;;  %4065 = vmatprep.subr.mxu0 %v7398_v45 }
 0x268   :  { %v1324_v28 = vsub.f32 %v5785_v3, %v4484_v27  ;;  %1548 = vmatpush1.msra.mxu1 %v6038_v57  ;;  %4066 = vmatpush3.msra.mxu0 %v5446_v32  ;;  %v4486_v1 = vpop.eup %4485 }
 0x269   :  { %1549 = vmatprep.subr.mxu1 %v6042_v10  ;;  %4067 = vmatprep.subr.mxu0 %v7398_v45 }
 0x26a   :  { %v1325_v30 = vmul.f32 %v4486_v1, %v1324_v28  ;;  %1550 = vmatpush1.msra.mxu1 %v6046_v44  ;;  %4068 = vmatpush3.msra.mxu0 %v5457_v34  ;;  %v6063_v28 = vld [vmem:[#allocation6 + $0x30] sm:$0xff]  ;;  %v6071_v1 = vld [vmem:[#allocation6 + $0x18] sm:$0xff] }
 0x26b   :  { %1551 = vmatprep.subr.mxu1 %v6050_v19  ;;  %4069 = vmatprep.subr.mxu0 %v7398_v45  ;;  %7455 = vst [vmem:[#allocation83_spill] sm:$0xff] %v6071_v1 }
 0x26c   :  { %v1326_v32 = vadd.f32 %v4484_v27, %v1325_v30  ;;  %1552 = vmatpush1.msra.mxu1 %v6054_v22  ;;  %4070 = vmatpush3.msra.mxu0 %v5463_v35  ;;  %v6067_v27 = vld [vmem:[#allocation6 + $0x20] sm:$0xff]  ;;  %v6075_v30 = vld [vmem:[#allocation6 + $0x8] sm:$0xff] }
 0x26d   :  { %1553 = vmatprep.subr.mxu1 %v6058_v18  ;;  %4071 = vmatprep.subr.mxu0 %v7398_v45  ;;  %7454 = vst [vmem:[#allocation82_spill] sm:$0xff] %v6067_v27  ;;  %7456 = vst [vmem:[#allocation84_spill] sm:$0xff] %v6075_v30 }
 0x26e   :  { %v1344_v34 = vmul.f32 %v1342_v48, %v1326_v32  ;;  %v1350_v5 = vsub.f32 %v1326_v32, %v5785_v3  ;;  %1554 = vmatpush1.msra.mxu1 %v6063_v28  ;;  %4072 = vmatpush3.msra.mxu0 %v5474_v37  ;;  %v6082_v32 = vld [vmem:[#allocation6] sm:$0xff] }
 0x26f   :  { %1555 = vmatprep.subr.mxu1 %v6067_v27  ;;  %4073 = vmatprep.subr.mxu0 %v7398_v45  ;;  %7457 = vst [vmem:[#allocation85_spill] sm:$0xff] %v6082_v32 }
 0x270   :  { %1346 = vst [vmem:[#allocation8 + $0x68] sm:$0xff] %v1344_v34  ;;  %v1351_v35 = vmul.f32 %v1350_v5, %v1342_v48  ;;  %1556 = vmatpush1.msra.mxu1 %v6071_v1  ;;  %4074 = vmatpush3.msra.mxu0 %v5480_v38  ;;  %v6118_v38 = vld [vmem:[#allocation3 + $0xe8] sm:$0xff]  ;;  %v7461_v48 = vld [vmem:[#allocation29_spill] sm:$0xff]  ;;  %v6130_v5 = vld [vmem:[#allocation3 + $0xb8] sm:$0xff] }
 0x271   :  { %1557 = vmatprep.subr.mxu1 %v6075_v30  ;;  %4075 = vmatprep.subr.mxu0 %v7398_v45  ;;  %7458 = vst [vmem:[#allocation86_spill] sm:$0xff] %v6118_v38  ;;  %v7462_v34 = vld [vmem:[#allocation30_spill] sm:$0xff]  ;;  %7463 = vst [vmem:[#allocation88_spill] sm:$0xff] %v6130_v5 }
 0x272   :  { %v6080_v37 = vadd.f32 %v1351_v35, %v5785_v3  ;;  %1558 = vmatpush1.msra.mxu1 %v6082_v32  ;;  %1591 = vmatprep.mubr.f32.mxu1 %v7398_v45  ;;  %v6124_v3 = vld [vmem:[#allocation3 + $0xd0] sm:$0xff] }
 0x273   :  { %4076 = vmatpush3.msra.mxu0 %v5486_v39  ;;  %4077 = vmatprep.mubr.msk.f32.mxu0 %vm4897_vm1, %v7398_v45  ;;  %v7459_v39 = vld [vmem:[#allocation28_spill] sm:$0xff]  ;;  %7460 = vst [vmem:[#allocation87_spill] sm:$0xff] %v6124_v3  ;;  %v7464_v35 = vld [vmem:[#allocation31_spill] sm:$0xff] }
 0x274   :  { %1592 = vmatmul.mubr.f32.vlgmr.msra.gmra.mxu1 %v6080_v37  ;;  %4078 = vmatmul.mubr.f32.vlgmr.msra.gmra.mxu0 %v6080_v37 }
 0x275   :  { %1727 = vmatprep.subr.mxu1 %v5795_v4  ;;  %4080 = vmatprep.subr.mxu0 %v7398_v45 }
 0x276   :  { %1728 = vmatpush1.msra.mxu1 %v5799_v7  ;;  %4081 = vmatpush3.msra.mxu0 %v5802_v50 }
 0x277   :  { %1729 = vmatprep.subr.mxu1 %v5805_v43  ;;  %4082 = vmatprep.subr.mxu0 %v7398_v45 }
 0x278   :  { %1730 = vmatpush1.msra.mxu1 %v5809_v55  ;;  %4083 = vmatpush3.msra.mxu0 %v5812_v29 }
 0x279   :  { %1731 = vmatprep.subr.mxu1 %v5815_v51  ;;  %4084 = vmatprep.subr.mxu0 %v7398_v45 }
 0x27a   :  { %1732 = vmatpush1.msra.mxu1 %v5819_v40  ;;  %4085 = vmatpush3.msra.mxu0 %v5822_v25 }
 0x27b   :  { %1733 = vmatprep.subr.mxu1 %v5825_v59  ;;  %4086 = vmatprep.subr.mxu0 %v7398_v45 }
 0x27c   :  { %1734 = vmatpush1.msra.mxu1 %v5829_v46  ;;  %4087 = vmatpush3.msra.mxu0 %v5832_v47  ;;  %v7488_v46 = vld [vmem:[#allocation64_spill] sm:$0xff] }
 0x27d   :  { %1735 = vmatprep.subr.mxu1 %v5835_v42  ;;  %4088 = vmatprep.subr.mxu0 %v7398_v45 }
 0x27e   :  { %1736 = vmatpush1.msra.mxu1 %v5839_v49  ;;  %4089 = vmatpush3.msra.mxu0 %v5842_v53 }
 0x27f   :  { %1737 = vmatprep.subr.mxu1 %v5845_v12  ;;  %4090 = vmatprep.subr.mxu0 %v7398_v45 }
 0x280   :  { %1738 = vmatpush1.msra.mxu1 %v5849_v31  ;;  %4091 = vmatpush3.msra.mxu0 %v5852_v41 }
 0x281   :  { %1739 = vmatprep.subr.mxu1 %v5855_v21  ;;  %4092 = vmatprep.subr.mxu0 %v7398_v45  ;;  %v7487_v21 = vld [vmem:[#allocation47_spill] sm:$0xff] }
 0x282   :  { %1740 = vmatpush1.msra.mxu1 %v5859_v61  ;;  %4093 = vmatpush3.msra.mxu0 %v6118_v38 }
 0x283   :  { %1741 = vmatprep.subr.mxu1 %v5863_v33  ;;  %4094 = vmatprep.subr.mxu0 %v7398_v45  ;;  %v7465_v33 = vld [vmem:[#allocation32_spill] sm:$0xff] }
 0x284   :  { %1742 = vmatpush1.msra.mxu1 %v7459_v39  ;;  %4095 = vmatpush3.msra.mxu0 %v6124_v3  ;;  %v6136_v39 = vld [vmem:[#allocation3 + $0xa0] sm:$0xff] }
 0x285   :  { %1743 = vmatprep.subr.mxu1 %v7461_v48  ;;  %4096 = vmatprep.subr.mxu0 %v7398_v45  ;;  %7466 = vst [vmem:[#allocation89_spill] sm:$0xff] %v6136_v39  ;;  %v7467_v3 = vld [vmem:[#allocation33_spill] sm:$0xff]  ;;  %v7468_v48 = vld [vmem:[#allocation34_spill] sm:$0xff] }
 0x286   :  { %1744 = vmatpush1.msra.mxu1 %v7462_v34  ;;  %4097 = vmatpush3.msra.mxu0 %v6130_v5  ;;  %v6142_v34 = vld [vmem:[#allocation3 + $0x88] sm:$0xff]  ;;  %v7470_v5 = vld [vmem:[#allocation35_spill] sm:$0xff] }
 0x287   :  { %1745 = vmatprep.subr.mxu1 %v7464_v35  ;;  %4098 = vmatprep.subr.mxu0 %v7398_v45  ;;  %7469 = vst [vmem:[#allocation90_spill] sm:$0xff] %v6142_v34  ;;  %v7471_v35 = vld [vmem:[#allocation36_spill] sm:$0xff] }
 0x288   :  { %1746 = vmatpush1.msra.mxu1 %v7465_v33  ;;  %4099 = vmatpush3.msra.mxu0 %v6136_v39  ;;  %v6148_v33 = vld [vmem:[#allocation3 + $0x70] sm:$0xff]  ;;  %v7473_v39 = vld [vmem:[#allocation37_spill] sm:$0xff] }
 0x289   :  { %1747 = vmatprep.subr.mxu1 %v7467_v3  ;;  %4100 = vmatprep.subr.mxu0 %v7398_v45  ;;  %7472 = vst [vmem:[#allocation91_spill] sm:$0xff] %v6148_v33  ;;  %v7474_v3 = vld [vmem:[#allocation38_spill] sm:$0xff] }
 0x28a   :  { %1748 = vmatpush1.msra.mxu1 %v7468_v48  ;;  %4101 = vmatpush3.msra.mxu0 %v6142_v34  ;;  %v6154_v48 = vld [vmem:[#allocation3 + $0x58] sm:$0xff]  ;;  %v7476_v34 = vld [vmem:[#allocation75_spill] sm:$0xff] }
 0x28b   :  { %1749 = vmatprep.subr.mxu1 %v7470_v5  ;;  %4102 = vmatprep.subr.mxu0 %v7398_v45  ;;  %7475 = vst [vmem:[#allocation92_spill] sm:$0xff] %v6154_v48  ;;  %v7477_v5 = vld [vmem:[#allocation76_spill] sm:$0xff] }
 0x28c   :  { %1750 = vmatpush1.msra.mxu1 %v7471_v35  ;;  %4103 = vmatpush3.msra.mxu0 %v6148_v33  ;;  %v6160_v35 = vld [vmem:[#allocation3 + $0x40] sm:$0xff] }
 0x28d   :  { %1751 = vmatprep.subr.mxu1 %v7473_v39  ;;  %4104 = vmatprep.subr.mxu0 %v7398_v45  ;;  %7478 = vst [vmem:[#allocation93_spill] sm:$0xff] %v6160_v35  ;;  %v7479_v33 = vld [vmem:[#allocation77_spill] sm:$0xff]  ;;  %v7480_v39 = vld [vmem:[#allocation78_spill] sm:$0xff] }
 0x28e   :  { %1752 = vmatpush1.msra.mxu1 %v7474_v3  ;;  %4105 = vmatpush3.msra.mxu0 %v6154_v48  ;;  %v6166_v3 = vld [vmem:[#allocation3 + $0x28] sm:$0xff]  ;;  %v7482_v48 = vld [vmem:[#allocation79_spill] sm:$0xff] }
 0x28f   :  { %1753 = vmatprep.subr.mxu1 %v7476_v34  ;;  %4106 = vmatprep.subr.mxu0 %v7398_v45  ;;  %7481 = vst [vmem:[#allocation94_spill] sm:$0xff] %v6166_v3  ;;  %v7483_v34 = vld [vmem:[#allocation80_spill] sm:$0xff] }
 0x290   :  { %1754 = vmatpush1.msra.mxu1 %v7477_v5  ;;  %4107 = vmatpush3.msra.mxu0 %v6160_v35  ;;  %v6172_v5 = vld [vmem:[#allocation3 + $0x10] sm:$0xff] }
 0x291   :  { %1755 = vmatprep.subr.mxu1 %v7479_v33  ;;  %4108 = vmatprep.subr.mxu0 %v7398_v45  ;;  %7484 = vst [vmem:[#allocation95_spill] sm:$0xff] %v6172_v5 }
 0x292   :  { %1756 = vmatpush1.msra.mxu1 %v7480_v39  ;;  %4109 = vmatpush3.msra.mxu0 %v6166_v3  ;;  %v7485_v39 = vld [vmem:[#allocation81_spill] sm:$0xff] }
 0x293   :  { %1757 = vmatprep.subr.mxu1 %v7482_v48  ;;  %4110 = vmatprep.subr.mxu0 %v7398_v45  ;;  %v7486_v48 = vld [vmem:[#allocation45_spill] sm:$0xff] }
 0x294   :  { %1758 = vmatpush1.msra.mxu1 %v7483_v34  ;;  %4111 = vmatpush3.msra.mxu0 %v6172_v5 }
 0x295   :  { %1791 = vmatprep.mubr.f32.mxu1 %v7398_v45  ;;  %4112 = vmatprep.mubr.msk.f32.mxu0 %vm4897_vm1, %v7398_v45 }
 0x296   :  { %1889 = vmatprep.subr.mxu1 %v7485_v39  ;;  %4115 = vmatprep.subr.mxu0 %v7398_v45 }
 0x313   :  { %v1431_v3 = vpop.f32.mrf.mxu1  ;;  %v1502_v33 = vpop.f32.mrf.mxu0 }
 0x314   :  { %v1506_v35 = vadd.f32 %v1431_v3, %v7486_v48  ;;  %v1520_v39 = vadd.f32 %v5706_v54, %v1502_v33 }
 0x315   :  { %v4044_v38 = vpop.f32.mrf.mxu0  ;;  %v1433_v34 = vpop.f32.mrf.mxu1 }
 0x316   :  { %v3563_v61 = vmul.f32 -1.442695, %v1506_v35  ;;  %v1513_v41 = vadd.f32 %v1433_v34, %v7487_v21 }
 0x318   :  { %4487 = vpow2.f32 %v3563_v61  ;;  %v3564_v5 = vmul.f32 -1.442695, %v1513_v41  ;;  %v7489_v61 = vld [vmem:[#allocation55_spill] sm:$0xff]  ;;  %v7490_v41 = vld [vmem:[#allocation73_spill] sm:$0xff] }
 0x31a   :  { %4489 = vpow2.f32 %v3564_v5 }
 0x325   :  { %v4488_v31 = vpop.eup %4487 }
 0x326   :  { %v1510_v12 = vadd.f32 1.0, %v4488_v31 }
 0x327   :  { %v4490_v53 = vpop.eup %4489 }
 0x328   :  { %4491 = vrcp.f32 %v1510_v12  ;;  %v1517_v25 = vadd.f32 1.0, %v4490_v53 }
 0x334   :  { %v1593_v49 = vpop.f32.mrf.mxu1  ;;  %v1664_v42 = vpop.f32.mrf.mxu0 }
 0x335   :  { %v4492_v47 = vpop.eup %4491  ;;  %v1668_v59 = vadd.f32 %v1593_v49, %v7488_v46  ;;  %v1696_v49 = vpop.permute.xlu0 %1695 }
 0x336   :  { %v1521_v3 = vmul.f32 %v4492_v47, %v1520_v39  ;;  %v4079_v38 = vpop.f32.mrf.mxu0  ;;  %v1595_v31 = vpop.f32.mrf.mxu1 }
 0x337   :  { %v3565_v48 = vmul.f32 -1.442695, %v1668_v59  ;;  %v1675_v12 = vadd.f32 %v1595_v31, %v7490_v41  ;;  %v6201_v31 = vld [vmem:[#allocation6 + $0x160] sm:$0xff] }
 0x338   :  { %v1522_v35 = vadd.f32 %v1521_v3, %v7489_v61  ;;  %v6195_v61 = vld [vmem:[#allocation6 + $0x178] sm:$0xff] }
 0x339   :  { %4493 = vpow2.f32 %v3565_v48  ;;  %v3566_v21 = vmul.f32 -1.442695, %v1675_v12  ;;  %v1682_v48 = vadd.f32 %v5723_v52, %v1664_v42  ;;  %v7491_v52 = vld [vmem:[#allocation74_spill] sm:$0xff] }
 0x33a   :  { %4495 = vtanh.f32 %v1522_v35  ;;  %v6208_v12 = vld [vmem:[#allocation6 + $0x148] sm:$0xff] }
 0x33b   :  { %4497 = vrcp.f32 %v1517_v25 }
 0x33c   :  { %4499 = vpow2.f32 %v3566_v21  ;;  %v6214_v21 = vld [vmem:[#allocation6 + $0x130] sm:$0xff] }
 0x346   :  { %v4494_v34 = vpop.eup %4493 }
 0x347   :  { %v4496_v54 = vpop.eup %4495  ;;  %v1672_v33 = vadd.f32 1.0, %v4494_v34  ;;  %v6220_v34 = vld [vmem:[#allocation6 + $0x118] sm:$0xff] }
 0x348   :  { %v1524_v5 = vsub.f32 %v5951_v56, %v4496_v54  ;;  %v4498_v46 = vpop.eup %4497 }
 0x349   :  { %4501 = vrcp.f32 %v1672_v33  ;;  %v4500_v38 = vpop.eup %4499  ;;  %v6232_v33 = vld [vmem:[#allocation6 + $0xe8] sm:$0xff] }
 0x34a   :  { %v1525_v47 = vmul.f32 %v4498_v46, %v1524_v5  ;;  %v1679_v41 = vadd.f32 1.0, %v4500_v38  ;;  %v6238_v5 = vld [vmem:[#allocation6 + $0xd0] sm:$0xff]  ;;  %v6244_v46 = vld [vmem:[#allocation6 + $0xb8] sm:$0xff] }
 0x34b   :  { %v6263_v38 = vld [vmem:[#allocation6 + $0x70] sm:$0xff] }
 0x34c   :  { %v1526_v59 = vadd.f32 %v4496_v54, %v1525_v47  ;;  %v6226_v54 = vld [vmem:[#allocation6 + $0x100] sm:$0xff] }
 0x34d   :  { %v6250_v47 = vld [vmem:[#allocation6 + $0xa0] sm:$0xff] }
 0x34e   :  { %v1698_v39 = vmul.f32 %v1696_v49, %v1526_v59  ;;  %v1709_v53 = vsub.f32 %v1526_v59, %v5951_v56 }
 0x350   :  { %1700 = vst [vmem:[#allocation8 + $0x20] sm:$0xff] %v1698_v39  ;;  %v1710_v25 = vmul.f32 %v1709_v53, %v1696_v49  ;;  %v6257_v39 = vld [vmem:[#allocation6 + $0x88] sm:$0xff] }
 0x352   :  { %v6189_v3 = vadd.f32 %v1710_v25, %v5951_v56 }
 0x354   :  { %1792 = vmatmul.mubr.f32.vlgmr.msra.gmra.mxu1 %v6189_v3  ;;  %4113 = vmatmul.mubr.f32.vlgmr.msra.gmra.mxu0 %v6189_v3 }
 0x355   :  { %1890 = vmatpush1.msra.mxu1 %v5956_v58  ;;  %4116 = vmatpush3.msra.mxu0 %v6195_v61 }
 0x356   :  { %v4502_v35 = vpop.eup %4501  ;;  %1891 = vmatprep.subr.mxu1 %v5960_v11  ;;  %4117 = vmatprep.subr.mxu0 %v7398_v45 }
 0x357   :  { %v1683_v56 = vmul.f32 %v4502_v35, %v1682_v48  ;;  %1892 = vmatpush1.msra.mxu1 %v5964_v60  ;;  %4118 = vmatpush3.msra.mxu0 %v6201_v31  ;;  %v6269_v48 = vld [vmem:[#allocation6 + $0x58] sm:$0xff] }
 0x358   :  { %1893 = vmatprep.subr.mxu1 %v5968_v63  ;;  %4119 = vmatprep.subr.mxu0 %v7398_v45 }
 0x359   :  { %v1684_v42 = vadd.f32 %v1683_v56, %v7491_v52  ;;  %1894 = vmatpush1.msra.mxu1 %v5973_v13  ;;  %4120 = vmatpush3.msra.mxu0 %v6208_v12  ;;  %v1704_v56 = vpop.permute.xlu1 %1703  ;;  %v6275_v52 = vld [vmem:[#allocation6 + $0x40] sm:$0xff] }
 0x35a   :  { %1895 = vmatprep.subr.mxu1 %v5977_v0  ;;  %4121 = vmatprep.subr.mxu0 %v7398_v45  ;;  %7492 = vst [vmem:[#allocation45_spill] sm:$0xff] %v6275_v52 }
 0x35b   :  { %4503 = vtanh.f32 %v1684_v42  ;;  %1896 = vmatpush1.msra.mxu1 %v5981_v9  ;;  %4122 = vmatpush3.msra.mxu0 %v6214_v21 }
 0x35c   :  { %1897 = vmatprep.subr.mxu1 %v5985_v26  ;;  %4123 = vmatprep.subr.mxu0 %v7398_v45  ;;  %4505 = vrcp.f32 %v1679_v41 }
 0x35d   :  { %1898 = vmatpush1.msra.mxu1 %v5989_v8  ;;  %4124 = vmatpush3.msra.mxu0 %v6220_v34 }
 0x35e   :  { %1899 = vmatprep.subr.mxu1 %v5993_v17  ;;  %4125 = vmatprep.subr.mxu0 %v7398_v45 }
 0x35f   :  { %1900 = vmatpush1.msra.mxu1 %v5997_v14  ;;  %4126 = vmatpush3.msra.mxu0 %v6226_v54 }
 0x360   :  { %1901 = vmatprep.subr.mxu1 %v6001_v6  ;;  %4127 = vmatprep.subr.mxu0 %v7398_v45 }
 0x361   :  { %1902 = vmatpush1.msra.mxu1 %v6005_v16  ;;  %4128 = vmatpush3.msra.mxu0 %v6232_v33 }
 0x362   :  { %1903 = vmatprep.subr.mxu1 %v6009_v20  ;;  %4129 = vmatprep.subr.mxu0 %v7398_v45 }
 0x363   :  { %1904 = vmatpush1.msra.mxu1 %v6013_v36  ;;  %4130 = vmatpush3.msra.mxu0 %v6238_v5 }
 0x364   :  { %1905 = vmatprep.subr.mxu1 %v6017_v23  ;;  %4131 = vmatprep.subr.mxu0 %v7398_v45 }
 0x365   :  { %1906 = vmatpush1.msra.mxu1 %v6021_v15  ;;  %4132 = vmatpush3.msra.mxu0 %v6244_v46 }
 0x366   :  { %1907 = vmatprep.subr.mxu1 %v6025_v24  ;;  %4133 = vmatprep.subr.mxu0 %v7398_v45 }
 0x367   :  { %1908 = vmatpush1.msra.mxu1 %v6029_v62  ;;  %4134 = vmatpush3.msra.mxu0 %v6250_v47 }
 0x368   :  { %v4504_v59 = vpop.eup %4503  ;;  %1909 = vmatprep.subr.mxu1 %v6033_v2  ;;  %4135 = vmatprep.subr.mxu0 %v7398_v45 }
 0x369   :  { %v1686_v49 = vsub.f32 %v6080_v37, %v4504_v59  ;;  %1910 = vmatpush1.msra.mxu1 %v6038_v57  ;;  %4136 = vmatpush3.msra.mxu0 %v6257_v39  ;;  %v4506_v53 = vpop.eup %4505 }
 0x36a   :  { %1911 = vmatprep.subr.mxu1 %v6042_v10  ;;  %4137 = vmatprep.subr.mxu0 %v7398_v45 }
 0x36b   :  { %v1687_v25 = vmul.f32 %v4506_v53, %v1686_v49  ;;  %1912 = vmatpush1.msra.mxu1 %v6046_v44  ;;  %4138 = vmatpush3.msra.mxu0 %v6263_v38 }
 0x36c   :  { %1913 = vmatprep.subr.mxu1 %v6050_v19  ;;  %4139 = vmatprep.subr.mxu0 %v7398_v45 }
 0x36d   :  { %1914 = vmatpush1.msra.mxu1 %v6054_v22  ;;  %4140 = vmatpush3.msra.mxu0 %v6269_v48  ;;  %v1688_v35 = vadd.f32 %v4504_v59, %v1687_v25  ;;  %v6282_v59 = vld [vmem:[#allocation6 + $0x28] sm:$0xff]  ;;  %v6292_v25 = vld [vmem:[#allocation6 + $0x10] sm:$0xff] }
 0x36e   :  { %1915 = vmatprep.subr.mxu1 %v6058_v18  ;;  %4141 = vmatprep.subr.mxu0 %v7398_v45  ;;  %7493 = vst [vmem:[#allocation47_spill] sm:$0xff] %v6282_v59  ;;  %7494 = vst [vmem:[#allocation64_spill] sm:$0xff] %v6292_v25 }
 0x36f   :  { %1916 = vmatpush1.msra.mxu1 %v6063_v28  ;;  %4142 = vmatpush3.msra.mxu0 %v6275_v52  ;;  %v1706_v42 = vmul.f32 %v1704_v56, %v1688_v35  ;;  %v1712_v41 = vsub.f32 %v1688_v35, %v6080_v37  ;;  %v7504_v35 = vld [vmem:[#allocation24_spill] sm:$0xff] }
 0x370   :  { %1917 = vmatprep.subr.mxu1 %v6067_v27  ;;  %4143 = vmatprep.subr.mxu0 %v7398_v45 }
 0x371   :  { %1918 = vmatpush1.msra.mxu1 %v6071_v1  ;;  %4144 = vmatpush3.msra.mxu0 %v6282_v59  ;;  %1708 = vst [vmem:[#allocation8 + $0x58] sm:$0xff] %v1706_v42  ;;  %v1713_v49 = vmul.f32 %v1712_v41, %v1704_v56  ;;  %v7505_v56 = vld [vmem:[#allocation25_spill] sm:$0xff]  ;;  %v7506_v42 = vld [vmem:[#allocation26_spill] sm:$0xff] }
 0x372   :  { %1919 = vmatprep.subr.mxu1 %v6075_v30  ;;  %4145 = vmatprep.subr.mxu0 %v7398_v45  ;;  %v7507_v41 = vld [vmem:[#allocation86_spill] sm:$0xff]  ;;  %v7541_v30 = vld [vmem:[#allocation71_spill] sm:$0xff] }
 0x373   :  { %1920 = vmatpush1.msra.mxu1 %v6082_v32  ;;  %1953 = vmatprep.mubr.f32.mxu1 %v7398_v45  ;;  %v6290_v53 = vadd.f32 %v1713_v49, %v6080_v37  ;;  %v7496_v37 = vld [vmem:[#allocation16_spill] sm:$0xff]  ;;  %v7508_v49 = vld [vmem:[#allocation27_spill] sm:$0xff] }
 0x374   :  { %4146 = vmatpush3.msra.mxu0 %v6292_v25  ;;  %4147 = vmatprep.mubr.msk.f32.mxu0 %vm4897_vm1, %v7398_v45 }
 0x375   :  { %1954 = vmatmul.mubr.f32.vlgmr.msra.gmra.mxu1 %v6290_v53  ;;  %4148 = vmatmul.mubr.f32.vlgmr.msra.gmra.mxu0 %v6290_v53 }
 0x376   :  { %2083 = vmatprep.subr.mxu1 %v5795_v4  ;;  %4150 = vmatprep.subr.mxu0 %v7398_v45  ;;  %v7495_v4 = vld [vmem:[#allocation15_spill] sm:$0xff] }
 0x377   :  { %2084 = vmatpush1.msra.mxu1 %v5799_v7  ;;  %4151 = vmatpush3.msra.mxu0 %v5802_v50  ;;  %v7497_v7 = vld [vmem:[#allocation17_spill] sm:$0xff]  ;;  %v7498_v50 = vld [vmem:[#allocation18_spill] sm:$0xff] }
 0x378   :  { %2085 = vmatprep.subr.mxu1 %v5805_v43  ;;  %4152 = vmatprep.subr.mxu0 %v7398_v45  ;;  %v7499_v43 = vld [vmem:[#allocation19_spill] sm:$0xff] }
 0x379   :  { %2086 = vmatpush1.msra.mxu1 %v5809_v55  ;;  %4153 = vmatpush3.msra.mxu0 %v5812_v29  ;;  %v7500_v55 = vld [vmem:[#allocation20_spill] sm:$0xff]  ;;  %v7501_v29 = vld [vmem:[#allocation21_spill] sm:$0xff] }
 0x37a   :  { %2087 = vmatprep.subr.mxu1 %v5815_v51  ;;  %4154 = vmatprep.subr.mxu0 %v7398_v45  ;;  %v7502_v51 = vld [vmem:[#allocation22_spill] sm:$0xff] }
 0x37b   :  { %2088 = vmatpush1.msra.mxu1 %v5819_v40  ;;  %4155 = vmatpush3.msra.mxu0 %v7495_v4  ;;  %v7503_v40 = vld [vmem:[#allocation23_spill] sm:$0xff]  ;;  %v7509_v4 = vld [vmem:[#allocation28_spill] sm:$0xff] }
 0x37c   :  { %2089 = vmatprep.subr.mxu1 %v7496_v37  ;;  %4156 = vmatprep.subr.mxu0 %v7398_v45  ;;  %v7510_v37 = vld [vmem:[#allocation87_spill] sm:$0xff] }
 0x37d   :  { %2090 = vmatpush1.msra.mxu1 %v7497_v7  ;;  %4157 = vmatpush3.msra.mxu0 %v7498_v50  ;;  %v7511_v7 = vld [vmem:[#allocation29_spill] sm:$0xff]  ;;  %v7512_v50 = vld [vmem:[#allocation30_spill] sm:$0xff] }
 0x37e   :  { %2091 = vmatprep.subr.mxu1 %v7499_v43  ;;  %4158 = vmatprep.subr.mxu0 %v7398_v45  ;;  %v7513_v43 = vld [vmem:[#allocation88_spill] sm:$0xff] }
 0x37f   :  { %2092 = vmatpush1.msra.mxu1 %v7500_v55  ;;  %4159 = vmatpush3.msra.mxu0 %v7501_v29  ;;  %v7514_v55 = vld [vmem:[#allocation31_spill] sm:$0xff]  ;;  %v7515_v29 = vld [vmem:[#allocation32_spill] sm:$0xff] }
 0x380   :  { %2093 = vmatprep.subr.mxu1 %v7502_v51  ;;  %4160 = vmatprep.subr.mxu0 %v7398_v45  ;;  %v7516_v51 = vld [vmem:[#allocation89_spill] sm:$0xff] }
 0x381   :  { %2094 = vmatpush1.msra.mxu1 %v7503_v40  ;;  %4161 = vmatpush3.msra.mxu0 %v7504_v35  ;;  %v7517_v40 = vld [vmem:[#allocation33_spill] sm:$0xff]  ;;  %v7518_v35 = vld [vmem:[#allocation34_spill] sm:$0xff] }
 0x382   :  { %2095 = vmatprep.subr.mxu1 %v7505_v56  ;;  %4162 = vmatprep.subr.mxu0 %v7398_v45  ;;  %v7519_v56 = vld [vmem:[#allocation90_spill] sm:$0xff] }
 0x383   :  { %2096 = vmatpush1.msra.mxu1 %v7506_v42  ;;  %4163 = vmatpush3.msra.mxu0 %v7507_v41  ;;  %v7520_v42 = vld [vmem:[#allocation35_spill] sm:$0xff] }
 0x384   :  { %2097 = vmatprep.subr.mxu1 %v7508_v49  ;;  %4164 = vmatprep.subr.mxu0 %v7398_v45  ;;  %v7521_v49 = vld [vmem:[#allocation36_spill] sm:$0xff] }
 0x385   :  { %2098 = vmatpush1.msra.mxu1 %v7509_v4  ;;  %4165 = vmatpush3.msra.mxu0 %v7510_v37  ;;  %v7522_v4 = vld [vmem:[#allocation91_spill] sm:$0xff] }
 0x386   :  { %2099 = vmatprep.subr.mxu1 %v7511_v7  ;;  %4166 = vmatprep.subr.mxu0 %v7398_v45  ;;  %v7523_v7 = vld [vmem:[#allocation37_spill] sm:$0xff] }
 0x387   :  { %2100 = vmatpush1.msra.mxu1 %v7512_v50  ;;  %4167 = vmatpush3.msra.mxu0 %v7513_v43  ;;  %v7524_v50 = vld [vmem:[#allocation38_spill] sm:$0xff] }
 0x388   :  { %2101 = vmatprep.subr.mxu1 %v7514_v55  ;;  %4168 = vmatprep.subr.mxu0 %v7398_v45  ;;  %v7525_v55 = vld [vmem:[#allocation92_spill] sm:$0xff] }
 0x389   :  { %2102 = vmatpush1.msra.mxu1 %v7515_v29  ;;  %4169 = vmatpush3.msra.mxu0 %v7516_v51  ;;  %v7526_v29 = vld [vmem:[#allocation75_spill] sm:$0xff] }
 0x38a   :  { %2103 = vmatprep.subr.mxu1 %v7517_v40  ;;  %4170 = vmatprep.subr.mxu0 %v7398_v45  ;;  %v7527_v40 = vld [vmem:[#allocation76_spill] sm:$0xff] }
 0x38b   :  { %2104 = vmatpush1.msra.mxu1 %v7518_v35  ;;  %4171 = vmatpush3.msra.mxu0 %v7519_v56  ;;  %v7528_v35 = vld [vmem:[#allocation93_spill] sm:$0xff] }
 0x38c   :  { %2105 = vmatprep.subr.mxu1 %v7520_v42  ;;  %4172 = vmatprep.subr.mxu0 %v7398_v45  ;;  %v7529_v42 = vld [vmem:[#allocation77_spill] sm:$0xff] }
 0x38d   :  { %2106 = vmatpush1.msra.mxu1 %v7521_v49  ;;  %4173 = vmatpush3.msra.mxu0 %v7522_v4  ;;  %v7530_v49 = vld [vmem:[#allocation78_spill] sm:$0xff]  ;;  %v7532_v4 = vld [vmem:[#allocation79_spill] sm:$0xff] }
 0x38e   :  { %2107 = vmatprep.subr.mxu1 %v7523_v7  ;;  %4174 = vmatprep.subr.mxu0 %v7398_v45  ;;  %v7531_v7 = vld [vmem:[#allocation94_spill] sm:$0xff] }
 0x38f   :  { %2108 = vmatpush1.msra.mxu1 %v7524_v50  ;;  %4175 = vmatpush3.msra.mxu0 %v7525_v55  ;;  %v7533_v50 = vld [vmem:[#allocation80_spill] sm:$0xff] }
 0x390   :  { %2109 = vmatprep.subr.mxu1 %v7526_v29  ;;  %4176 = vmatprep.subr.mxu0 %v7398_v45  ;;  %v7534_v29 = vld [vmem:[#allocation95_spill] sm:$0xff] }
 0x391   :  { %2110 = vmatpush1.msra.mxu1 %v7527_v40  ;;  %4177 = vmatpush3.msra.mxu0 %v7528_v35  ;;  %v7535_v40 = vld [vmem:[#allocation81_spill] sm:$0xff] }
 0x392   :  { %2111 = vmatprep.subr.mxu1 %v7529_v42  ;;  %4178 = vmatprep.subr.mxu0 %v7398_v45 }
 0x393   :  { %2112 = vmatpush1.msra.mxu1 %v7530_v49  ;;  %4179 = vmatpush3.msra.mxu0 %v7531_v7  ;;  %v7536_v7 = vld [vmem:[#allocation49_spill] sm:$0xff] }
 0x394   :  { %2113 = vmatprep.subr.mxu1 %v7532_v4  ;;  %4180 = vmatprep.subr.mxu0 %v7398_v45 }
 0x395   :  { %2114 = vmatpush1.msra.mxu1 %v7533_v50  ;;  %4181 = vmatpush3.msra.mxu0 %v7534_v29  ;;  %v7537_v50 = vld [vmem:[#allocation50_spill] sm:$0xff] }
 0x396   :  { %2147 = vmatprep.mubr.f32.mxu1 %v7398_v45  ;;  %4182 = vmatprep.mubr.msk.f32.mxu0 %vm4897_vm1, %v7398_v45 }
 0x397   :  { %2245 = vmatprep.subr.mxu1 %v7535_v40  ;;  %4185 = vmatprep.subr.mxu0 %v7398_v45  ;;  %v6373_v40 = vld [vmem:[%s7160_s5] ss:$0 sm:$0xff] }
 0x398   :  { %7538 = vst [vmem:[#allocation55_spill] sm:$0xff] %v6373_v40 }
 0x414   :  { %v1793_v42 = vpop.f32.mrf.mxu1  ;;  %v1864_v49 = vpop.f32.mrf.mxu0 }
 0x415   :  { %v1868_v35 = vadd.f32 %v1793_v42, %v7536_v7  ;;  %v1882_v25 = vadd.f32 %v6373_v40, %v1864_v49 }
 0x416   :  { %v4114_v4 = vpop.f32.mrf.mxu0  ;;  %v1795_v56 = vpop.f32.mrf.mxu1 }
 0x417   :  { %v3569_v55 = vmul.f32 -1.442695, %v1868_v35  ;;  %v1875_v51 = vadd.f32 %v1795_v56, %v7537_v50  ;;  %v7540_v50 = vld [vmem:[#allocation57_spill] sm:$0xff] }
 0x419   :  { %4507 = vpow2.f32 %v3569_v55  ;;  %v3570_v29 = vmul.f32 -1.442695, %v1875_v51  ;;  %v7539_v55 = vld [vmem:[#allocation62_spill] sm:$0xff] }
 0x41b   :  { %4509 = vpow2.f32 %v3570_v29 }
 0x426   :  { %v4508_v43 = vpop.eup %4507 }
 0x427   :  { %v1872_v37 = vadd.f32 1.0, %v4508_v43 }
 0x428   :  { %v4510_v41 = vpop.eup %4509 }
 0x429   :  { %4511 = vrcp.f32 %v1872_v37  ;;  %v1879_v29 = vadd.f32 1.0, %v4510_v41 }
 0x435   :  { %v1955_v7 = vpop.f32.mrf.mxu1  ;;  %v2026_v42 = vpop.f32.mrf.mxu0 }
 0x436   :  { %v4512_v35 = vpop.eup %4511  ;;  %v2030_v4 = vadd.f32 %v1955_v7, %v7539_v55  ;;  %v2058_v55 = vpop.permute.xlu0 %2057 }
 0x437   :  { %v1883_v32 = vmul.f32 %v4512_v35, %v1882_v25  ;;  %v4149_v56 = vpop.f32.mrf.mxu0  ;;  %v1957_v37 = vpop.f32.mrf.mxu1 }
 0x438   :  { %v3571_v51 = vmul.f32 -1.442695, %v2030_v4  ;;  %v2037_v59 = vadd.f32 %v1957_v37, %v7541_v30  ;;  %v6515_v37 = vld [vmem:[#allocation3 + $0xf8] sm:$0xff] }
 0x439   :  { %v1884_v43 = vadd.f32 %v1883_v32, %v7540_v50  ;;  %v6505_v50 = vld [vmem:[#allocation3 + $0x110] sm:$0xff]  ;;  %7556 = vst [vmem:[#allocation19_spill] sm:$0xff] %v6515_v37 }
 0x43a   :  { %4513 = vpow2.f32 %v3571_v51  ;;  %v3572_v1 = vmul.f32 -1.442695, %v2037_v59  ;;  %v7542_v59 = vld [vmem:[#allocation72_spill] sm:$0xff]  ;;  %v6502_v51 = vld [vmem:[#allocation3 + $0x130] sm:$0xff]  ;;  %7553 = vst [vmem:[#allocation16_spill] sm:$0xff] %v6505_v50 }
 0x43b   :  { %4515 = vtanh.f32 %v1884_v43  ;;  %7552 = vst [vmem:[#allocation15_spill] sm:$0xff] %v6502_v51  ;;  %v6509_v43 = vld [vmem:[#allocation3 + $0x108] sm:$0xff] }
 0x43c   :  { %4517 = vrcp.f32 %v1879_v29  ;;  %7554 = vst [vmem:[#allocation17_spill] sm:$0xff] %v6509_v43  ;;  %v6512_v29 = vld [vmem:[#allocation3 + $0x118] sm:$0xff] }
 0x43d   :  { %4519 = vpow2.f32 %v3572_v1  ;;  %v6389_v1 = vld [vmem:[%s7162_s7] ss:$0 sm:$0xff]  ;;  %7555 = vst [vmem:[#allocation18_spill] sm:$0xff] %v6512_v29 }
 0x43e   :  { %v2044_v30 = vadd.f32 %v6389_v1, %v2026_v42 }
 0x447   :  { %v4514_v27 = vpop.eup %4513 }
 0x448   :  { %v4516_v49 = vpop.eup %4515  ;;  %v2034_v40 = vadd.f32 1.0, %v4514_v27 }
 0x449   :  { %v1886_v52 = vsub.f32 %v6189_v3, %v4516_v49  ;;  %v4518_v7 = vpop.eup %4517 }
 0x44a   :  { %4521 = vrcp.f32 %v2034_v40  ;;  %v4520_v27 = vpop.eup %4519 }
 0x44b   :  { %v1887_v25 = vmul.f32 %v4518_v7, %v1886_v52  ;;  %v2041_v42 = vadd.f32 1.0, %v4520_v27  ;;  %v6522_v7 = vld [vmem:[#allocation3 + $0x100] sm:$0xff]  ;;  %v6541_v27 = vld [vmem:[#allocation3 + $0xb0] sm:$0xff] }
 0x44c   :  { %7558 = vst [vmem:[#allocation21_spill] sm:$0xff] %v6522_v7  ;;  %7565 = vst [vmem:[#allocation26_spill] sm:$0xff] %v6541_v27 }
 0x44d   :  { %v1888_v35 = vadd.f32 %v4516_v49, %v1887_v25  ;;  %v6519_v49 = vld [vmem:[#allocation3 + $0xf0] sm:$0xff]  ;;  %v6525_v25 = vld [vmem:[#allocation3 + $0xe0] sm:$0xff] }
 0x44e   :  { %7557 = vst [vmem:[#allocation20_spill] sm:$0xff] %v6519_v49  ;;  %7559 = vst [vmem:[#allocation22_spill] sm:$0xff] %v6525_v25 }
 0x44f   :  { %v2060_v32 = vmul.f32 %v2058_v55, %v1888_v35  ;;  %v2071_v41 = vsub.f32 %v1888_v35, %v6189_v3  ;;  %v6529_v35 = vld [vmem:[#allocation3 + $0xd8] sm:$0xff] }
 0x450   :  { %7560 = vst [vmem:[#allocation23_spill] sm:$0xff] %v6529_v35 }
 0x451   :  { %2062 = vst [vmem:[#allocation8 + $0x30] sm:$0xff] %v2060_v32  ;;  %v2072_v4 = vmul.f32 %v2071_v41, %v2058_v55  ;;  %v7561_v55 = vld [vmem:[#allocation86_spill] sm:$0xff]  ;;  %v6537_v41 = vld [vmem:[#allocation3 + $0xc0] sm:$0xff] }
 0x452   :  { %v6533_v32 = vld [vmem:[#allocation3 + $0xc8] sm:$0xff]  ;;  %7563 = vst [vmem:[#allocation25_spill] sm:$0xff] %v6537_v41 }
 0x453   :  { %v6382_v56 = vadd.f32 %v2072_v4, %v6189_v3  ;;  %7562 = vst [vmem:[#allocation24_spill] sm:$0xff] %v6533_v32  ;;  %v7564_v4 = vld [vmem:[#allocation87_spill] sm:$0xff] }
 0x455   :  { %2148 = vmatmul.mubr.f32.vlgmr.msra.gmra.mxu1 %v6382_v56  ;;  %4183 = vmatmul.mubr.f32.vlgmr.msra.gmra.mxu0 %v6382_v56 }
 0x456   :  { %2246 = vmatpush1.msra.mxu1 %v5956_v58  ;;  %4186 = vmatpush3.msra.mxu0 %v6195_v61 }
 0x457   :  { %v4522_v52 = vpop.eup %4521  ;;  %2247 = vmatprep.subr.mxu1 %v5960_v11  ;;  %4187 = vmatprep.subr.mxu0 %v7398_v45 }
 0x458   :  { %v2045_v3 = vmul.f32 %v4522_v52, %v2044_v30  ;;  %2248 = vmatpush1.msra.mxu1 %v5964_v60  ;;  %4188 = vmatpush3.msra.mxu0 %v6201_v31  ;;  %v6545_v30 = vld [vmem:[#allocation3 + $0xa8] sm:$0xff]  ;;  %v7567_v52 = vld [vmem:[#allocation88_spill] sm:$0xff] }
 0x459   :  { %2249 = vmatprep.subr.mxu1 %v5968_v63  ;;  %4189 = vmatprep.subr.mxu0 %v7398_v45  ;;  %7566 = vst [vmem:[#allocation27_spill] sm:$0xff] %v6545_v30 }
 0x45a   :  { %v2046_v40 = vadd.f32 %v2045_v3, %v7542_v59  ;;  %2250 = vmatpush1.msra.mxu1 %v5973_v13  ;;  %4190 = vmatpush3.msra.mxu0 %v6208_v12  ;;  %v6549_v3 = vld [vmem:[#allocation3 + $0x98] sm:$0xff]  ;;  %v6553_v59 = vld [vmem:[#allocation3 + $0x90] sm:$0xff] }
 0x45b   :  { %2251 = vmatprep.subr.mxu1 %v5977_v0  ;;  %4191 = vmatprep.subr.mxu0 %v7398_v45  ;;  %v2066_v0 = vpop.permute.xlu1 %2065  ;;  %7568 = vst [vmem:[#allocation28_spill] sm:$0xff] %v6549_v3  ;;  %7569 = vst [vmem:[#allocation29_spill] sm:$0xff] %v6553_v59 }
 0x45c   :  { %4523 = vtanh.f32 %v2046_v40  ;;  %2252 = vmatpush1.msra.mxu1 %v5981_v9  ;;  %4192 = vmatpush3.msra.mxu0 %v6214_v21  ;;  %v7543_v9 = vld [vmem:[#allocation45_spill] sm:$0xff] }
 0x45d   :  { %2253 = vmatprep.subr.mxu1 %v5985_v26  ;;  %4193 = vmatprep.subr.mxu0 %v7398_v45  ;;  %4525 = vrcp.f32 %v2041_v42  ;;  %v7570_v40 = vld [vmem:[#allocation89_spill] sm:$0xff] }
 0x45e   :  { %2254 = vmatpush1.msra.mxu1 %v5989_v8  ;;  %4194 = vmatpush3.msra.mxu0 %v6220_v34  ;;  %v6557_v42 = vld [vmem:[#allocation3 + $0x80] sm:$0xff] }
 0x45f   :  { %2255 = vmatprep.subr.mxu1 %v5993_v17  ;;  %4195 = vmatprep.subr.mxu0 %v7398_v45  ;;  %v7544_v17 = vld [vmem:[#allocation82_spill] sm:$0xff]  ;;  %7571 = vst [vmem:[#allocation30_spill] sm:$0xff] %v6557_v42 }
 0x460   :  { %2256 = vmatpush1.msra.mxu1 %v5997_v14  ;;  %4196 = vmatpush3.msra.mxu0 %v6226_v54  ;;  %v7545_v14 = vld [vmem:[#allocation83_spill] sm:$0xff] }
 0x461   :  { %2257 = vmatprep.subr.mxu1 %v6001_v6  ;;  %4197 = vmatprep.subr.mxu0 %v7398_v45  ;;  %v7546_v6 = vld [vmem:[#allocation47_spill] sm:$0xff] }
 0x462   :  { %2258 = vmatpush1.msra.mxu1 %v6005_v16  ;;  %4198 = vmatpush3.msra.mxu0 %v6232_v33 }
 0x463   :  { %2259 = vmatprep.subr.mxu1 %v6009_v20  ;;  %4199 = vmatprep.subr.mxu0 %v7398_v45  ;;  %v7547_v20 = vld [vmem:[#allocation84_spill] sm:$0xff] }
 0x464   :  { %2260 = vmatpush1.msra.mxu1 %v6013_v36  ;;  %4200 = vmatpush3.msra.mxu0 %v6238_v5  ;;  %v7548_v36 = vld [vmem:[#allocation85_spill] sm:$0xff] }
 0x465   :  { %2261 = vmatprep.subr.mxu1 %v6017_v23  ;;  %4201 = vmatprep.subr.mxu0 %v7398_v45 }
 0x466   :  { %2262 = vmatpush1.msra.mxu1 %v6021_v15  ;;  %4202 = vmatpush3.msra.mxu0 %v6244_v46  ;;  %v7549_v15 = vld [vmem:[#allocation64_spill] sm:$0xff] }
 0x467   :  { %2263 = vmatprep.subr.mxu1 %v6025_v24  ;;  %4203 = vmatprep.subr.mxu0 %v7398_v45  ;;  %v6465_v24 = vld [vmem:[#allocation3 + $0x170] sm:$0xff] }
 0x468   :  { %2264 = vmatpush1.msra.mxu1 %v6029_v62  ;;  %4204 = vmatpush3.msra.mxu0 %v6250_v47  ;;  %v6469_v62 = vld [vmem:[#allocation3 + $0x168] sm:$0xff] }
 0x469   :  { %v4524_v58 = vpop.eup %4523  ;;  %2265 = vmatprep.subr.mxu1 %v6033_v2  ;;  %4205 = vmatprep.subr.mxu0 %v7398_v45  ;;  %v6472_v2 = vld [vmem:[#allocation3 + $0x178] sm:$0xff] }
 0x46a   :  { %v2048_v11 = vsub.f32 %v6290_v53, %v4524_v58  ;;  %2266 = vmatpush1.msra.mxu1 %v6038_v57  ;;  %4206 = vmatpush3.msra.mxu0 %v6257_v39  ;;  %v4526_v60 = vpop.eup %4525  ;;  %v6475_v57 = vld [vmem:[#allocation3 + $0x158] sm:$0xff] }
 0x46b   :  { %2267 = vmatprep.subr.mxu1 %v6042_v10  ;;  %4207 = vmatprep.subr.mxu0 %v7398_v45  ;;  %v6479_v10 = vld [vmem:[#allocation3 + $0x150] sm:$0xff] }
 0x46c   :  { %v2049_v63 = vmul.f32 %v4526_v60, %v2048_v11  ;;  %2268 = vmatpush1.msra.mxu1 %v6046_v44  ;;  %4208 = vmatpush3.msra.mxu0 %v6263_v38  ;;  %v6482_v44 = vld [vmem:[#allocation3 + $0x160] sm:$0xff]  ;;  %v7573_v11 = vld [vmem:[#allocation90_spill] sm:$0xff] }
 0x46d   :  { %2269 = vmatprep.subr.mxu1 %v6050_v19  ;;  %4209 = vmatprep.subr.mxu0 %v7398_v45  ;;  %v6485_v19 = vld [vmem:[#allocation3 + $0x140] sm:$0xff]  ;;  %v6565_v60 = vld [vmem:[#allocation3 + $0x68] sm:$0xff] }
 0x46e   :  { %2270 = vmatpush1.msra.mxu1 %v6054_v22  ;;  %4210 = vmatpush3.msra.mxu0 %v6269_v48  ;;  %v2050_v13 = vadd.f32 %v4524_v58, %v2049_v63  ;;  %v6489_v22 = vld [vmem:[#allocation3 + $0x138] sm:$0xff]  ;;  %7574 = vst [vmem:[#allocation32_spill] sm:$0xff] %v6565_v60  ;;  %v6569_v63 = vld [vmem:[#allocation3 + $0x60] sm:$0xff] }
 0x46f   :  { %2271 = vmatprep.subr.mxu1 %v6058_v18  ;;  %4211 = vmatprep.subr.mxu0 %v7398_v45  ;;  %v6492_v18 = vld [vmem:[#allocation3 + $0x148] sm:$0xff]  ;;  %v6561_v58 = vld [vmem:[#allocation3 + $0x78] sm:$0xff]  ;;  %7575 = vst [vmem:[#allocation33_spill] sm:$0xff] %v6569_v63 }
 0x470   :  { %2272 = vmatpush1.msra.mxu1 %v6063_v28  ;;  %4212 = vmatpush3.msra.mxu0 %v7543_v9  ;;  %v2068_v26 = vmul.f32 %v2066_v0, %v2050_v13  ;;  %v2074_v8 = vsub.f32 %v2050_v13, %v6290_v53  ;;  %v6495_v28 = vld [vmem:[#allocation3 + $0x128] sm:$0xff]  ;;  %7572 = vst [vmem:[#allocation31_spill] sm:$0xff] %v6561_v58  ;;  %v7576_v13 = vld [vmem:[#allocation91_spill] sm:$0xff] }
 0x471   :  { %2273 = vmatprep.subr.mxu1 %v7544_v17  ;;  %4213 = vmatprep.subr.mxu0 %v7398_v45  ;;  %7550 = vst [vmem:[#allocation73_spill] sm:$0xff] %v6495_v28  ;;  %v6581_v17 = vld [vmem:[#allocation3 + $0x38] sm:$0xff] }
 0x472   :  { %2274 = vmatpush1.msra.mxu1 %v7545_v14  ;;  %4214 = vmatpush3.msra.mxu0 %v7546_v6  ;;  %2070 = vst [vmem:[#allocation8 + $0x48] sm:$0xff] %v2068_v26  ;;  %v2075_v16 = vmul.f32 %v2074_v8, %v2066_v0  ;;  %v6573_v0 = vld [vmem:[#allocation3 + $0x50] sm:$0xff]  ;;  %v6577_v26 = vld [vmem:[#allocation3 + $0x48] sm:$0xff]  ;;  %v7579_v8 = vld [vmem:[#allocation92_spill] sm:$0xff] }
 0x473   :  { %2275 = vmatprep.subr.mxu1 %v7547_v20  ;;  %4215 = vmatprep.subr.mxu0 %v7398_v45  ;;  %7577 = vst [vmem:[#allocation34_spill] sm:$0xff] %v6573_v0  ;;  %7578 = vst [vmem:[#allocation35_spill] sm:$0xff] %v6577_v26  ;;  %v6585_v14 = vld [vmem:[#allocation3 + $0x30] sm:$0xff]  ;;  %v6589_v20 = vld [vmem:[#allocation3 + $0x20] sm:$0xff] }
 0x474   :  { %2276 = vmatpush1.msra.mxu1 %v7548_v36  ;;  %2309 = vmatprep.mubr.f32.mxu1 %v7398_v45  ;;  %v6458_v23 = vadd.f32 %v2075_v16, %v6290_v53  ;;  %v6499_v53 = vld [vmem:[#allocation3 + $0x120] sm:$0xff]  ;;  %7580 = vst [vmem:[#allocation36_spill] sm:$0xff] %v6581_v17  ;;  %7581 = vst [vmem:[#allocation37_spill] sm:$0xff] %v6585_v14  ;;  %v6593_v36 = vld [vmem:[#allocation3 + $0x18] sm:$0xff] }
 0x475   :  { %4216 = vmatpush3.msra.mxu0 %v7549_v15  ;;  %4217 = vmatprep.mubr.msk.f32.mxu0 %vm4897_vm1, %v7398_v45  ;;  %7551 = vst [vmem:[#allocation74_spill] sm:$0xff] %v6499_v53  ;;  %v7582_v16 = vld [vmem:[#allocation93_spill] sm:$0xff]  ;;  %7583 = vst [vmem:[#allocation38_spill] sm:$0xff] %v6589_v20 }
 0x476   :  { %2310 = vmatmul.mubr.f32.vlgmr.msra.gmra.mxu1 %v6458_v23  ;;  %4218 = vmatmul.mubr.f32.vlgmr.msra.gmra.mxu0 %v6458_v23  ;;  %7584 = vst [vmem:[#allocation75_spill] sm:$0xff] %v6593_v36 }
 0x477   :  { %2435 = vmatprep.subr.mxu1 %v6465_v24  ;;  %4220 = vmatprep.subr.mxu0 %v7398_v45 }
 0x478   :  { %2436 = vmatpush1.msra.mxu1 %v6469_v62  ;;  %4221 = vmatpush3.msra.mxu0 %v6472_v2 }
 0x479   :  { %2437 = vmatprep.subr.mxu1 %v6475_v57  ;;  %4222 = vmatprep.subr.mxu0 %v7398_v45 }
 0x47a   :  { %2438 = vmatpush1.msra.mxu1 %v6479_v10  ;;  %4223 = vmatpush3.msra.mxu0 %v6482_v44 }
 0x47b   :  { %2439 = vmatprep.subr.mxu1 %v6485_v19  ;;  %4224 = vmatprep.subr.mxu0 %v7398_v45 }
 0x47c   :  { %2440 = vmatpush1.msra.mxu1 %v6489_v22  ;;  %4225 = vmatpush3.msra.mxu0 %v6492_v18 }
 0x47d   :  { %2441 = vmatprep.subr.mxu1 %v6495_v28  ;;  %4226 = vmatprep.subr.mxu0 %v7398_v45 }
 0x47e   :  { %2442 = vmatpush1.msra.mxu1 %v6499_v53  ;;  %4227 = vmatpush3.msra.mxu0 %v6502_v51 }
 0x47f   :  { %2443 = vmatprep.subr.mxu1 %v6505_v50  ;;  %4228 = vmatprep.subr.mxu0 %v7398_v45 }
 0x480   :  { %2444 = vmatpush1.msra.mxu1 %v6509_v43  ;;  %4229 = vmatpush3.msra.mxu0 %v6512_v29 }
 0x481   :  { %2445 = vmatprep.subr.mxu1 %v6515_v37  ;;  %4230 = vmatprep.subr.mxu0 %v7398_v45 }
 0x482   :  { %2446 = vmatpush1.msra.mxu1 %v6519_v49  ;;  %4231 = vmatpush3.msra.mxu0 %v6522_v7 }
 0x483   :  { %2447 = vmatprep.subr.mxu1 %v6525_v25  ;;  %4232 = vmatprep.subr.mxu0 %v7398_v45 }
 0x484   :  { %2448 = vmatpush1.msra.mxu1 %v6529_v35  ;;  %4233 = vmatpush3.msra.mxu0 %v7561_v55  ;;  %v7585_v55 = vld [vmem:[#allocation94_spill] sm:$0xff] }
 0x485   :  { %2449 = vmatprep.subr.mxu1 %v6533_v32  ;;  %4234 = vmatprep.subr.mxu0 %v7398_v45 }
 0x486   :  { %2450 = vmatpush1.msra.mxu1 %v6537_v41  ;;  %4235 = vmatpush3.msra.mxu0 %v7564_v4  ;;  %v6597_v4 = vld [vmem:[#allocation3 + $0x8] sm:$0xff] }
 0x487   :  { %2451 = vmatprep.subr.mxu1 %v6541_v27  ;;  %4236 = vmatprep.subr.mxu0 %v7398_v45  ;;  %7586 = vst [vmem:[#allocation76_spill] sm:$0xff] %v6597_v4 }
 0x488   :  { %2452 = vmatpush1.msra.mxu1 %v6545_v30  ;;  %4237 = vmatpush3.msra.mxu0 %v7567_v52  ;;  %v6601_v52 = vld [vmem:[#allocation3] sm:$0xff] }
 0x489   :  { %2453 = vmatprep.subr.mxu1 %v6549_v3  ;;  %4238 = vmatprep.subr.mxu0 %v7398_v45  ;;  %7587 = vst [vmem:[#allocation77_spill] sm:$0xff] %v6601_v52 }
 0x48a   :  { %2454 = vmatpush1.msra.mxu1 %v6553_v59  ;;  %4239 = vmatpush3.msra.mxu0 %v7570_v40  ;;  %v7588_v40 = vld [vmem:[#allocation95_spill] sm:$0xff]  ;;  %v7593_v59 = vld [vmem:[#allocation58_spill] sm:$0xff] }
 0x48b   :  { %2455 = vmatprep.subr.mxu1 %v6557_v42  ;;  %4240 = vmatprep.subr.mxu0 %v7398_v45 }
 0x48c   :  { %2456 = vmatpush1.msra.mxu1 %v6561_v58  ;;  %4241 = vmatpush3.msra.mxu0 %v7573_v11  ;;  %v6608_v11 = vld [vmem:[#allocation6 + $0x170] sm:$0xff] }
 0x48d   :  { %2457 = vmatprep.subr.mxu1 %v6565_v60  ;;  %4242 = vmatprep.subr.mxu0 %v7398_v45  ;;  %7589 = vst [vmem:[#allocation78_spill] sm:$0xff] %v6608_v11 }
 0x48e   :  { %2458 = vmatpush1.msra.mxu1 %v6569_v63  ;;  %4243 = vmatpush3.msra.mxu0 %v7576_v13  ;;  %v7592_v63 = vld [vmem:[#allocation55_spill] sm:$0xff] }
 0x48f   :  { %2459 = vmatprep.subr.mxu1 %v6573_v0  ;;  %4244 = vmatprep.subr.mxu0 %v7398_v45 }
 0x490   :  { %2460 = vmatpush1.msra.mxu1 %v6577_v26  ;;  %4245 = vmatpush3.msra.mxu0 %v7579_v8 }
 0x491   :  { %2461 = vmatprep.subr.mxu1 %v6581_v17  ;;  %4246 = vmatprep.subr.mxu0 %v7398_v45 }
 0x492   :  { %2462 = vmatpush1.msra.mxu1 %v6585_v14  ;;  %4247 = vmatpush3.msra.mxu0 %v7582_v16  ;;  %v7590_v16 = vld [vmem:[#allocation39_spill] sm:$0xff] }
 0x493   :  { %2463 = vmatprep.subr.mxu1 %v6589_v20  ;;  %4248 = vmatprep.subr.mxu0 %v7398_v45 }
 0x494   :  { %2464 = vmatpush1.msra.mxu1 %v6593_v36  ;;  %4249 = vmatpush3.msra.mxu0 %v7585_v55 }
 0x495   :  { %2465 = vmatprep.subr.mxu1 %v6597_v4  ;;  %4250 = vmatprep.subr.mxu0 %v7398_v45 }
 0x496   :  { %2466 = vmatpush1.msra.mxu1 %v6601_v52  ;;  %4251 = vmatpush3.msra.mxu0 %v7588_v40  ;;  %v7591_v40 = vld [vmem:[#allocation40_spill] sm:$0xff] }
 0x497   :  { %2499 = vmatprep.mubr.f32.mxu1 %v7398_v45  ;;  %4252 = vmatprep.mubr.msk.f32.mxu0 %vm4897_vm1, %v7398_v45 }
 0x498   :  { %2597 = vmatprep.subr.mxu1 %v6608_v11  ;;  %4255 = vmatprep.subr.mxu0 %v7398_v45 }
 0x515   :  { %v2149_v13 = vpop.f32.mrf.mxu1  ;;  %v2220_v8 = vpop.f32.mrf.mxu0 }
 0x516   :  { %v2224_v55 = vadd.f32 %v2149_v13, %v7590_v16  ;;  %v2238_v11 = vadd.f32 %v7592_v63, %v2220_v8 }
 0x517   :  { %v4184_v4 = vpop.f32.mrf.mxu0  ;;  %v2151_v52 = vpop.f32.mrf.mxu1 }
 0x518   :  { %v3575_v36 = vmul.f32 -1.442695, %v2224_v55  ;;  %v2231_v20 = vadd.f32 %v2151_v52, %v7591_v40 }
 0x51a   :  { %4527 = vpow2.f32 %v3575_v36  ;;  %v3576_v14 = vmul.f32 -1.442695, %v2231_v20  ;;  %v7594_v36 = vld [vmem:[#allocation60_spill] sm:$0xff] }
 0x51c   :  { %4529 = vpow2.f32 %v3576_v14  ;;  %v7595_v14 = vld [vmem:[#allocation69_spill] sm:$0xff] }
 0x527   :  { %v4528_v17 = vpop.eup %4527 }
 0x528   :  { %v2228_v26 = vadd.f32 1.0, %v4528_v17 }
 0x529   :  { %v4530_v0 = vpop.eup %4529 }
 0x52a   :  { %4531 = vrcp.f32 %v2228_v26  ;;  %v2235_v30 = vadd.f32 1.0, %v4530_v0 }
 0x536   :  { %v2311_v60 = vpop.f32.mrf.mxu1  ;;  %v2382_v58 = vpop.f32.mrf.mxu0 }
 0x537   :  { %v4532_v42 = vpop.eup %4531  ;;  %v2386_v3 = vadd.f32 %v2311_v60, %v7593_v59  ;;  %v2412_v60 = vpop.permute.xlu0 %2411 }
 0x538   :  { %v2239_v13 = vmul.f32 %v4532_v42, %v2238_v11  ;;  %v4219_v4 = vpop.f32.mrf.mxu0  ;;  %v2313_v17 = vpop.f32.mrf.mxu1 }
 0x539   :  { %v3577_v16 = vmul.f32 -1.442695, %v2386_v3  ;;  %v2393_v26 = vadd.f32 %v2313_v17, %v7595_v14  ;;  %v6634_v17 = vld [vmem:[#allocation6 + $0x150] sm:$0xff] }
 0x53a   :  { %v2240_v55 = vadd.f32 %v2239_v13, %v7594_v36  ;;  %v6626_v36 = vld [vmem:[#allocation6 + $0x168] sm:$0xff] }
 0x53b   :  { %4533 = vpow2.f32 %v3577_v16  ;;  %v3578_v20 = vmul.f32 -1.442695, %v2393_v26  ;;  %v2400_v16 = vadd.f32 %v6389_v1, %v2382_v58  ;;  %v6638_v58 = vld [vmem:[#allocation6 + $0x140] sm:$0xff] }
 0x53c   :  { %4535 = vtanh.f32 %v2240_v55  ;;  %v6630_v55 = vld [vmem:[#allocation6 + $0x158] sm:$0xff] }
 0x53d   :  { %4537 = vrcp.f32 %v2235_v30 }
 0x53e   :  { %4539 = vpow2.f32 %v3578_v20  ;;  %v6643_v20 = vld [vmem:[#allocation6 + $0x138] sm:$0xff] }
 0x548   :  { %v4534_v52 = vpop.eup %4533 }
 0x549   :  { %v4536_v8 = vpop.eup %4535  ;;  %v2390_v40 = vadd.f32 1.0, %v4534_v52  ;;  %v6647_v52 = vld [vmem:[#allocation6 + $0x128] sm:$0xff] }
 0x54a   :  { %v2242_v63 = vsub.f32 %v6382_v56, %v4536_v8  ;;  %v4538_v59 = vpop.eup %4537 }
 0x54b   :  { %4541 = vrcp.f32 %v2390_v40  ;;  %v4540_v4 = vpop.eup %4539  ;;  %v6663_v40 = vld [vmem:[#allocation6 + $0xf8] sm:$0xff] }
 0x54c   :  { %v2243_v42 = vmul.f32 %v4538_v59, %v2242_v63  ;;  %v2397_v26 = vadd.f32 1.0, %v4540_v4  ;;  %v6671_v59 = vld [vmem:[#allocation6 + $0xe0] sm:$0xff] }
 0x54e   :  { %v2244_v3 = vadd.f32 %v4536_v8, %v2243_v42  ;;  %v6655_v8 = vld [vmem:[#allocation6 + $0x110] sm:$0xff]  ;;  %v6675_v42 = vld [vmem:[#allocation6 + $0xd8] sm:$0xff] }
 0x550   :  { %v2414_v11 = vmul.f32 %v2412_v60, %v2244_v3  ;;  %v2423_v0 = vsub.f32 %v2244_v3, %v6382_v56  ;;  %v6683_v3 = vld [vmem:[#allocation6 + $0xc0] sm:$0xff] }
 0x552   :  { %2415 = vst [vmem:[#allocation8 + $0x40] sm:$0xff] %v2414_v11  ;;  %v2424_v30 = vmul.f32 %v2423_v0, %v2412_v60  ;;  %v6691_v60 = vld [vmem:[#allocation6 + $0xa8] sm:$0xff]  ;;  %v6699_v11 = vld [vmem:[#allocation6 + $0x90] sm:$0xff]  ;;  %v6703_v0 = vld [vmem:[#allocation6 + $0x80] sm:$0xff] }
 0x554   :  { %v6621_v13 = vadd.f32 %v2424_v30, %v6382_v56  ;;  %v6708_v30 = vld [vmem:[#allocation6 + $0x78] sm:$0xff] }
 0x556   :  { %2500 = vmatmul.mubr.f32.vlgmr.msra.gmra.mxu1 %v6621_v13  ;;  %4253 = vmatmul.mubr.f32.vlgmr.msra.gmra.mxu0 %v6621_v13 }
 0x557   :  { %2598 = vmatpush1.msra.mxu1 %v6626_v36  ;;  %4256 = vmatpush3.msra.mxu0 %v6195_v61  ;;  %v7596_v61 = vld [vmem:[#allocation70_spill] sm:$0xff] }
 0x558   :  { %v4542_v63 = vpop.eup %4541  ;;  %2599 = vmatprep.subr.mxu1 %v6630_v55  ;;  %4257 = vmatprep.subr.mxu0 %v7398_v45 }
 0x559   :  { %v2401_v56 = vmul.f32 %v4542_v63, %v2400_v16  ;;  %2600 = vmatpush1.msra.mxu1 %v6634_v17  ;;  %4258 = vmatpush3.msra.mxu0 %v6201_v31  ;;  %v6651_v31 = vld [vmem:[#allocation6 + $0x120] sm:$0xff]  ;;  %v6712_v16 = vld [vmem:[#allocation6 + $0x68] sm:$0xff] }
 0x55a   :  { %2601 = vmatprep.subr.mxu1 %v6638_v58  ;;  %4259 = vmatprep.subr.mxu0 %v7398_v45  ;;  %v6716_v63 = vld [vmem:[#allocation6 + $0x60] sm:$0xff] }
 0x55b   :  { %v2402_v14 = vadd.f32 %v2401_v56, %v7596_v61  ;;  %2602 = vmatpush1.msra.mxu1 %v6643_v20  ;;  %4260 = vmatpush3.msra.mxu0 %v6208_v12  ;;  %v6659_v12 = vld [vmem:[#allocation6 + $0x108] sm:$0xff]  ;;  %v6720_v56 = vld [vmem:[#allocation6 + $0x50] sm:$0xff] }
 0x55c   :  { %2603 = vmatprep.subr.mxu1 %v6647_v52  ;;  %4261 = vmatprep.subr.mxu0 %v7398_v45 }
 0x55d   :  { %4543 = vtanh.f32 %v2402_v14  ;;  %2604 = vmatpush1.msra.mxu1 %v6651_v31  ;;  %4262 = vmatpush3.msra.mxu0 %v6214_v21  ;;  %v6667_v21 = vld [vmem:[#allocation6 + $0xf0] sm:$0xff]  ;;  %v2419_v14 = vpop.permute.xlu1 %2418 }
 0x55e   :  { %2605 = vmatprep.subr.mxu1 %v6655_v8  ;;  %4263 = vmatprep.subr.mxu0 %v7398_v45  ;;  %4545 = vrcp.f32 %v2397_v26  ;;  %v6728_v26 = vld [vmem:[#allocation6 + $0x38] sm:$0xff] }
 0x55f   :  { %2606 = vmatpush1.msra.mxu1 %v6659_v12  ;;  %4264 = vmatpush3.msra.mxu0 %v6220_v34  ;;  %v6679_v34 = vld [vmem:[#allocation6 + $0xc8] sm:$0xff] }
 0x560   :  { %2607 = vmatprep.subr.mxu1 %v6663_v40  ;;  %4265 = vmatprep.subr.mxu0 %v7398_v45 }
 0x561   :  { %2608 = vmatpush1.msra.mxu1 %v6667_v21  ;;  %4266 = vmatpush3.msra.mxu0 %v6226_v54  ;;  %v6687_v54 = vld [vmem:[#allocation6 + $0xb0] sm:$0xff] }
 0x562   :  { %2609 = vmatprep.subr.mxu1 %v6671_v59  ;;  %4267 = vmatprep.subr.mxu0 %v7398_v45 }
 0x563   :  { %2610 = vmatpush1.msra.mxu1 %v6675_v42  ;;  %4268 = vmatpush3.msra.mxu0 %v6232_v33  ;;  %v6695_v33 = vld [vmem:[#allocation6 + $0x98] sm:$0xff] }
 0x564   :  { %2611 = vmatprep.subr.mxu1 %v6679_v34  ;;  %4269 = vmatprep.subr.mxu0 %v7398_v45 }
 0x565   :  { %2612 = vmatpush1.msra.mxu1 %v6683_v3  ;;  %4270 = vmatpush3.msra.mxu0 %v6238_v5 }
 0x566   :  { %2613 = vmatprep.subr.mxu1 %v6687_v54  ;;  %4271 = vmatprep.subr.mxu0 %v7398_v45 }
 0x567   :  { %2614 = vmatpush1.msra.mxu1 %v6691_v60  ;;  %4272 = vmatpush3.msra.mxu0 %v6244_v46 }
 0x568   :  { %2615 = vmatprep.subr.mxu1 %v6695_v33  ;;  %4273 = vmatprep.subr.mxu0 %v7398_v45 }
 0x569   :  { %2616 = vmatpush1.msra.mxu1 %v6699_v11  ;;  %4274 = vmatpush3.msra.mxu0 %v6250_v47 }
 0x56a   :  { %v4544_v5 = vpop.eup %4543  ;;  %2617 = vmatprep.subr.mxu1 %v6703_v0  ;;  %4275 = vmatprep.subr.mxu0 %v7398_v45 }
 0x56b   :  { %v2404_v46 = vsub.f32 %v6458_v23, %v4544_v5  ;;  %2618 = vmatpush1.msra.mxu1 %v6708_v30  ;;  %4276 = vmatpush3.msra.mxu0 %v6257_v39  ;;  %v4546_v4 = vpop.eup %4545  ;;  %v6724_v39 = vld [vmem:[#allocation6 + $0x48] sm:$0xff] }
 0x56c   :  { %2619 = vmatprep.subr.mxu1 %v6712_v16  ;;  %4277 = vmatprep.subr.mxu0 %v7398_v45  ;;  %7597 = vst [vmem:[#allocation79_spill] sm:$0xff] %v6724_v39 }
 0x56d   :  { %v2405_v47 = vmul.f32 %v4546_v4, %v2404_v46  ;;  %2620 = vmatpush1.msra.mxu1 %v6716_v63  ;;  %4278 = vmatpush3.msra.mxu0 %v6263_v38  ;;  %v6732_v38 = vld [vmem:[#allocation6 + $0x30] sm:$0xff] }
 0x56e   :  { %2621 = vmatprep.subr.mxu1 %v6720_v56  ;;  %4279 = vmatprep.subr.mxu0 %v7398_v45 }
 0x56f   :  { %2622 = vmatpush1.msra.mxu1 %v6724_v39  ;;  %4280 = vmatpush3.msra.mxu0 %v6269_v48  ;;  %v2406_v61 = vadd.f32 %v4544_v5, %v2405_v47  ;;  %v6737_v39 = vld [vmem:[#allocation6 + $0x20] sm:$0xff]  ;;  %v6741_v48 = vld [vmem:[#allocation6 + $0x18] sm:$0xff]  ;;  %v6745_v47 = vld [vmem:[#allocation6 + $0x8] sm:$0xff] }
 0x570   :  { %2623 = vmatprep.subr.mxu1 %v6728_v26  ;;  %4281 = vmatprep.subr.mxu0 %v7398_v45  ;;  %7598 = vst [vmem:[#allocation80_spill] sm:$0xff] %v6737_v39  ;;  %7599 = vst [vmem:[#allocation81_spill] sm:$0xff] %v6741_v48 }
 0x571   :  { %2624 = vmatpush1.msra.mxu1 %v6732_v38  ;;  %4282 = vmatpush3.msra.mxu0 %v7543_v9  ;;  %v2421_v46 = vmul.f32 %v2419_v14, %v2406_v61  ;;  %v2426_v4 = vsub.f32 %v2406_v61, %v6458_v23  ;;  %7600 = vst [vmem:[#allocation49_spill] sm:$0xff] %v6745_v47  ;;  %v6749_v9 = vld [vmem:[#allocation6] sm:$0xff] }
 0x572   :  { %2625 = vmatprep.subr.mxu1 %v6737_v39  ;;  %4283 = vmatprep.subr.mxu0 %v7398_v45  ;;  %7601 = vst [vmem:[#allocation50_spill] sm:$0xff] %v6749_v9 }
 0x573   :  { %2626 = vmatpush1.msra.mxu1 %v6741_v48  ;;  %4284 = vmatpush3.msra.mxu0 %v7546_v6  ;;  %2422 = vst [vmem:[#allocation8 + $0x38] sm:$0xff] %v2421_v46  ;;  %v2427_v5 = vmul.f32 %v2426_v4, %v2419_v14  ;;  %v6788_v6 = vld [vmem:[#allocation3 + $0xe8] sm:$0xff]  ;;  %v6800_v14 = vld [vmem:[#allocation3 + $0xb8] sm:$0xff]  ;;  %v7607_v4 = vld [vmem:[#allocation29_spill] sm:$0xff] }
 0x574   :  { %2627 = vmatprep.subr.mxu1 %v6745_v47  ;;  %4285 = vmatprep.subr.mxu0 %v7398_v45  ;;  %7602 = vst [vmem:[#allocation62_spill] sm:$0xff] %v6788_v6  ;;  %7605 = vst [vmem:[#allocation71_spill] sm:$0xff] %v6800_v14  ;;  %v7606_v46 = vld [vmem:[#allocation28_spill] sm:$0xff] }
 0x575   :  { %2628 = vmatpush1.msra.mxu1 %v6749_v9  ;;  %2661 = vmatprep.mubr.f32.mxu1 %v7398_v45  ;;  %v6754_v61 = vadd.f32 %v2427_v5, %v6458_v23  ;;  %v6794_v23 = vld [vmem:[#allocation3 + $0xd0] sm:$0xff]  ;;  %v6806_v5 = vld [vmem:[#allocation3 + $0xa0] sm:$0xff] }
 0x576   :  { %4286 = vmatpush3.msra.mxu0 %v7549_v15  ;;  %4287 = vmatprep.mubr.msk.f32.mxu0 %vm4897_vm1, %v7398_v45  ;;  %7603 = vst [vmem:[#allocation57_spill] sm:$0xff] %v6794_v23  ;;  %v7604_v15 = vld [vmem:[#allocation27_spill] sm:$0xff]  ;;  %7608 = vst [vmem:[#allocation72_spill] sm:$0xff] %v6806_v5 }
 0x577   :  { %2662 = vmatmul.mubr.f32.vlgmr.msra.gmra.mxu1 %v6754_v61  ;;  %4288 = vmatmul.mubr.f32.vlgmr.msra.gmra.mxu0 %v6754_v61 }
 0x578   :  { %2787 = vmatprep.subr.mxu1 %v6465_v24  ;;  %4290 = vmatprep.subr.mxu0 %v7398_v45 }
 0x579   :  { %2788 = vmatpush1.msra.mxu1 %v6469_v62  ;;  %4291 = vmatpush3.msra.mxu0 %v6472_v2 }
 0x57a   :  { %2789 = vmatprep.subr.mxu1 %v6475_v57  ;;  %4292 = vmatprep.subr.mxu0 %v7398_v45 }
 0x57b   :  { %2790 = vmatpush1.msra.mxu1 %v6479_v10  ;;  %4293 = vmatpush3.msra.mxu0 %v6482_v44 }
 0x57c   :  { %2791 = vmatprep.subr.mxu1 %v6485_v19  ;;  %4294 = vmatprep.subr.mxu0 %v7398_v45 }
 0x57d   :  { %2792 = vmatpush1.msra.mxu1 %v6489_v22  ;;  %4295 = vmatpush3.msra.mxu0 %v6492_v18 }
 0x57e   :  { %2793 = vmatprep.subr.mxu1 %v6495_v28  ;;  %4296 = vmatprep.subr.mxu0 %v7398_v45 }
 0x57f   :  { %2794 = vmatpush1.msra.mxu1 %v6499_v53  ;;  %4297 = vmatpush3.msra.mxu0 %v6502_v51  ;;  %v7631_v51 = vld [vmem:[#allocation56_spill] sm:$0xff] }
 0x580   :  { %2795 = vmatprep.subr.mxu1 %v6505_v50  ;;  %4298 = vmatprep.subr.mxu0 %v7398_v45 }
 0x581   :  { %2796 = vmatpush1.msra.mxu1 %v6509_v43  ;;  %4299 = vmatpush3.msra.mxu0 %v6512_v29 }
 0x582   :  { %2797 = vmatprep.subr.mxu1 %v6515_v37  ;;  %4300 = vmatprep.subr.mxu0 %v7398_v45  ;;  %v7630_v37 = vld [vmem:[#allocation55_spill] sm:$0xff] }
 0x583   :  { %2798 = vmatpush1.msra.mxu1 %v6519_v49  ;;  %4301 = vmatpush3.msra.mxu0 %v6522_v7 }
 0x584   :  { %2799 = vmatprep.subr.mxu1 %v6525_v25  ;;  %4302 = vmatprep.subr.mxu0 %v7398_v45 }
 0x585   :  { %2800 = vmatpush1.msra.mxu1 %v6529_v35  ;;  %4303 = vmatpush3.msra.mxu0 %v6788_v6  ;;  %v7629_v6 = vld [vmem:[#allocation42_spill] sm:$0xff] }
 0x586   :  { %2801 = vmatprep.subr.mxu1 %v6533_v32  ;;  %4304 = vmatprep.subr.mxu0 %v7398_v45 }
 0x587   :  { %2802 = vmatpush1.msra.mxu1 %v6537_v41  ;;  %4305 = vmatpush3.msra.mxu0 %v6794_v23  ;;  %v7609_v23 = vld [vmem:[#allocation30_spill] sm:$0xff] }
 0x588   :  { %2803 = vmatprep.subr.mxu1 %v6541_v27  ;;  %4306 = vmatprep.subr.mxu0 %v7398_v45  ;;  %v7610_v27 = vld [vmem:[#allocation31_spill] sm:$0xff] }
 0x589   :  { %2804 = vmatpush1.msra.mxu1 %v7604_v15  ;;  %4307 = vmatpush3.msra.mxu0 %v6800_v14  ;;  %v6812_v15 = vld [vmem:[#allocation3 + $0x88] sm:$0xff]  ;;  %v7612_v14 = vld [vmem:[#allocation32_spill] sm:$0xff] }
 0x58a   :  { %2805 = vmatprep.subr.mxu1 %v7606_v46  ;;  %4308 = vmatprep.subr.mxu0 %v7398_v45  ;;  %7611 = vst [vmem:[#allocation45_spill] sm:$0xff] %v6812_v15  ;;  %v7613_v46 = vld [vmem:[#allocation33_spill] sm:$0xff] }
 0x58b   :  { %2806 = vmatpush1.msra.mxu1 %v7607_v4  ;;  %4309 = vmatpush3.msra.mxu0 %v6806_v5  ;;  %v6818_v4 = vld [vmem:[#allocation3 + $0x70] sm:$0xff]  ;;  %v7615_v5 = vld [vmem:[#allocation34_spill] sm:$0xff] }
 0x58c   :  { %2807 = vmatprep.subr.mxu1 %v7609_v23  ;;  %4310 = vmatprep.subr.mxu0 %v7398_v45  ;;  %7614 = vst [vmem:[#allocation82_spill] sm:$0xff] %v6818_v4  ;;  %v7616_v23 = vld [vmem:[#allocation35_spill] sm:$0xff] }
 0x58d   :  { %2808 = vmatpush1.msra.mxu1 %v7610_v27  ;;  %4311 = vmatpush3.msra.mxu0 %v6812_v15  ;;  %v6824_v27 = vld [vmem:[#allocation3 + $0x58] sm:$0xff] }
 0x58e   :  { %2809 = vmatprep.subr.mxu1 %v7612_v14  ;;  %4312 = vmatprep.subr.mxu0 %v7398_v45  ;;  %7617 = vst [vmem:[#allocation83_spill] sm:$0xff] %v6824_v27  ;;  %v7618_v15 = vld [vmem:[#allocation36_spill] sm:$0xff]  ;;  %v7619_v14 = vld [vmem:[#allocation37_spill] sm:$0xff] }
 0x58f   :  { %2810 = vmatpush1.msra.mxu1 %v7613_v46  ;;  %4313 = vmatpush3.msra.mxu0 %v6818_v4  ;;  %v6830_v46 = vld [vmem:[#allocation3 + $0x40] sm:$0xff]  ;;  %v7621_v4 = vld [vmem:[#allocation38_spill] sm:$0xff] }
 0x590   :  { %2811 = vmatprep.subr.mxu1 %v7615_v5  ;;  %4314 = vmatprep.subr.mxu0 %v7398_v45  ;;  %7620 = vst [vmem:[#allocation47_spill] sm:$0xff] %v6830_v46  ;;  %v7622_v5 = vld [vmem:[#allocation75_spill] sm:$0xff] }
 0x591   :  { %2812 = vmatpush1.msra.mxu1 %v7616_v23  ;;  %4315 = vmatpush3.msra.mxu0 %v6824_v27  ;;  %v6836_v23 = vld [vmem:[#allocation3 + $0x28] sm:$0xff]  ;;  %v7624_v27 = vld [vmem:[#allocation76_spill] sm:$0xff] }
 0x592   :  { %2813 = vmatprep.subr.mxu1 %v7618_v15  ;;  %4316 = vmatprep.subr.mxu0 %v7398_v45  ;;  %7623 = vst [vmem:[#allocation84_spill] sm:$0xff] %v6836_v23  ;;  %v7625_v15 = vld [vmem:[#allocation77_spill] sm:$0xff] }
 0x593   :  { %2814 = vmatpush1.msra.mxu1 %v7619_v14  ;;  %4317 = vmatpush3.msra.mxu0 %v6830_v46  ;;  %v6842_v14 = vld [vmem:[#allocation3 + $0x10] sm:$0xff] }
 0x594   :  { %2815 = vmatprep.subr.mxu1 %v7621_v4  ;;  %4318 = vmatprep.subr.mxu0 %v7398_v45  ;;  %7626 = vst [vmem:[#allocation85_spill] sm:$0xff] %v6842_v14 }
 0x595   :  { %2816 = vmatpush1.msra.mxu1 %v7622_v5  ;;  %4319 = vmatpush3.msra.mxu0 %v6836_v23  ;;  %v7627_v5 = vld [vmem:[#allocation78_spill] sm:$0xff] }
 0x596   :  { %2817 = vmatprep.subr.mxu1 %v7624_v27  ;;  %4320 = vmatprep.subr.mxu0 %v7398_v45  ;;  %v7628_v27 = vld [vmem:[#allocation41_spill] sm:$0xff] }
 0x597   :  { %2818 = vmatpush1.msra.mxu1 %v7625_v15  ;;  %4321 = vmatpush3.msra.mxu0 %v6842_v14 }
 0x598   :  { %2851 = vmatprep.mubr.f32.mxu1 %v7398_v45  ;;  %4322 = vmatprep.mubr.msk.f32.mxu0 %vm4897_vm1, %v7398_v45 }
 0x599   :  { %2949 = vmatprep.subr.mxu1 %v7627_v5  ;;  %4325 = vmatprep.subr.mxu0 %v7398_v45 }
 0x616   :  { %v2501_v23 = vpop.f32.mrf.mxu1  ;;  %v2572_v4 = vpop.f32.mrf.mxu0 }
 0x617   :  { %v2576_v46 = vadd.f32 %v2501_v23, %v7628_v27  ;;  %v2590_v5 = vadd.f32 %v7630_v37, %v2572_v4 }
 0x618   :  { %v4254_v41 = vpop.f32.mrf.mxu0  ;;  %v2503_v15 = vpop.f32.mrf.mxu1 }
 0x619   :  { %v3581_v32 = vmul.f32 -1.442695, %v2576_v46  ;;  %v2583_v35 = vadd.f32 %v2503_v15, %v7629_v6 }
 0x61b   :  { %4547 = vpow2.f32 %v3581_v32  ;;  %v3582_v14 = vmul.f32 -1.442695, %v2583_v35  ;;  %v7632_v32 = vld [vmem:[#allocation63_spill] sm:$0xff]  ;;  %v7633_v35 = vld [vmem:[#allocation66_spill] sm:$0xff] }
 0x61d   :  { %4549 = vpow2.f32 %v3582_v14 }
 0x628   :  { %v4548_v25 = vpop.eup %4547 }
 0x629   :  { %v2580_v7 = vadd.f32 1.0, %v4548_v25 }
 0x62a   :  { %v4550_v49 = vpop.eup %4549 }
 0x62b   :  { %4551 = vrcp.f32 %v2580_v7  ;;  %v2587_v28 = vadd.f32 1.0, %v4550_v49 }
 0x637   :  { %v2663_v29 = vpop.f32.mrf.mxu1  ;;  %v2734_v43 = vpop.f32.mrf.mxu0 }
 0x638   :  { %v4552_v50 = vpop.eup %4551  ;;  %v2738_v53 = vadd.f32 %v2663_v29, %v7631_v51  ;;  %v2764_v29 = vpop.permute.xlu0 %2763 }
 0x639   :  { %v2591_v27 = vmul.f32 %v4552_v50, %v2590_v5  ;;  %v4289_v41 = vpop.f32.mrf.mxu0  ;;  %v2665_v25 = vpop.f32.mrf.mxu1 }
 0x63a   :  { %v3583_v23 = vmul.f32 -1.442695, %v2738_v53  ;;  %v2745_v7 = vadd.f32 %v2665_v25, %v7633_v35  ;;  %v6871_v25 = vld [vmem:[#allocation6 + $0x160] sm:$0xff] }
 0x63b   :  { %v2592_v46 = vadd.f32 %v2591_v27, %v7632_v32  ;;  %v6865_v32 = vld [vmem:[#allocation6 + $0x178] sm:$0xff] }
 0x63c   :  { %4553 = vpow2.f32 %v3583_v23  ;;  %v3584_v6 = vmul.f32 -1.442695, %v2745_v7  ;;  %v2752_v23 = vadd.f32 %v6389_v1, %v2734_v43  ;;  %v7634_v1 = vld [vmem:[#allocation68_spill] sm:$0xff]  ;;  %v6878_v7 = vld [vmem:[#allocation6 + $0x148] sm:$0xff] }
 0x63d   :  { %4555 = vtanh.f32 %v2592_v46 }
 0x63e   :  { %4557 = vrcp.f32 %v2587_v28 }
 0x63f   :  { %4559 = vpow2.f32 %v3584_v6  ;;  %v6884_v6 = vld [vmem:[#allocation6 + $0x130] sm:$0xff] }
 0x649   :  { %v4554_v15 = vpop.eup %4553 }
 0x64a   :  { %v4556_v37 = vpop.eup %4555  ;;  %v2742_v14 = vadd.f32 1.0, %v4554_v15  ;;  %v6890_v15 = vld [vmem:[#allocation6 + $0x118] sm:$0xff] }
 0x64b   :  { %v2594_v4 = vsub.f32 %v6621_v13, %v4556_v37  ;;  %v4558_v51 = vpop.eup %4557 }
 0x64c   :  { %4561 = vrcp.f32 %v2742_v14  ;;  %v4560_v41 = vpop.eup %4559  ;;  %v6902_v14 = vld [vmem:[#allocation6 + $0xe8] sm:$0xff] }
 0x64d   :  { %v2595_v50 = vmul.f32 %v4558_v51, %v2594_v4  ;;  %v2749_v35 = vadd.f32 1.0, %v4560_v41  ;;  %v6908_v4 = vld [vmem:[#allocation6 + $0xd0] sm:$0xff]  ;;  %v6914_v51 = vld [vmem:[#allocation6 + $0xb8] sm:$0xff] }
 0x64e   :  { %v6933_v41 = vld [vmem:[#allocation6 + $0x70] sm:$0xff] }
 0x64f   :  { %v2596_v53 = vadd.f32 %v4556_v37, %v2595_v50  ;;  %v6896_v37 = vld [vmem:[#allocation6 + $0x100] sm:$0xff] }
 0x650   :  { %v6920_v50 = vld [vmem:[#allocation6 + $0xa0] sm:$0xff] }
 0x651   :  { %v2766_v5 = vmul.f32 %v2764_v29, %v2596_v53  ;;  %v2775_v49 = vsub.f32 %v2596_v53, %v6621_v13 }
 0x653   :  { %2767 = vst [vmem:[#allocation8 + $0x50] sm:$0xff] %v2766_v5  ;;  %v2776_v28 = vmul.f32 %v2775_v49, %v2764_v29  ;;  %v6927_v5 = vld [vmem:[#allocation6 + $0x88] sm:$0xff] }
 0x655   :  { %v6859_v27 = vadd.f32 %v2776_v28, %v6621_v13 }
 0x657   :  { %2852 = vmatmul.mubr.f32.vlgmr.msra.gmra.mxu1 %v6859_v27  ;;  %4323 = vmatmul.mubr.f32.vlgmr.msra.gmra.mxu0 %v6859_v27 }
 0x658   :  { %2950 = vmatpush1.msra.mxu1 %v6626_v36  ;;  %4326 = vmatpush3.msra.mxu0 %v6865_v32 }
 0x659   :  { %v4562_v46 = vpop.eup %4561  ;;  %2951 = vmatprep.subr.mxu1 %v6630_v55  ;;  %4327 = vmatprep.subr.mxu0 %v7398_v45 }
 0x65a   :  { %v2753_v13 = vmul.f32 %v4562_v46, %v2752_v23  ;;  %2952 = vmatpush1.msra.mxu1 %v6634_v17  ;;  %4328 = vmatpush3.msra.mxu0 %v6871_v25  ;;  %v7635_v23 = vld [vmem:[#allocation79_spill] sm:$0xff]  ;;  %v6939_v46 = vld [vmem:[#allocation6 + $0x58] sm:$0xff] }
 0x65b   :  { %2953 = vmatprep.subr.mxu1 %v6638_v58  ;;  %4329 = vmatprep.subr.mxu0 %v7398_v45 }
 0x65c   :  { %v2754_v43 = vadd.f32 %v2753_v13, %v7634_v1  ;;  %2954 = vmatpush1.msra.mxu1 %v6643_v20  ;;  %4330 = vmatpush3.msra.mxu0 %v6878_v7  ;;  %v2771_v1 = vpop.permute.xlu1 %2770 }
 0x65d   :  { %2955 = vmatprep.subr.mxu1 %v6647_v52  ;;  %4331 = vmatprep.subr.mxu0 %v7398_v45 }
 0x65e   :  { %4563 = vtanh.f32 %v2754_v43  ;;  %2956 = vmatpush1.msra.mxu1 %v6651_v31  ;;  %4332 = vmatpush3.msra.mxu0 %v6884_v6  ;;  %v6945_v43 = vld [vmem:[#allocation6 + $0x40] sm:$0xff] }
 0x65f   :  { %2957 = vmatprep.subr.mxu1 %v6655_v8  ;;  %4333 = vmatprep.subr.mxu0 %v7398_v45  ;;  %4565 = vrcp.f32 %v2749_v35  ;;  %7636 = vst [vmem:[#allocation64_spill] sm:$0xff] %v6945_v43 }
 0x660   :  { %2958 = vmatpush1.msra.mxu1 %v6659_v12  ;;  %4334 = vmatpush3.msra.mxu0 %v6890_v15 }
 0x661   :  { %2959 = vmatprep.subr.mxu1 %v6663_v40  ;;  %4335 = vmatprep.subr.mxu0 %v7398_v45 }
 0x662   :  { %2960 = vmatpush1.msra.mxu1 %v6667_v21  ;;  %4336 = vmatpush3.msra.mxu0 %v6896_v37 }
 0x663   :  { %2961 = vmatprep.subr.mxu1 %v6671_v59  ;;  %4337 = vmatprep.subr.mxu0 %v7398_v45 }
 0x664   :  { %2962 = vmatpush1.msra.mxu1 %v6675_v42  ;;  %4338 = vmatpush3.msra.mxu0 %v6902_v14 }
 0x665   :  { %2963 = vmatprep.subr.mxu1 %v6679_v34  ;;  %4339 = vmatprep.subr.mxu0 %v7398_v45 }
 0x666   :  { %2964 = vmatpush1.msra.mxu1 %v6683_v3  ;;  %4340 = vmatpush3.msra.mxu0 %v6908_v4 }
 0x667   :  { %2965 = vmatprep.subr.mxu1 %v6687_v54  ;;  %4341 = vmatprep.subr.mxu0 %v7398_v45 }
 0x668   :  { %2966 = vmatpush1.msra.mxu1 %v6691_v60  ;;  %4342 = vmatpush3.msra.mxu0 %v6914_v51 }
 0x669   :  { %2967 = vmatprep.subr.mxu1 %v6695_v33  ;;  %4343 = vmatprep.subr.mxu0 %v7398_v45 }
 0x66a   :  { %2968 = vmatpush1.msra.mxu1 %v6699_v11  ;;  %4344 = vmatpush3.msra.mxu0 %v6920_v50 }
 0x66b   :  { %v4564_v53 = vpop.eup %4563  ;;  %2969 = vmatprep.subr.mxu1 %v6703_v0  ;;  %4345 = vmatprep.subr.mxu0 %v7398_v45 }
 0x66c   :  { %v2756_v29 = vsub.f32 %v6754_v61, %v4564_v53  ;;  %2970 = vmatpush1.msra.mxu1 %v6708_v30  ;;  %4346 = vmatpush3.msra.mxu0 %v6927_v5  ;;  %v4566_v49 = vpop.eup %4565 }
 0x66d   :  { %2971 = vmatprep.subr.mxu1 %v6712_v16  ;;  %4347 = vmatprep.subr.mxu0 %v7398_v45 }
 0x66e   :  { %v2757_v28 = vmul.f32 %v4566_v49, %v2756_v29  ;;  %2972 = vmatpush1.msra.mxu1 %v6716_v63  ;;  %4348 = vmatpush3.msra.mxu0 %v6933_v41 }
 0x66f   :  { %2973 = vmatprep.subr.mxu1 %v6720_v56  ;;  %4349 = vmatprep.subr.mxu0 %v7398_v45 }
 0x670   :  { %2974 = vmatpush1.msra.mxu1 %v7635_v23  ;;  %4350 = vmatpush3.msra.mxu0 %v6939_v46  ;;  %v2758_v13 = vadd.f32 %v4564_v53, %v2757_v28  ;;  %v6952_v53 = vld [vmem:[#allocation6 + $0x28] sm:$0xff] }
 0x671   :  { %2975 = vmatprep.subr.mxu1 %v6728_v26  ;;  %4351 = vmatprep.subr.mxu0 %v7398_v45  ;;  %7637 = vst [vmem:[#allocation86_spill] sm:$0xff] %v6952_v53 }
 0x672   :  { %2976 = vmatpush1.msra.mxu1 %v6732_v38  ;;  %4352 = vmatpush3.msra.mxu0 %v6945_v43  ;;  %v2773_v35 = vmul.f32 %v2771_v1, %v2758_v13  ;;  %v2778_v29 = vsub.f32 %v2758_v13, %v6754_v61  ;;  %v6962_v13 = vld [vmem:[#allocation6 + $0x10] sm:$0xff] }
 0x673   :  { %2977 = vmatprep.subr.mxu1 %v6737_v39  ;;  %4353 = vmatprep.subr.mxu0 %v7398_v45  ;;  %7638 = vst [vmem:[#allocation87_spill] sm:$0xff] %v6962_v13 }
 0x674   :  { %2978 = vmatpush1.msra.mxu1 %v6741_v48  ;;  %4354 = vmatpush3.msra.mxu0 %v6952_v53  ;;  %2774 = vst [vmem:[#allocation8 + $0x28] sm:$0xff] %v2773_v35  ;;  %v2779_v49 = vmul.f32 %v2778_v29, %v2771_v1  ;;  %v7649_v1 = vld [vmem:[#allocation23_spill] sm:$0xff]  ;;  %v7650_v35 = vld [vmem:[#allocation62_spill] sm:$0xff]  ;;  %v7651_v29 = vld [vmem:[#allocation24_spill] sm:$0xff] }
 0x675   :  { %2979 = vmatprep.subr.mxu1 %v6745_v47  ;;  %4355 = vmatprep.subr.mxu0 %v7398_v45  ;;  %v7684_v47 = vld [vmem:[#allocation59_spill] sm:$0xff] }
 0x676   :  { %2980 = vmatpush1.msra.mxu1 %v6749_v9  ;;  %3013 = vmatprep.mubr.f32.mxu1 %v7398_v45  ;;  %v6960_v28 = vadd.f32 %v2779_v49, %v6754_v61  ;;  %v7648_v61 = vld [vmem:[#allocation22_spill] sm:$0xff]  ;;  %v7652_v49 = vld [vmem:[#allocation25_spill] sm:$0xff] }
 0x677   :  { %4356 = vmatpush3.msra.mxu0 %v6962_v13  ;;  %4357 = vmatprep.mubr.msk.f32.mxu0 %vm4897_vm1, %v7398_v45 }
 0x678   :  { %3014 = vmatmul.mubr.f32.vlgmr.msra.gmra.mxu1 %v6960_v28  ;;  %4358 = vmatmul.mubr.f32.vlgmr.msra.gmra.mxu0 %v6960_v28 }
 0x679   :  { %3139 = vmatprep.subr.mxu1 %v6465_v24  ;;  %4360 = vmatprep.subr.mxu0 %v7398_v45  ;;  %v7639_v24 = vld [vmem:[#allocation73_spill] sm:$0xff] }
 0x67a   :  { %3140 = vmatpush1.msra.mxu1 %v6469_v62  ;;  %4361 = vmatpush3.msra.mxu0 %v6472_v2  ;;  %v7640_v62 = vld [vmem:[#allocation74_spill] sm:$0xff]  ;;  %v7641_v2 = vld [vmem:[#allocation15_spill] sm:$0xff] }
 0x67b   :  { %3141 = vmatprep.subr.mxu1 %v6475_v57  ;;  %4362 = vmatprep.subr.mxu0 %v7398_v45  ;;  %v7642_v57 = vld [vmem:[#allocation16_spill] sm:$0xff] }
 0x67c   :  { %3142 = vmatpush1.msra.mxu1 %v6479_v10  ;;  %4363 = vmatpush3.msra.mxu0 %v6482_v44  ;;  %v7643_v10 = vld [vmem:[#allocation17_spill] sm:$0xff]  ;;  %v7644_v44 = vld [vmem:[#allocation18_spill] sm:$0xff] }
 0x67d   :  { %3143 = vmatprep.subr.mxu1 %v6485_v19  ;;  %4364 = vmatprep.subr.mxu0 %v7398_v45  ;;  %v7645_v19 = vld [vmem:[#allocation19_spill] sm:$0xff] }
 0x67e   :  { %3144 = vmatpush1.msra.mxu1 %v6489_v22  ;;  %4365 = vmatpush3.msra.mxu0 %v6492_v18  ;;  %v7646_v22 = vld [vmem:[#allocation20_spill] sm:$0xff]  ;;  %v7647_v18 = vld [vmem:[#allocation21_spill] sm:$0xff] }
 0x67f   :  { %3145 = vmatprep.subr.mxu1 %v7639_v24  ;;  %4366 = vmatprep.subr.mxu0 %v7398_v45  ;;  %v7653_v24 = vld [vmem:[#allocation57_spill] sm:$0xff] }
 0x680   :  { %3146 = vmatpush1.msra.mxu1 %v7640_v62  ;;  %4367 = vmatpush3.msra.mxu0 %v7641_v2  ;;  %v7654_v62 = vld [vmem:[#allocation26_spill] sm:$0xff]  ;;  %v7655_v2 = vld [vmem:[#allocation27_spill] sm:$0xff] }
 0x681   :  { %3147 = vmatprep.subr.mxu1 %v7642_v57  ;;  %4368 = vmatprep.subr.mxu0 %v7398_v45  ;;  %v7656_v57 = vld [vmem:[#allocation71_spill] sm:$0xff] }
 0x682   :  { %3148 = vmatpush1.msra.mxu1 %v7643_v10  ;;  %4369 = vmatpush3.msra.mxu0 %v7644_v44  ;;  %v7657_v10 = vld [vmem:[#allocation28_spill] sm:$0xff]  ;;  %v7658_v44 = vld [vmem:[#allocation29_spill] sm:$0xff] }
 0x683   :  { %3149 = vmatprep.subr.mxu1 %v7645_v19  ;;  %4370 = vmatprep.subr.mxu0 %v7398_v45  ;;  %v7659_v19 = vld [vmem:[#allocation72_spill] sm:$0xff] }
 0x684   :  { %3150 = vmatpush1.msra.mxu1 %v7646_v22  ;;  %4371 = vmatpush3.msra.mxu0 %v7647_v18  ;;  %v7660_v22 = vld [vmem:[#allocation30_spill] sm:$0xff]  ;;  %v7661_v18 = vld [vmem:[#allocation31_spill] sm:$0xff] }
 0x685   :  { %3151 = vmatprep.subr.mxu1 %v7648_v61  ;;  %4372 = vmatprep.subr.mxu0 %v7398_v45  ;;  %v7662_v61 = vld [vmem:[#allocation45_spill] sm:$0xff] }
 0x686   :  { %3152 = vmatpush1.msra.mxu1 %v7649_v1  ;;  %4373 = vmatpush3.msra.mxu0 %v7650_v35  ;;  %v7663_v1 = vld [vmem:[#allocation32_spill] sm:$0xff]  ;;  %v7664_v35 = vld [vmem:[#allocation33_spill] sm:$0xff] }
 0x687   :  { %3153 = vmatprep.subr.mxu1 %v7651_v29  ;;  %4374 = vmatprep.subr.mxu0 %v7398_v45  ;;  %v7665_v29 = vld [vmem:[#allocation82_spill] sm:$0xff] }
 0x688   :  { %3154 = vmatpush1.msra.mxu1 %v7652_v49  ;;  %4375 = vmatpush3.msra.mxu0 %v7653_v24  ;;  %v7666_v49 = vld [vmem:[#allocation34_spill] sm:$0xff]  ;;  %v7667_v24 = vld [vmem:[#allocation35_spill] sm:$0xff] }
 0x689   :  { %3155 = vmatprep.subr.mxu1 %v7654_v62  ;;  %4376 = vmatprep.subr.mxu0 %v7398_v45  ;;  %v7668_v62 = vld [vmem:[#allocation83_spill] sm:$0xff] }
 0x68a   :  { %3156 = vmatpush1.msra.mxu1 %v7655_v2  ;;  %4377 = vmatpush3.msra.mxu0 %v7656_v57  ;;  %v7669_v2 = vld [vmem:[#allocation36_spill] sm:$0xff]  ;;  %v7670_v57 = vld [vmem:[#allocation37_spill] sm:$0xff] }
 0x68b   :  { %3157 = vmatprep.subr.mxu1 %v7657_v10  ;;  %4378 = vmatprep.subr.mxu0 %v7398_v45  ;;  %v7671_v10 = vld [vmem:[#allocation47_spill] sm:$0xff] }
 0x68c   :  { %3158 = vmatpush1.msra.mxu1 %v7658_v44  ;;  %4379 = vmatpush3.msra.mxu0 %v7659_v19  ;;  %v7672_v44 = vld [vmem:[#allocation38_spill] sm:$0xff]  ;;  %v7673_v19 = vld [vmem:[#allocation75_spill] sm:$0xff] }
 0x68d   :  { %3159 = vmatprep.subr.mxu1 %v7660_v22  ;;  %4380 = vmatprep.subr.mxu0 %v7398_v45  ;;  %v7674_v22 = vld [vmem:[#allocation84_spill] sm:$0xff] }
 0x68e   :  { %3160 = vmatpush1.msra.mxu1 %v7661_v18  ;;  %4381 = vmatpush3.msra.mxu0 %v7662_v61  ;;  %v7675_v18 = vld [vmem:[#allocation76_spill] sm:$0xff]  ;;  %v7676_v61 = vld [vmem:[#allocation77_spill] sm:$0xff] }
 0x68f   :  { %3161 = vmatprep.subr.mxu1 %v7663_v1  ;;  %4382 = vmatprep.subr.mxu0 %v7398_v45  ;;  %v7677_v1 = vld [vmem:[#allocation85_spill] sm:$0xff] }
 0x690   :  { %3162 = vmatpush1.msra.mxu1 %v7664_v35  ;;  %4383 = vmatpush3.msra.mxu0 %v7665_v29  ;;  %v7678_v35 = vld [vmem:[#allocation78_spill] sm:$0xff] }
 0x691   :  { %3163 = vmatprep.subr.mxu1 %v7666_v49  ;;  %4384 = vmatprep.subr.mxu0 %v7398_v45 }
 0x692   :  { %3164 = vmatpush1.msra.mxu1 %v7667_v24  ;;  %4385 = vmatpush3.msra.mxu0 %v7668_v62  ;;  %v7679_v24 = vld [vmem:[#allocation43_spill] sm:$0xff] }
 0x693   :  { %3165 = vmatprep.subr.mxu1 %v7669_v2  ;;  %4386 = vmatprep.subr.mxu0 %v7398_v45 }
 0x694   :  { %3166 = vmatpush1.msra.mxu1 %v7670_v57  ;;  %4387 = vmatpush3.msra.mxu0 %v7671_v10 }
 0x695   :  { %3167 = vmatprep.subr.mxu1 %v7672_v44  ;;  %4388 = vmatprep.subr.mxu0 %v7398_v45  ;;  %v7680_v44 = vld [vmem:[#allocation44_spill] sm:$0xff] }
 0x696   :  { %3168 = vmatpush1.msra.mxu1 %v7673_v19  ;;  %4389 = vmatpush3.msra.mxu0 %v7674_v22 }
 0x697   :  { %3169 = vmatprep.subr.mxu1 %v7675_v18  ;;  %4390 = vmatprep.subr.mxu0 %v7398_v45 }
 0x698   :  { %3170 = vmatpush1.msra.mxu1 %v7676_v61  ;;  %4391 = vmatpush3.msra.mxu0 %v7677_v1 }
 0x699   :  { %3203 = vmatprep.mubr.f32.mxu1 %v7398_v45  ;;  %4392 = vmatprep.mubr.msk.f32.mxu0 %vm4897_vm1, %v7398_v45 }
 0x69a   :  { %3301 = vmatprep.subr.mxu1 %v7678_v35  ;;  %4395 = vmatprep.subr.mxu0 %v7398_v45  ;;  %v7043_v35 = vld [vmem:[%s7160_s5] ss:$0 sm:$0xff] }
 0x69b   :  { %7681 = vst [vmem:[#allocation88_spill] sm:$0xff] %v7043_v35 }
 0x717   :  { %v2853_v29 = vpop.f32.mrf.mxu1  ;;  %v2924_v49 = vpop.f32.mrf.mxu0 }
 0x718   :  { %v2928_v62 = vadd.f32 %v2853_v29, %v7679_v24  ;;  %v2942_v13 = vadd.f32 %v7043_v35, %v2924_v49 }
 0x719   :  { %v4324_v2 = vpop.f32.mrf.mxu0  ;;  %v2855_v10 = vpop.f32.mrf.mxu1 }
 0x71a   :  { %v3587_v57 = vmul.f32 -1.442695, %v2928_v62  ;;  %v2935_v19 = vadd.f32 %v2855_v10, %v7680_v44  ;;  %v7682_v2 = vld [vmem:[#allocation54_spill] sm:$0xff] }
 0x71c   :  { %4567 = vpow2.f32 %v3587_v57  ;;  %v3588_v22 = vmul.f32 -1.442695, %v2935_v19  ;;  %v7683_v19 = vld [vmem:[#allocation65_spill] sm:$0xff] }
 0x71e   :  { %4569 = vpow2.f32 %v3588_v22 }
 0x729   :  { %v4568_v18 = vpop.eup %4567 }
 0x72a   :  { %v2932_v61 = vadd.f32 1.0, %v4568_v18 }
 0x72b   :  { %v4570_v1 = vpop.eup %4569 }
 0x72c   :  { %4571 = vrcp.f32 %v2932_v61  ;;  %v2939_v22 = vadd.f32 1.0, %v4570_v1 }
 0x738   :  { %v3015_v29 = vpop.f32.mrf.mxu1  ;;  %v3086_v24 = vpop.f32.mrf.mxu0 }
 0x739   :  { %v4572_v62 = vpop.eup %4571  ;;  %v3090_v57 = vadd.f32 %v3015_v29, %v7682_v2  ;;  %v3116_v2 = vpop.permute.xlu0 %3115 }
 0x73a   :  { %v2943_v9 = vmul.f32 %v4572_v62, %v2942_v13  ;;  %v4359_v10 = vpop.f32.mrf.mxu0  ;;  %v3017_v61 = vpop.f32.mrf.mxu1 }
 0x73b   :  { %v3589_v44 = vmul.f32 -1.442695, %v3090_v57  ;;  %v3097_v53 = vadd.f32 %v3017_v61, %v7684_v47 }
 0x73c   :  { %v2944_v18 = vadd.f32 %v2943_v9, %v7683_v19 }
 0x73d   :  { %4573 = vpow2.f32 %v3589_v44  ;;  %v3590_v48 = vmul.f32 -1.442695, %v3097_v53  ;;  %v7685_v53 = vld [vmem:[#allocation61_spill] sm:$0xff] }
 0x73e   :  { %4575 = vtanh.f32 %v2944_v18  ;;  %v7698_v18 = vld [vmem:[#allocation52_spill] sm:$0xff] }
 0x73f   :  { %4577 = vrcp.f32 %v2939_v22 }
 0x740   :  { %4579 = vpow2.f32 %v3590_v48  ;;  %v7059_v48 = vld [vmem:[%s7162_s7] ss:$0 sm:$0xff]  ;;  %s4898_s7 = smov [#allocation8]  }
 0x741   :  { %v3104_v47 = vadd.f32 %v7059_v48, %v3086_v24  ;;  %s3492_s15 = sshll.u32 %s4898_s7, 4  ;;  %s3493_s15 = int_to_ptr.vmem [resolvable:$true] %s3492_s15 }
 0x742   :  { %s4843_s18 = scalar_lea.vmem %s3493_s15, 2048  ;;  %p4848_p11 = scmp.lt.s32.totalorder %s3493_s15, %s3493_s15 }
 0x743   :  { %p4844_p10 = scmp.ne.s32.totalorder %s3493_s15, %s4843_s18  ;;  %p4849_p12 = scmp.lt.s32.totalorder %s4843_s18, %s4843_s18 }
 0x745   :  { %p4850_p13 = por %p4849_p12, %p4848_p11 }
 0x747   :  { %p4851_p0 = pnand %p4850_p13, %p4844_p10 }
 0x74a   :  { %v4574_v39 = vpop.eup %4573 }
 0x74b   :  { %v4576_v49 = vpop.eup %4575  ;;  %v3094_v35 = vadd.f32 1.0, %v4574_v39 }
 0x74c   :  { %v2946_v43 = vsub.f32 %v6859_v27, %v4576_v49  ;;  %v4578_v29 = vpop.eup %4577 }
 0x74d   :  { %4581 = vrcp.f32 %v3094_v35  ;;  %v4580_v39 = vpop.eup %4579 }
 0x74e   :  { %v2947_v13 = vmul.f32 %v4578_v29, %v2946_v43  ;;  %v3101_v24 = vadd.f32 1.0, %v4580_v39 }
 0x750   :  { %v2948_v62 = vadd.f32 %v4576_v49, %v2947_v13 }
 0x752   :  { %v3118_v9 = vmul.f32 %v3116_v2, %v2948_v62  ;;  %v3127_v1 = vsub.f32 %v2948_v62, %v6859_v27 }
 0x754   :  { %3119 = vst [vmem:[#allocation8 + $0x60] sm:$0xff] %v3118_v9  ;;  %v3128_v57 = vmul.f32 %v3127_v1, %v3116_v2 }
 0x756   :  { %v7052_v10 = vadd.f32 %v3128_v57, %v6859_v27  ;;  %v3468_v57 = vpop.permute.xlu0 %3467 }
 0x758   :  { %3204 = vmatmul.mubr.f32.vlgmr.msra.gmra.mxu1 %v7052_v10  ;;  %4393 = vmatmul.mubr.f32.vlgmr.msra.gmra.mxu0 %v7052_v10 }
 0x759   :  { %3302 = vmatpush1.msra.mxu1 %v6626_v36  ;;  %4396 = vmatpush3.msra.mxu0 %v6865_v32 }
 0x75a   :  { %v4582_v43 = vpop.eup %4581  ;;  %3303 = vmatprep.subr.mxu1 %v6630_v55  ;;  %4397 = vmatprep.subr.mxu0 %v7398_v45 }
 0x75b   :  { %v3105_v27 = vmul.f32 %v4582_v43, %v3104_v47  ;;  %3304 = vmatpush1.msra.mxu1 %v6634_v17  ;;  %4398 = vmatpush3.msra.mxu0 %v6871_v25 }
 0x75c   :  { %3305 = vmatprep.subr.mxu1 %v6638_v58  ;;  %4399 = vmatprep.subr.mxu0 %v7398_v45 }
 0x75d   :  { %v3106_v35 = vadd.f32 %v3105_v27, %v7685_v53  ;;  %3306 = vmatpush1.msra.mxu1 %v6643_v20  ;;  %4400 = vmatpush3.msra.mxu0 %v6878_v7 }
 0x75e   :  { %3307 = vmatprep.subr.mxu1 %v6647_v52  ;;  %4401 = vmatprep.subr.mxu0 %v7398_v45  ;;  %v3123_v52 = vpop.permute.xlu1 %3122 }
 0x75f   :  { %4583 = vtanh.f32 %v3106_v35  ;;  %3308 = vmatpush1.msra.mxu1 %v6651_v31  ;;  %4402 = vmatpush3.msra.mxu0 %v6884_v6  ;;  %v7686_v31 = vld [vmem:[#allocation64_spill] sm:$0xff] }
 0x760   :  { %3309 = vmatprep.subr.mxu1 %v6655_v8  ;;  %4403 = vmatprep.subr.mxu0 %v7398_v45  ;;  %4585 = vrcp.f32 %v3101_v24  ;;  %v7695_v6 = vld [vmem:[#allocation88_spill] sm:$0xff] }
 0x761   :  { %3310 = vmatpush1.msra.mxu1 %v6659_v12  ;;  %4404 = vmatpush3.msra.mxu0 %v6890_v15 }
 0x762   :  { %3311 = vmatprep.subr.mxu1 %v6663_v40  ;;  %4405 = vmatprep.subr.mxu0 %v7398_v45  ;;  %v7687_v40 = vld [vmem:[#allocation80_spill] sm:$0xff] }
 0x763   :  { %3312 = vmatpush1.msra.mxu1 %v6667_v21  ;;  %4406 = vmatpush3.msra.mxu0 %v6896_v37  ;;  %v7688_v21 = vld [vmem:[#allocation81_spill] sm:$0xff] }
 0x764   :  { %3313 = vmatprep.subr.mxu1 %v6671_v59  ;;  %4407 = vmatprep.subr.mxu0 %v7398_v45  ;;  %v7689_v59 = vld [vmem:[#allocation86_spill] sm:$0xff] }
 0x765   :  { %3314 = vmatpush1.msra.mxu1 %v6675_v42  ;;  %4408 = vmatpush3.msra.mxu0 %v6902_v14 }
 0x766   :  { %3315 = vmatprep.subr.mxu1 %v6679_v34  ;;  %4409 = vmatprep.subr.mxu0 %v7398_v45  ;;  %v7690_v34 = vld [vmem:[#allocation49_spill] sm:$0xff] }
 0x767   :  { %3316 = vmatpush1.msra.mxu1 %v6683_v3  ;;  %4410 = vmatpush3.msra.mxu0 %v6908_v4  ;;  %v7691_v3 = vld [vmem:[#allocation50_spill] sm:$0xff] }
 0x768   :  { %3317 = vmatprep.subr.mxu1 %v6687_v54  ;;  %4411 = vmatprep.subr.mxu0 %v7398_v45 }
 0x769   :  { %3318 = vmatpush1.msra.mxu1 %v6691_v60  ;;  %4412 = vmatpush3.msra.mxu0 %v6914_v51  ;;  %v7692_v60 = vld [vmem:[#allocation87_spill] sm:$0xff] }
 0x76a   :  { %3319 = vmatprep.subr.mxu1 %v6695_v33  ;;  %4413 = vmatprep.subr.mxu0 %v7398_v45  ;;  %v7696_v51 = vld [vmem:[#allocation51_spill] sm:$0xff] }
 0x76b   :  { %3320 = vmatpush1.msra.mxu1 %v6699_v11  ;;  %4414 = vmatpush3.msra.mxu0 %v6920_v50 }
 0x76c   :  { %v4584_v36 = vpop.eup %4583  ;;  %3321 = vmatprep.subr.mxu1 %v6703_v0  ;;  %4415 = vmatprep.subr.mxu0 %v7398_v45  ;;  %v7693_v0 = vld [vmem:[#allocation46_spill] sm:$0xff] }
 0x76d   :  { %v3108_v55 = vsub.f32 %v6960_v28, %v4584_v36  ;;  %3322 = vmatpush1.msra.mxu1 %v6708_v30  ;;  %4416 = vmatpush3.msra.mxu0 %v6927_v5  ;;  %v4586_v17 = vpop.eup %4585 }
 0x76e   :  { %3323 = vmatprep.subr.mxu1 %v6712_v16  ;;  %4417 = vmatprep.subr.mxu0 %v7398_v45 }
 0x76f   :  { %v3109_v58 = vmul.f32 %v4586_v17, %v3108_v55  ;;  %3324 = vmatpush1.msra.mxu1 %v6716_v63  ;;  %4418 = vmatpush3.msra.mxu0 %v6933_v41  ;;  %v7699_v55 = vld [vmem:[#allocation53_spill] sm:$0xff] }
 0x770   :  { %3325 = vmatprep.subr.mxu1 %v6720_v56  ;;  %4419 = vmatprep.subr.mxu0 %v7398_v45 }
 0x771   :  { %3326 = vmatpush1.msra.mxu1 %v7635_v23  ;;  %4420 = vmatpush3.msra.mxu0 %v6939_v46  ;;  %v3110_v20 = vadd.f32 %v4584_v36, %v3109_v58  ;;  %v7697_v46 = vld [vmem:[#allocation67_spill] sm:$0xff] }
 0x772   :  { %3327 = vmatprep.subr.mxu1 %v6728_v26  ;;  %4421 = vmatprep.subr.mxu0 %v7398_v45  ;;  %v7694_v26 = vld [vmem:[#allocation48_spill] sm:$0xff] }
 0x773   :  { %3328 = vmatpush1.msra.mxu1 %v6732_v38  ;;  %4422 = vmatpush3.msra.mxu0 %v7686_v31  ;;  %v3125_v8 = vmul.f32 %v3123_v52, %v3110_v20  ;;  %v3130_v12 = vsub.f32 %v3110_v20, %v6960_v28 }
 0x774   :  { %3329 = vmatprep.subr.mxu1 %v7687_v40  ;;  %4423 = vmatprep.subr.mxu0 %v7398_v45 }
 0x775   :  { %3330 = vmatpush1.msra.mxu1 %v7688_v21  ;;  %4424 = vmatpush3.msra.mxu0 %v7689_v59  ;;  %3126 = vst [vmem:[#allocation8 + $0x18] sm:$0xff] %v3125_v8  ;;  %v3131_v42 = vmul.f32 %v3130_v12, %v3123_v52 }
 0x776   :  { %3331 = vmatprep.subr.mxu1 %v7690_v34  ;;  %4425 = vmatprep.subr.mxu0 %v7398_v45 }
 0x777   :  { %3332 = vmatpush1.msra.mxu1 %v7691_v3  ;;  %3365 = vmatprep.mubr.f32.mxu1 %v7398_v45  ;;  %v7128_v54 = vadd.f32 %v3131_v42, %v6960_v28 }
 0x778   :  { %4426 = vmatpush3.msra.mxu0 %v7692_v60  ;;  %4427 = vmatprep.mubr.msk.f32.mxu0 %vm4897_vm1, %v7398_v45 }
 0x779   :  { %3366 = vmatmul.mubr.f32.vlgmr.msra.gmra.mxu1 %v7128_v54  ;;  %4428 = vmatmul.mubr.f32.vlgmr.msra.gmra.mxu0 %v7128_v54 }
 0x818   :  { %v3205_v33 = vpop.f32.mrf.mxu1  ;;  %v3276_v11 = vpop.f32.mrf.mxu0 }
 0x819   :  { %v3280_v30 = vadd.f32 %v3205_v33, %v7693_v0  ;;  %v3294_v15 = vadd.f32 %v7695_v6, %v3276_v11 }
 0x81a   :  { %v4394_v16 = vpop.f32.mrf.mxu0  ;;  %v3207_v56 = vpop.f32.mrf.mxu1 }
 0x81b   :  { %v3593_v63 = vmul.f32 -1.442695, %v3280_v30  ;;  %v3287_v38 = vadd.f32 %v3207_v56, %v7694_v26 }
 0x81d   :  { %4587 = vpow2.f32 %v3593_v63  ;;  %v3594_v32 = vmul.f32 -1.442695, %v3287_v38 }
 0x81f   :  { %4589 = vpow2.f32 %v3594_v32 }
 0x82a   :  { %v4588_v25 = vpop.eup %4587 }
 0x82b   :  { %v3284_v7 = vadd.f32 1.0, %v4588_v25 }
 0x82c   :  { %v4590_v45 = vpop.eup %4589 }
 0x82d   :  { %4591 = vrcp.f32 %v3284_v7  ;;  %v3291_v44 = vadd.f32 1.0, %v4590_v45 }
 0x839   :  { %v3367_v37 = vpop.f32.mrf.mxu1  ;;  %v3438_v14 = vpop.f32.mrf.mxu0 }
 0x83a   :  { %v4592_v4 = vpop.eup %4591  ;;  %v3442_v50 = vadd.f32 %v3367_v37, %v7696_v51  ;;  %v3456_v35 = vadd.f32 %v7059_v48, %v3438_v14 }
 0x83b   :  { %v3295_v5 = vmul.f32 %v4592_v4, %v3294_v15  ;;  %v4429_v41 = vpop.f32.mrf.mxu0  ;;  %v3369_v19 = vpop.f32.mrf.mxu1 }
 0x83c   :  { %v3595_v23 = vmul.f32 -1.442695, %v3442_v50  ;;  %v3449_v22 = vadd.f32 %v3369_v19, %v7698_v18 }
 0x83d   :  { %v3296_v28 = vadd.f32 %v3295_v5, %v7697_v46 }
 0x83e   :  { %4593 = vpow2.f32 %v3595_v23  ;;  %v3596_v61 = vmul.f32 -1.442695, %v3449_v22 }
 0x83f   :  { %4595 = vtanh.f32 %v3296_v28 }
 0x840   :  { %4597 = vrcp.f32 %v3291_v44 }
 0x841   :  { %4599 = vpow2.f32 %v3596_v61 }
 0x84b   :  { %v4594_v49 = vpop.eup %4593 }
 0x84c   :  { %v4596_v29 = vpop.eup %4595  ;;  %v3446_v13 = vadd.f32 1.0, %v4594_v49 }
 0x84d   :  { %v3298_v62 = vsub.f32 %v7052_v10, %v4596_v29  ;;  %v4598_v2 = vpop.eup %4597 }
 0x84e   :  { %4601 = vrcp.f32 %v3446_v13  ;;  %v4600_v53 = vpop.eup %4599 }
 0x84f   :  { %v3299_v9 = vmul.f32 %v4598_v2, %v3298_v62  ;;  %v3453_v58 = vadd.f32 1.0, %v4600_v53 }
 0x851   :  { %v3300_v1 = vadd.f32 %v4596_v29, %v3299_v9 }
 0x853   :  { %v3470_v39 = vmul.f32 %v3468_v57, %v3300_v1  ;;  %v3479_v47 = vsub.f32 %v3300_v1, %v7052_v10 }
 0x855   :  { %3471 = vst [vmem:[#allocation8 + $0x70] sm:$0xff] %v3470_v39  ;;  %v3480_v43 = vmul.f32 %v3479_v47, %v3468_v57 }
 0x857   :  { %v3481_v27 = vadd.f32 %v3480_v43, %v7052_v10  ;;  %v3475_v10 = vpop.permute.xlu1 %3474 }
 0x859   :  { %3485 = vst [vmem:[#allocation9] sm:$0xff] %v3481_v27 }
 0x85b   :  { %v4602_v24 = vpop.eup %4601 }
 0x85c   :  { %v3457_v36 = vmul.f32 %v4602_v24, %v3456_v35 }
 0x85e   :  { %v3458_v17 = vadd.f32 %v3457_v36, %v7699_v55 }
 0x860   :  { %4603 = vtanh.f32 %v3458_v17 }
 0x861   :  { %4605 = vrcp.f32 %v3453_v58 }
 0x86d   :  { %v4604_v20 = vpop.eup %4603 }
 0x86e   :  { %v3460_v52 = vsub.f32 %v7128_v54, %v4604_v20  ;;  %v4606_v31 = vpop.eup %4605 }
 0x870   :  { %v3461_v8 = vmul.f32 %v4606_v31, %v3460_v52 }
 0x872   :  { %v3462_v12 = vadd.f32 %v4604_v20, %v3461_v8 }
 0x874   :  { %v3477_v40 = vmul.f32 %v3475_v10, %v3462_v12  ;;  %v3482_v48 = vsub.f32 %v3462_v12, %v7128_v54 }
 0x876   :  { %3478 = vst [vmem:[#allocation8 + $0x8] sm:$0xff] %v3477_v40  ;;  %v3483_v21 = vmul.f32 %v3482_v48, %v3475_v10 }
 0x877   :  { %4854 = shalt.err (!%p4851_p0)
}
 0x878   :  { %s4900_s19 = smov 256   ;;  %s4901_s20 = smov 16   ;;  %v3484_v59 = vadd.f32 %v3483_v21, %v7128_v54 }
 0x879   :  { %3498 = dma.vmem_to_hbm [thread:$0]  %s3493_s15, 2048, %s7163_s8, [#allocation5], %s4900_s19, %s4900_s19, %s4901_s20  }
 0x87a   :  { %3486 = vst [vmem:[#allocation9 + $0x8] sm:$0xff] %v3484_v59  ;;  %s4863_s22 = scalar_lea.vmem %s3506_s17, 256  ;;  %p4868_p2 = scmp.lt.s32.totalorder %s3506_s17, %s3506_s17 }
 0x87b   :  { %p4864_p1 = scmp.ne.s32.totalorder %s3506_s17, %s4863_s22  ;;  %p4869_p3 = scmp.lt.s32.totalorder %s4863_s22, %s4863_s22 }
 0x87d   :  { %p4870_p4 = por %p4869_p3, %p4868_p2 }
 0x87f   :  { %p4871_p5 = pnand %p4870_p4, %p4864_p1 }
 0x881   :  { %4874 = shalt.err (!%p4871_p5)
}
 0x882   :  { %3508 = dma.vmem_to_hbm [thread:$0]  %s3506_s17, 256, %s7164_s9, [#allocation10]  }
 0x883   :  { %4887 = dma.done.wait [#allocation5], 2048  }
 0x884   :  { %4888 = vsyncadd [#allocation5], 4294965248 }
 0x885   :  { %4889 = dma.done.wait [#allocation10], 256  }
 0x886   :  { %4890 = vsyncadd [#allocation10], 4294967040 }
 0x887   :  { %3515 = vsyncpa [#allocation4], 1 }
 0x888   :  { %3516 = vsyncpa [#allocation7], 1 }
 0x889   :  { %3517 = vsyncpa [#allocation5], 1 }
 0x88a   :  { %3518 = vsyncpa [#allocation10], 1 }

</bundles_post_ra>
